<compile_context>
chip_gen: v5e
topology: v5e:2x2
jax: 0.10.0
libtpu: 0.0.40
codegen_flags: <defaults>
</compile_context>

<pallas_src>
import functools

import jax
import jax.numpy as jnp
from jax.experimental import pallas as pl
from jax.experimental.pallas import tpu as pltpu


# ------------------------------- static config -------------------------------

IN_DIM, BASE, CLASS_NUM = 4, 16, 10
CPAD = 128                    # trunk channels zero-padded to the 128-lane width
STAGE_STRIDES = (1, 2, 2, 2)  # STRIDE1=1, then 2, 2, 2  (static python ints!)
HEAD_KPAD = 256               # head conv K = 7*7*IN_DIM = 196 -> padded to 256


# ------------------------------- Pallas kernels -------------------------------

def _bn_f32(y, g, b):
    """Training-mode BatchNorm over the M (=N*H*W) axis, single-pass, f32."""
    inv_m = 1.0 / y.shape[0]
    mean = jnp.sum(y, axis=0, keepdims=True) * inv_m
    var = jnp.sum(y * y, axis=0, keepdims=True) * inv_m - mean * mean
    return (y - mean) * jax.lax.rsqrt(var + 1e-5) * g + b


def _conv_bn_kernel(p_ref, w_ref, g_ref, b_ref, o_ref, *, relu):
    # (M,K)bf16 @ (K,C)bf16 -> f32, then BN (+ReLU), store bf16.
    y = jnp.dot(p_ref[...], w_ref[...], preferred_element_type=jnp.float32)
    out = _bn_f32(y, g_ref[...], b_ref[...])
    if relu:
        out = jnp.maximum(out, 0.0)
    o_ref[...] = out.astype(o_ref.dtype)


def _conv_bn_add_relu_kernel(p_ref, w_ref, g_ref, b_ref, r_ref, o_ref):
    # relu( BN(conv) + residual ) — identity-shortcut BasicBlock tail.
    y = jnp.dot(p_ref[...], w_ref[...], preferred_element_type=jnp.float32)
    out = _bn_f32(y, g_ref[...], b_ref[...]) + r_ref[...].astype(jnp.float32)
    o_ref[...] = jnp.maximum(out, 0.0).astype(o_ref.dtype)


def _conv_bn_dual_add_relu_kernel(p2_ref, w2_ref, g2_ref, b2_ref,
                                  pd_ref, wd_ref, gd_ref, bd_ref, o_ref):
    # relu( BN2(conv2) + BNd(conv1x1 downsample) ) — 'B'-op BasicBlock tail, fully fused.
    y2 = jnp.dot(p2_ref[...], w2_ref[...], preferred_element_type=jnp.float32)
    yd = jnp.dot(pd_ref[...], wd_ref[...], preferred_element_type=jnp.float32)
    out = _bn_f32(y2, g2_ref[...], b2_ref[...]) + _bn_f32(yd, gd_ref[...], bd_ref[...])
    o_ref[...] = jnp.maximum(out, 0.0).astype(o_ref.dtype)


def _maxpool_kernel(p_ref, o_ref):
    # (M, KK, C) -> max over the window axis (f32 reduce, bf16 store).
    o_ref[...] = jnp.max(p_ref[...].astype(jnp.float32), axis=1).astype(o_ref.dtype)


def _pool_fc_kernel(x_ref, w_ref, b_ref, o_ref):
    # AdaptiveAvgPool2d((1,1)) + Flatten + Linear, fused.
    pooled = jnp.mean(x_ref[...].astype(jnp.float32), axis=1)        # (N, C)
    o_ref[...] = (jnp.dot(pooled.astype(w_ref.dtype), w_ref[...],
                          preferred_element_type=jnp.float32) + b_ref[...])


# ------------------------------ pallas_call wrappers ------------------------------

def _vspec(shape):
    nd = len(shape)
    return pl.BlockSpec(shape, lambda i, _nd=nd: (0,) * _nd)


_CP = pltpu.CompilerParams(dimension_semantics=("arbitrary",))


def pallas_conv_bn(patches, wmat, g, b, *, relu):
    M, K = patches.shape
    C = wmat.shape[1]
    return pl.pallas_call(
        functools.partial(_conv_bn_kernel, relu=relu),
        out_shape=jax.ShapeDtypeStruct((M, C), jnp.bfloat16),
        grid=(1,),
        in_specs=[_vspec((M, K)), _vspec((K, C)), _vspec((1, C)), _vspec((1, C))],
        out_specs=_vspec((M, C)),
        compiler_params=_CP,
    )(patches, wmat, g, b)


def pallas_conv_bn_add_relu(patches, wmat, g, b, r):
    M, K = patches.shape
    C = wmat.shape[1]
    return pl.pallas_call(
        _conv_bn_add_relu_kernel,
        out_shape=jax.ShapeDtypeStruct((M, C), jnp.bfloat16),
        grid=(1,),
        in_specs=[_vspec((M, K)), _vspec((K, C)), _vspec((1, C)), _vspec((1, C)),
                  _vspec((M, C))],
        out_specs=_vspec((M, C)),
        compiler_params=_CP,
    )(patches, wmat, g, b, r)


def pallas_conv_bn_dual_add_relu(p2, w2, g2, b2, pd, wd, gd, bd):
    M, K2 = p2.shape
    Kd = pd.shape[1]
    C = w2.shape[1]
    return pl.pallas_call(
        _conv_bn_dual_add_relu_kernel,
        out_shape=jax.ShapeDtypeStruct((M, C), jnp.bfloat16),
        grid=(1,),
        in_specs=[_vspec((M, K2)), _vspec((K2, C)), _vspec((1, C)), _vspec((1, C)),
                  _vspec((M, Kd)), _vspec((Kd, C)), _vspec((1, C)), _vspec((1, C))],
        out_specs=_vspec((M, C)),
        compiler_params=_CP,
    )(p2, w2, g2, b2, pd, wd, gd, bd)


def pallas_maxpool(patches):
    M, KK, C = patches.shape
    return pl.pallas_call(
        _maxpool_kernel,
        out_shape=jax.ShapeDtypeStruct((M, C), jnp.bfloat16),
        grid=(1,),
        in_specs=[_vspec((M, KK, C))],
        out_specs=_vspec((M, C)),
        compiler_params=_CP,
    )(patches)


def pallas_pool_fc(x, w_t, bias):
    N, HW, C = x.shape
    O = w_t.shape[1]
    return pl.pallas_call(
        _pool_fc_kernel,
        out_shape=jax.ShapeDtypeStruct((N, O), jnp.float32),
        grid=(1,),
        in_specs=[_vspec((N, HW, C)), _vspec((C, O)), _vspec((1, O))],
        out_specs=_vspec((N, O)),
        compiler_params=_CP,
    )(x, w_t, bias)


# --------------------------------- JAX glue ---------------------------------
# TODO(synk): at realistic ResNet sizes the materialized im2col below should be replaced
# by kh*kw shifted accumulating matmuls inside the kernel (avoids the 9x HBM inflation);
# at these tiny shapes it is launch-overhead, not bandwidth, that dominates.

def im2col(x, kh, kw, stride, pad, pad_value=0.0):
    """x: (N,H,W,C) -> patches (N,OH,OW,kh*kw,C). stride/pad are static python ints."""
    N, H, W, C = x.shape
    xp = jnp.pad(x, ((0, 0), (pad, pad), (pad, pad), (0, 0)),
                 constant_values=pad_value)
    OH = (H + 2 * pad - kh) // stride + 1
    OW = (W + 2 * pad - kw) // stride + 1
    cols = [xp[:, i:i + stride * OH:stride, j:j + stride * OW:stride, :]
            for i in range(kh) for j in range(kw)]
    patches = jnp.stack(cols, axis=3)                 # (N, OH, OW, kh*kw, C)
    return patches, (N, OH, OW)


def conv_bn_fused(x, wmat, g, b, kh, kw, stride, pad, relu):
    """Conv2d(bias=False) + BatchNorm2d(batch stats) [+ReLU] as ONE Pallas call."""
    patches, (N, OH, OW) = im2col(x, kh, kw, stride, pad)
    k_real = kh * kw * x.shape[-1]
    p2d = patches.reshape(N * OH * OW, k_real).astype(jnp.bfloat16)
    k_pad = wmat.shape[0]
    if k_pad != k_real:                               # zero-pad K to the aligned size
        p2d = jnp.pad(p2d, ((0, 0), (0, k_pad - k_real)))
    out = pallas_conv_bn(p2d, wmat, g, b, relu=relu)  # (M, CPAD) bf16
    return out.reshape(N, OH, OW, wmat.shape[1])


def maxpool_3x3_s2_p1(x):
    patches, (N, OH, OW) = im2col(x, 3, 3, 2, 1, pad_value=-jnp.inf)
    C = x.shape[-1]
    out = pallas_maxpool(patches.reshape(N * OH * OW, 9, C))
    return out.reshape(N, OH, OW, C)


def basic_block(x, p, stride):
    """BasicBlock (OPERATION='B'): relu( BN2(conv2(relu(BN1(conv1(x))))) + downsample(x) )."""
    cout = p["w1mat"].shape[1]
    x0 = conv_bn_fused(x, p["w1mat"], p["g1"], p["b1"], 3, 3, stride, 1, relu=True)
    patches2, (N, OH, OW) = im2col(x0, 3, 3, 1, 1)
    p2 = patches2.reshape(N * OH * OW, 9 * x0.shape[-1]).astype(jnp.bfloat16)
    if "wdmat" in p:
        # downsample = conv1x1(stride) + BN -> its GEMM input is just the strided rows of x
        pd = x[:, ::stride, ::stride, :].reshape(N * OH * OW, x.shape[-1]).astype(jnp.bfloat16)
        out = pallas_conv_bn_dual_add_relu(p2, p["w2mat"], p["g2"], p["b2"],
                                           pd, p["wdmat"], p["gd"], p["bd"])
    else:
        r = x.reshape(N * OH * OW, cout).astype(jnp.bfloat16)   # identity shortcut
        out = pallas_conv_bn_add_relu(p2, p["w2mat"], p["g2"], p["b2"], r)
    return out.reshape(N, OH, OW, cout)


# --------------------------- parameter construction ---------------------------
# All layout work (NCHW->GEMM weight matrices, channel/K zero-padding, bf16 cast,
# gamma/beta reshape) is done ONCE here, never in the forward path.

def kaiming_conv(key, oc, ic, kh, kw):
    fan_in = ic * kh * kw
    std = (2.0 / fan_in) ** 0.5
    return jax.random.normal(key, (oc, ic, kh, kw), jnp.float32) * std


def prep_conv_w(w, cin_pad, cout_pad, k_pad=None):
    """(Cout,Cin,KH,KW) f32 -> (KH*KW*cin_pad [-> k_pad], cout_pad) bf16, zero-padded."""
    oc, ic, kh, kw = w.shape
    wt = jnp.transpose(w, (2, 3, 1, 0))                               # (KH,KW,Cin,Cout)
    wt = jnp.pad(wt, ((0, 0), (0, 0), (0, cin_pad - ic), (0, cout_pad - oc)))
    wmat = wt.reshape(kh * kw * cin_pad, cout_pad)
    if k_pad is not None and k_pad != wmat.shape[0]:
        wmat = jnp.pad(wmat, ((0, k_pad - wmat.shape[0]), (0, 0)))
    return wmat.astype(jnp.bfloat16)


def prep_bn(c_real, c_pad):
    # padded channels: gamma=0, beta=0 -> they stay exactly 0 through BN/ReLU/residual.
    g = jnp.zeros((1, c_pad), jnp.float32).at[0, :c_real].set(1.0)
    b = jnp.zeros((1, c_pad), jnp.float32)
    return g, b


def make_params(key, in_dim, base, class_num):
    keys = iter(jax.random.split(key, 32))
    params = {}

    # head conv: Conv2d(IN_DIM, BASE, 7, 2, 3) + BN   (K = 7*7*IN_DIM = 196 -> 256)
    head_w = kaiming_conv(next(keys), base, in_dim, 7, 7)
    params["head_wmat"] = prep_conv_w(head_w, cin_pad=in_dim, cout_pad=CPAD, k_pad=HEAD_KPAD)
    params["head_g"], params["head_b"] = prep_bn(base, CPAD)

    # 4 stages, one BasicBlock each (BLOCK_LIST=[1,1,1,1]), OPERATION='B'
    stage_cfg = [(base, base, 1), (base, 2 * base, 2),
                 (2 * base, 4 * base, 2), (4 * base, 8 * base, 2)]
    stages = []
    for cin, cout, stride in stage_cfg:
        blk = {}
        w1 = kaiming_conv(next(keys), cout, cin, 3, 3)
        blk["w1mat"] = prep_conv_w(w1, CPAD, CPAD)
        blk["g1"], blk["b1"] = prep_bn(cout, CPAD)
        w2 = kaiming_conv(next(keys), cout, cout, 3, 3)
        blk["w2mat"] = prep_conv_w(w2, CPAD, CPAD)
        blk["g2"], blk["b2"] = prep_bn(cout, CPAD)
        if not (cin == cout and stride == 1):
            wd = kaiming_conv(next(keys), cout, cin, 1, 1)
            blk["wdmat"] = prep_conv_w(wd, CPAD, CPAD)
            blk["gd"], blk["bd"] = prep_bn(cout, CPAD)
        stages.append(blk)
    params["stages"] = stages

    # fc: Linear(final_feature, CLASS_NUM); pad input rows to CPAD (extra rows are zero).
    final_feature = 8 * base
    fc_std = (2.0 / final_feature) ** 0.5
    fc_w = jax.random.normal(next(keys), (class_num, final_feature), jnp.float32) * fc_std
    fc_wt = jnp.pad(fc_w.T, ((0, CPAD - final_feature), (0, 0)))
    params["fc_wt"] = fc_wt.astype(jnp.bfloat16)                       # (CPAD, CLASS_NUM)
    params["fc_b"] = jnp.zeros((1, class_num), jnp.float32)
    return params


# ----------------------------------- forward -----------------------------------

def resnet_forward(params, x_nchw):
    # PyTorch input is NCHW; TPU kernels use NHWC (channels on the 128-lane axis).
    x = jnp.transpose(x_nchw, (0, 2, 3, 1)).astype(jnp.bfloat16)
    x = conv_bn_fused(x, params["head_wmat"], params["head_g"], params["head_b"],
                      7, 7, 2, 3, relu=True)                           # head_conv
    x = maxpool_3x3_s2_p1(x)                                           # maxpool_1
    for blk, stride in zip(params["stages"], STAGE_STRIDES):           # layer_1 .. layer_4
        x = basic_block(x, blk, stride)
    N, H, W, C = x.shape
    # avgpool_1 + Flatten + fc_1, fused.  dropout: DROPOUT=0 -> identity.
    # TODO(synk): dropout with p>0 would need pltpu.prng_* masking; not exercised here.
    logits = pallas_pool_fc(x.reshape(N, H * W, C), params["fc_wt"], params["fc_b"])
    return logits


if __name__ == "__main__":
    key = jax.random.PRNGKey(0)
    k_param, k_input = jax.random.split(key)

    params = make_params(k_param, IN_DIM, BASE, CLASS_NUM)
    x = jax.random.normal(k_input, (2, IN_DIM, 16, 16), jnp.float32)   # NCHW like PyTorch

    out = jax.jit(resnet_forward)(params, x)
    out = jax.block_until_ready(out)
    assert out.shape == (2, CLASS_NUM), out.shape
    assert bool(jnp.all(jnp.isfinite(out)))
    print("KERNEL_OK")
</pallas_src>

<mosaic_0001>
module attributes {stable_mosaic.version = 11 : i64} {
  func.func @_conv_bn_kernel(%arg0: i32, %arg1: memref<128x256xbf16, #tpu.memory_space<vmem>>, %arg2: memref<256x128xbf16, #tpu.memory_space<vmem>>, %arg3: memref<1x128xf32, #tpu.memory_space<vmem>>, %arg4: memref<1x128xf32, #tpu.memory_space<vmem>>, %arg5: memref<128x128xbf16, #tpu.memory_space<vmem>>) attributes {dimension_semantics = [#tpu.dimension_semantics<arbitrary>], iteration_bounds = array<i64: 1>, scalar_prefetch = 0 : i64, scratch_operands = 0 : i64, tpu.core_type = #tpu.core_type<tc>, window_params = [{pipeline_mode = #tpu.pipeline_mode<synchronous>, transform_indices = @transform_0, window_bounds = array<i64: 128, 256>}, {pipeline_mode = #tpu.pipeline_mode<synchronous>, transform_indices = @transform_1, window_bounds = array<i64: 256, 128>}, {pipeline_mode = #tpu.pipeline_mode<synchronous>, transform_indices = @transform_2, window_bounds = array<i64: 1, 128>}, {pipeline_mode = #tpu.pipeline_mode<synchronous>, transform_indices = @transform_3, window_bounds = array<i64: 1, 128>}, {pipeline_mode = #tpu.pipeline_mode<synchronous>, transform_indices = @transform_4, window_bounds = array<i64: 128, 128>}]} {
    %c0 = arith.constant 0 : index
    %c0_0 = arith.constant 0 : index
    %0 = vector.load %arg1[%c0, %c0_0] : memref<128x256xbf16, #tpu.memory_space<vmem>>, vector<128x256xbf16>
    %c0_1 = arith.constant 0 : index
    %c0_2 = arith.constant 0 : index
    %1 = vector.load %arg2[%c0_1, %c0_2] : memref<256x128xbf16, #tpu.memory_space<vmem>>, vector<256x128xbf16>
    %cst = arith.constant dense<0.000000e+00> : vector<128x128xf32>
    %2 = tpu.matmul %0, %1, %cst {dimension_numbers = #tpu.dot_dimension_numbers<[1], [0], [0], [1], [0, 0, 1, 1], [], []>} : vector<128x256xbf16>, vector<256x128xbf16>, vector<128x128xf32> -> vector<128x128xf32>
    %c0_3 = arith.constant 0 : index
    %c0_4 = arith.constant 0 : index
    %3 = vector.load %arg3[%c0_3, %c0_4] : memref<1x128xf32, #tpu.memory_space<vmem>>, vector<1x128xf32>
    %c0_5 = arith.constant 0 : index
    %c0_6 = arith.constant 0 : index
    %4 = vector.load %arg4[%c0_5, %c0_6] : memref<1x128xf32, #tpu.memory_space<vmem>>, vector<1x128xf32>
    %cst_7 = arith.constant dense<0.000000e+00> : vector<128xf32>
    %5 = vector.multi_reduction <add>, %2, %cst_7 [0] : vector<128x128xf32> to vector<128xf32>
    %6 = vector.shape_cast %5 : vector<128xf32> to vector<1x128xf32>
    %cst_8 = arith.constant 7.812500e-03 : f32
    %7 = vector.broadcast %cst_8 : f32 to vector<1x128xf32>
    %8 = arith.mulf %6, %7 : vector<1x128xf32>
    %9 = arith.mulf %2, %2 : vector<128x128xf32>
    %cst_9 = arith.constant dense<0.000000e+00> : vector<128xf32>
    %10 = vector.multi_reduction <add>, %9, %cst_9 [0] : vector<128x128xf32> to vector<128xf32>
    %11 = vector.shape_cast %10 : vector<128xf32> to vector<1x128xf32>
    %cst_10 = arith.constant 7.812500e-03 : f32
    %12 = vector.broadcast %cst_10 : f32 to vector<1x128xf32>
    %13 = arith.mulf %11, %12 : vector<1x128xf32>
    %14 = arith.mulf %8, %8 : vector<1x128xf32>
    %15 = arith.subf %13, %14 : vector<1x128xf32>
    %16 = vector.broadcast %8 : vector<1x128xf32> to vector<128x128xf32>
    %17 = arith.subf %2, %16 : vector<128x128xf32>
    %cst_11 = arith.constant 9.99999974E-6 : f32
    %18 = vector.broadcast %cst_11 : f32 to vector<1x128xf32>
    %19 = arith.addf %15, %18 : vector<1x128xf32>
    %20 = math.rsqrt %19 : vector<1x128xf32>
    %21 = vector.broadcast %20 : vector<1x128xf32> to vector<128x128xf32>
    %22 = arith.mulf %17, %21 : vector<128x128xf32>
    %23 = vector.broadcast %3 : vector<1x128xf32> to vector<128x128xf32>
    %24 = arith.mulf %22, %23 : vector<128x128xf32>
    %25 = vector.broadcast %4 : vector<1x128xf32> to vector<128x128xf32>
    %26 = arith.addf %24, %25 : vector<128x128xf32>
    %cst_12 = arith.constant 0.000000e+00 : f32
    %27 = vector.broadcast %cst_12 : f32 to vector<128x128xf32>
    %28 = arith.maximumf %26, %27 : vector<128x128xf32>
    %29 = arith.truncf %28 : vector<128x128xf32> to vector<128x128xbf16>
    %c0_13 = arith.constant 0 : index
    %c0_14 = arith.constant 0 : index
    %30 = vector.load %arg5[%c0_13, %c0_14] : memref<128x128xbf16, #tpu.memory_space<vmem>>, vector<128x128xbf16>
    tpu.vector_store %arg5[%c0_13, %c0_14], %29 {strides = array<i32>} : memref<128x128xbf16, #tpu.memory_space<vmem>>, vector<128x128xbf16>,
    return
  }
  func.func @transform_0(%arg0: i32) -> (i32, i32) {
    %c0_i32 = arith.constant 0 : i32
    %c0_i32_0 = arith.constant 0 : i32
    %c0_i32_1 = arith.constant 0 : i32
    return %c0_i32, %c0_i32_0 : i32, i32
  }
  func.func @transform_1(%arg0: i32) -> (i32, i32) {
    %c0_i32 = arith.constant 0 : i32
    %c0_i32_0 = arith.constant 0 : i32
    %c0_i32_1 = arith.constant 0 : i32
    return %c0_i32, %c0_i32_0 : i32, i32
  }
  func.func @transform_2(%arg0: i32) -> (i32, i32) {
    %c0_i32 = arith.constant 0 : i32
    %c0_i32_0 = arith.constant 0 : i32
    %c0_i32_1 = arith.constant 0 : i32
    return %c0_i32, %c0_i32_0 : i32, i32
  }
  func.func @transform_3(%arg0: i32) -> (i32, i32) {
    %c0_i32 = arith.constant 0 : i32
    %c0_i32_0 = arith.constant 0 : i32
    %c0_i32_1 = arith.constant 0 : i32
    return %c0_i32, %c0_i32_0 : i32, i32
  }
  func.func @transform_4(%arg0: i32) -> (i32, i32) {
    %c0_i32 = arith.constant 0 : i32
    %c0_i32_0 = arith.constant 0 : i32
    %c0_i32_1 = arith.constant 0 : i32
    return %c0_i32, %c0_i32_0 : i32, i32
  }
}

module attributes {stable_mosaic.version = 11 : i64} {
  func.func @_maxpool_kernel(%arg0: i32, %arg1: memref<32x9x128xbf16, #tpu.memory_space<vmem>>, %arg2: memref<32x128xbf16, #tpu.memory_space<vmem>>) attributes {dimension_semantics = [#tpu.dimension_semantics<arbitrary>], iteration_bounds = array<i64: 1>, scalar_prefetch = 0 : i64, scratch_operands = 0 : i64, tpu.core_type = #tpu.core_type<tc>, window_params = [{pipeline_mode = #tpu.pipeline_mode<synchronous>, transform_indices = @transform_0, window_bounds = array<i64: 32, 9, 128>}, {pipeline_mode = #tpu.pipeline_mode<synchronous>, transform_indices = @transform_1, window_bounds = array<i64: 32, 128>}]} {
    %c0 = arith.constant 0 : index
    %c0_0 = arith.constant 0 : index
    %c0_1 = arith.constant 0 : index
    %0 = vector.load %arg1[%c0, %c0_0, %c0_1] : memref<32x9x128xbf16, #tpu.memory_space<vmem>>, vector<32x9x128xbf16>
    %1 = arith.extf %0 : vector<32x9x128xbf16> to vector<32x9x128xf32>
    %cst = arith.constant dense<0xFF800000> : vector<32x128xf32>
    %2 = vector.multi_reduction <maximumf>, %1, %cst [1] : vector<32x9x128xf32> to vector<32x128xf32>
    %3 = arith.truncf %2 : vector<32x128xf32> to vector<32x128xbf16>
    %c0_2 = arith.constant 0 : index
    %c0_3 = arith.constant 0 : index
    %4 = vector.load %arg2[%c0_2, %c0_3] : memref<32x128xbf16, #tpu.memory_space<vmem>>, vector<32x128xbf16>
    tpu.vector_store %arg2[%c0_2, %c0_3], %3 {strides = array<i32>} : memref<32x128xbf16, #tpu.memory_space<vmem>>, vector<32x128xbf16>,
    return
  }
  func.func @transform_0(%arg0: i32) -> (i32, i32, i32) {
    %c0_i32 = arith.constant 0 : i32
    %c0_i32_0 = arith.constant 0 : i32
    %c0_i32_1 = arith.constant 0 : i32
    %c0_i32_2 = arith.constant 0 : i32
    return %c0_i32, %c0_i32_0, %c0_i32_1 : i32, i32, i32
  }
  func.func @transform_1(%arg0: i32) -> (i32, i32) {
    %c0_i32 = arith.constant 0 : i32
    %c0_i32_0 = arith.constant 0 : i32
    %c0_i32_1 = arith.constant 0 : i32
    return %c0_i32, %c0_i32_0 : i32, i32
  }
}

module attributes {stable_mosaic.version = 11 : i64} {
  func.func @_conv_bn_kernel(%arg0: i32, %arg1: memref<32x1152xbf16, #tpu.memory_space<vmem>>, %arg2: memref<1152x128xbf16, #tpu.memory_space<vmem>>, %arg3: memref<1x128xf32, #tpu.memory_space<vmem>>, %arg4: memref<1x128xf32, #tpu.memory_space<vmem>>, %arg5: memref<32x128xbf16, #tpu.memory_space<vmem>>) attributes {dimension_semantics = [#tpu.dimension_semantics<arbitrary>], iteration_bounds = array<i64: 1>, scalar_prefetch = 0 : i64, scratch_operands = 0 : i64, tpu.core_type = #tpu.core_type<tc>, window_params = [{pipeline_mode = #tpu.pipeline_mode<synchronous>, transform_indices = @transform_0, window_bounds = array<i64: 32, 1152>}, {pipeline_mode = #tpu.pipeline_mode<synchronous>, transform_indices = @transform_1, window_bounds = array<i64: 1152, 128>}, {pipeline_mode = #tpu.pipeline_mode<synchronous>, transform_indices = @transform_2, window_bounds = array<i64: 1, 128>}, {pipeline_mode = #tpu.pipeline_mode<synchronous>, transform_indices = @transform_3, window_bounds = array<i64: 1, 128>}, {pipeline_mode = #tpu.pipeline_mode<synchronous>, transform_indices = @transform_4, window_bounds = array<i64: 32, 128>}]} {
    %c0 = arith.constant 0 : index
    %c0_0 = arith.constant 0 : index
    %0 = vector.load %arg1[%c0, %c0_0] : memref<32x1152xbf16, #tpu.memory_space<vmem>>, vector<32x1152xbf16>
    %c0_1 = arith.constant 0 : index
    %c0_2 = arith.constant 0 : index
    %1 = vector.load %arg2[%c0_1, %c0_2] : memref<1152x128xbf16, #tpu.memory_space<vmem>>, vector<1152x128xbf16>
    %cst = arith.constant dense<0.000000e+00> : vector<32x128xf32>
    %2 = tpu.matmul %0, %1, %cst {dimension_numbers = #tpu.dot_dimension_numbers<[1], [0], [0], [1], [0, 0, 1, 1], [], []>} : vector<32x1152xbf16>, vector<1152x128xbf16>, vector<32x128xf32> -> vector<32x128xf32>
    %c0_3 = arith.constant 0 : index
    %c0_4 = arith.constant 0 : index
    %3 = vector.load %arg3[%c0_3, %c0_4] : memref<1x128xf32, #tpu.memory_space<vmem>>, vector<1x128xf32>
    %c0_5 = arith.constant 0 : index
    %c0_6 = arith.constant 0 : index
    %4 = vector.load %arg4[%c0_5, %c0_6] : memref<1x128xf32, #tpu.memory_space<vmem>>, vector<1x128xf32>
    %cst_7 = arith.constant dense<0.000000e+00> : vector<128xf32>
    %5 = vector.multi_reduction <add>, %2, %cst_7 [0] : vector<32x128xf32> to vector<128xf32>
    %6 = vector.shape_cast %5 : vector<128xf32> to vector<1x128xf32>
    %cst_8 = arith.constant 3.125000e-02 : f32
    %7 = vector.broadcast %cst_8 : f32 to vector<1x128xf32>
    %8 = arith.mulf %6, %7 : vector<1x128xf32>
    %9 = arith.mulf %2, %2 : vector<32x128xf32>
    %cst_9 = arith.constant dense<0.000000e+00> : vector<128xf32>
    %10 = vector.multi_reduction <add>, %9, %cst_9 [0] : vector<32x128xf32> to vector<128xf32>
    %11 = vector.shape_cast %10 : vector<128xf32> to vector<1x128xf32>
    %cst_10 = arith.constant 3.125000e-02 : f32
    %12 = vector.broadcast %cst_10 : f32 to vector<1x128xf32>
    %13 = arith.mulf %11, %12 : vector<1x128xf32>
    %14 = arith.mulf %8, %8 : vector<1x128xf32>
    %15 = arith.subf %13, %14 : vector<1x128xf32>
    %16 = vector.broadcast %8 : vector<1x128xf32> to vector<32x128xf32>
    %17 = arith.subf %2, %16 : vector<32x128xf32>
    %cst_11 = arith.constant 9.99999974E-6 : f32
    %18 = vector.broadcast %cst_11 : f32 to vector<1x128xf32>
    %19 = arith.addf %15, %18 : vector<1x128xf32>
    %20 = math.rsqrt %19 : vector<1x128xf32>
    %21 = vector.broadcast %20 : vector<1x128xf32> to vector<32x128xf32>
    %22 = arith.mulf %17, %21 : vector<32x128xf32>
    %23 = vector.broadcast %3 : vector<1x128xf32> to vector<32x128xf32>
    %24 = arith.mulf %22, %23 : vector<32x128xf32>
    %25 = vector.broadcast %4 : vector<1x128xf32> to vector<32x128xf32>
    %26 = arith.addf %24, %25 : vector<32x128xf32>
    %cst_12 = arith.constant 0.000000e+00 : f32
    %27 = vector.broadcast %cst_12 : f32 to vector<32x128xf32>
    %28 = arith.maximumf %26, %27 : vector<32x128xf32>
    %29 = arith.truncf %28 : vector<32x128xf32> to vector<32x128xbf16>
    %c0_13 = arith.constant 0 : index
    %c0_14 = arith.constant 0 : index
    %30 = vector.load %arg5[%c0_13, %c0_14] : memref<32x128xbf16, #tpu.memory_space<vmem>>, vector<32x128xbf16>
    tpu.vector_store %arg5[%c0_13, %c0_14], %29 {strides = array<i32>} : memref<32x128xbf16, #tpu.memory_space<vmem>>, vector<32x128xbf16>,
    return
  }
  func.func @transform_0(%arg0: i32) -> (i32, i32) {
    %c0_i32 = arith.constant 0 : i32
    %c0_i32_0 = arith.constant 0 : i32
    %c0_i32_1 = arith.constant 0 : i32
    return %c0_i32, %c0_i32_0 : i32, i32
  }
  func.func @transform_1(%arg0: i32) -> (i32, i32) {
    %c0_i32 = arith.constant 0 : i32
    %c0_i32_0 = arith.constant 0 : i32
    %c0_i32_1 = arith.constant 0 : i32
    return %c0_i32, %c0_i32_0 : i32, i32
  }
  func.func @transform_2(%arg0: i32) -> (i32, i32) {
    %c0_i32 = arith.constant 0 : i32
    %c0_i32_0 = arith.constant 0 : i32
    %c0_i32_1 = arith.constant 0 : i32
    return %c0_i32, %c0_i32_0 : i32, i32
  }
  func.func @transform_3(%arg0: i32) -> (i32, i32) {
    %c0_i32 = arith.constant 0 : i32
    %c0_i32_0 = arith.constant 0 : i32
    %c0_i32_1 = arith.constant 0 : i32
    return %c0_i32, %c0_i32_0 : i32, i32
  }
  func.func @transform_4(%arg0: i32) -> (i32, i32) {
    %c0_i32 = arith.constant 0 : i32
    %c0_i32_0 = arith.constant 0 : i32
    %c0_i32_1 = arith.constant 0 : i32
    return %c0_i32, %c0_i32_0 : i32, i32
  }
}

module attributes {stable_mosaic.version = 11 : i64} {
  func.func @_conv_bn_add_relu_kernel(%arg0: i32, %arg1: memref<32x1152xbf16, #tpu.memory_space<vmem>>, %arg2: memref<1152x128xbf16, #tpu.memory_space<vmem>>, %arg3: memref<1x128xf32, #tpu.memory_space<vmem>>, %arg4: memref<1x128xf32, #tpu.memory_space<vmem>>, %arg5: memref<32x128xbf16, #tpu.memory_space<vmem>>, %arg6: memref<32x128xbf16, #tpu.memory_space<vmem>>) attributes {dimension_semantics = [#tpu.dimension_semantics<arbitrary>], iteration_bounds = array<i64: 1>, scalar_prefetch = 0 : i64, scratch_operands = 0 : i64, tpu.core_type = #tpu.core_type<tc>, window_params = [{pipeline_mode = #tpu.pipeline_mode<synchronous>, transform_indices = @transform_0, window_bounds = array<i64: 32, 1152>}, {pipeline_mode = #tpu.pipeline_mode<synchronous>, transform_indices = @transform_1, window_bounds = array<i64: 1152, 128>}, {pipeline_mode = #tpu.pipeline_mode<synchronous>, transform_indices = @transform_2, window_bounds = array<i64: 1, 128>}, {pipeline_mode = #tpu.pipeline_mode<synchronous>, transform_indices = @transform_3, window_bounds = array<i64: 1, 128>}, {pipeline_mode = #tpu.pipeline_mode<synchronous>, transform_indices = @transform_4, window_bounds = array<i64: 32, 128>}, {pipeline_mode = #tpu.pipeline_mode<synchronous>, transform_indices = @transform_5, window_bounds = array<i64: 32, 128>}]} {
    %c0 = arith.constant 0 : index
    %c0_0 = arith.constant 0 : index
    %0 = vector.load %arg1[%c0, %c0_0] : memref<32x1152xbf16, #tpu.memory_space<vmem>>, vector<32x1152xbf16>
    %c0_1 = arith.constant 0 : index
    %c0_2 = arith.constant 0 : index
    %1 = vector.load %arg2[%c0_1, %c0_2] : memref<1152x128xbf16, #tpu.memory_space<vmem>>, vector<1152x128xbf16>
    %cst = arith.constant dense<0.000000e+00> : vector<32x128xf32>
    %2 = tpu.matmul %0, %1, %cst {dimension_numbers = #tpu.dot_dimension_numbers<[1], [0], [0], [1], [0, 0, 1, 1], [], []>} : vector<32x1152xbf16>, vector<1152x128xbf16>, vector<32x128xf32> -> vector<32x128xf32>
    %c0_3 = arith.constant 0 : index
    %c0_4 = arith.constant 0 : index
    %3 = vector.load %arg3[%c0_3, %c0_4] : memref<1x128xf32, #tpu.memory_space<vmem>>, vector<1x128xf32>
    %c0_5 = arith.constant 0 : index
    %c0_6 = arith.constant 0 : index
    %4 = vector.load %arg4[%c0_5, %c0_6] : memref<1x128xf32, #tpu.memory_space<vmem>>, vector<1x128xf32>
    %cst_7 = arith.constant dense<0.000000e+00> : vector<128xf32>
    %5 = vector.multi_reduction <add>, %2, %cst_7 [0] : vector<32x128xf32> to vector<128xf32>
    %6 = vector.shape_cast %5 : vector<128xf32> to vector<1x128xf32>
    %cst_8 = arith.constant 3.125000e-02 : f32
    %7 = vector.broadcast %cst_8 : f32 to vector<1x128xf32>
    %8 = arith.mulf %6, %7 : vector<1x128xf32>
    %9 = arith.mulf %2, %2 : vector<32x128xf32>
    %cst_9 = arith.constant dense<0.000000e+00> : vector<128xf32>
    %10 = vector.multi_reduction <add>, %9, %cst_9 [0] : vector<32x128xf32> to vector<128xf32>
    %11 = vector.shape_cast %10 : vector<128xf32> to vector<1x128xf32>
    %cst_10 = arith.constant 3.125000e-02 : f32
    %12 = vector.broadcast %cst_10 : f32 to vector<1x128xf32>
    %13 = arith.mulf %11, %12 : vector<1x128xf32>
    %14 = arith.mulf %8, %8 : vector<1x128xf32>
    %15 = arith.subf %13, %14 : vector<1x128xf32>
    %16 = vector.broadcast %8 : vector<1x128xf32> to vector<32x128xf32>
    %17 = arith.subf %2, %16 : vector<32x128xf32>
    %cst_11 = arith.constant 9.99999974E-6 : f32
    %18 = vector.broadcast %cst_11 : f32 to vector<1x128xf32>
    %19 = arith.addf %15, %18 : vector<1x128xf32>
    %20 = math.rsqrt %19 : vector<1x128xf32>
    %21 = vector.broadcast %20 : vector<1x128xf32> to vector<32x128xf32>
    %22 = arith.mulf %17, %21 : vector<32x128xf32>
    %23 = vector.broadcast %3 : vector<1x128xf32> to vector<32x128xf32>
    %24 = arith.mulf %22, %23 : vector<32x128xf32>
    %25 = vector.broadcast %4 : vector<1x128xf32> to vector<32x128xf32>
    %26 = arith.addf %24, %25 : vector<32x128xf32>
    %c0_12 = arith.constant 0 : index
    %c0_13 = arith.constant 0 : index
    %27 = vector.load %arg5[%c0_12, %c0_13] : memref<32x128xbf16, #tpu.memory_space<vmem>>, vector<32x128xbf16>
    %28 = arith.extf %27 : vector<32x128xbf16> to vector<32x128xf32>
    %29 = arith.addf %26, %28 : vector<32x128xf32>
    %cst_14 = arith.constant 0.000000e+00 : f32
    %30 = vector.broadcast %cst_14 : f32 to vector<32x128xf32>
    %31 = arith.maximumf %29, %30 : vector<32x128xf32>
    %32 = arith.truncf %31 : vector<32x128xf32> to vector<32x128xbf16>
    %c0_15 = arith.constant 0 : index
    %c0_16 = arith.constant 0 : index
    %33 = vector.load %arg6[%c0_15, %c0_16] : memref<32x128xbf16, #tpu.memory_space<vmem>>, vector<32x128xbf16>
    tpu.vector_store %arg6[%c0_15, %c0_16], %32 {strides = array<i32>} : memref<32x128xbf16, #tpu.memory_space<vmem>>, vector<32x128xbf16>,
    return
  }
  func.func @transform_0(%arg0: i32) -> (i32, i32) {
    %c0_i32 = arith.constant 0 : i32
    %c0_i32_0 = arith.constant 0 : i32
    %c0_i32_1 = arith.constant 0 : i32
    return %c0_i32, %c0_i32_0 : i32, i32
  }
  func.func @transform_1(%arg0: i32) -> (i32, i32) {
    %c0_i32 = arith.constant 0 : i32
    %c0_i32_0 = arith.constant 0 : i32
    %c0_i32_1 = arith.constant 0 : i32
    return %c0_i32, %c0_i32_0 : i32, i32
  }
  func.func @transform_2(%arg0: i32) -> (i32, i32) {
    %c0_i32 = arith.constant 0 : i32
    %c0_i32_0 = arith.constant 0 : i32
    %c0_i32_1 = arith.constant 0 : i32
    return %c0_i32, %c0_i32_0 : i32, i32
  }
  func.func @transform_3(%arg0: i32) -> (i32, i32) {
    %c0_i32 = arith.constant 0 : i32
    %c0_i32_0 = arith.constant 0 : i32
    %c0_i32_1 = arith.constant 0 : i32
    return %c0_i32, %c0_i32_0 : i32, i32
  }
  func.func @transform_4(%arg0: i32) -> (i32, i32) {
    %c0_i32 = arith.constant 0 : i32
    %c0_i32_0 = arith.constant 0 : i32
    %c0_i32_1 = arith.constant 0 : i32
    return %c0_i32, %c0_i32_0 : i32, i32
  }
  func.func @transform_5(%arg0: i32) -> (i32, i32) {
    %c0_i32 = arith.constant 0 : i32
    %c0_i32_0 = arith.constant 0 : i32
    %c0_i32_1 = arith.constant 0 : i32
    return %c0_i32, %c0_i32_0 : i32, i32
  }
}

module attributes {stable_mosaic.version = 11 : i64} {
  func.func @_conv_bn_kernel(%arg0: i32, %arg1: memref<8x1152xbf16, #tpu.memory_space<vmem>>, %arg2: memref<1152x128xbf16, #tpu.memory_space<vmem>>, %arg3: memref<1x128xf32, #tpu.memory_space<vmem>>, %arg4: memref<1x128xf32, #tpu.memory_space<vmem>>, %arg5: memref<8x128xbf16, #tpu.memory_space<vmem>>) attributes {dimension_semantics = [#tpu.dimension_semantics<arbitrary>], iteration_bounds = array<i64: 1>, scalar_prefetch = 0 : i64, scratch_operands = 0 : i64, tpu.core_type = #tpu.core_type<tc>, window_params = [{pipeline_mode = #tpu.pipeline_mode<synchronous>, transform_indices = @transform_0, window_bounds = array<i64: 8, 1152>}, {pipeline_mode = #tpu.pipeline_mode<synchronous>, transform_indices = @transform_1, window_bounds = array<i64: 1152, 128>}, {pipeline_mode = #tpu.pipeline_mode<synchronous>, transform_indices = @transform_2, window_bounds = array<i64: 1, 128>}, {pipeline_mode = #tpu.pipeline_mode<synchronous>, transform_indices = @transform_3, window_bounds = array<i64: 1, 128>}, {pipeline_mode = #tpu.pipeline_mode<synchronous>, transform_indices = @transform_4, window_bounds = array<i64: 8, 128>}]} {
    %c0 = arith.constant 0 : index
    %c0_0 = arith.constant 0 : index
    %0 = vector.load %arg1[%c0, %c0_0] : memref<8x1152xbf16, #tpu.memory_space<vmem>>, vector<8x1152xbf16>
    %c0_1 = arith.constant 0 : index
    %c0_2 = arith.constant 0 : index
    %1 = vector.load %arg2[%c0_1, %c0_2] : memref<1152x128xbf16, #tpu.memory_space<vmem>>, vector<1152x128xbf16>
    %cst = arith.constant dense<0.000000e+00> : vector<8x128xf32>
    %2 = tpu.matmul %0, %1, %cst {dimension_numbers = #tpu.dot_dimension_numbers<[1], [0], [0], [1], [0, 0, 1, 1], [], []>} : vector<8x1152xbf16>, vector<1152x128xbf16>, vector<8x128xf32> -> vector<8x128xf32>
    %c0_3 = arith.constant 0 : index
    %c0_4 = arith.constant 0 : index
    %3 = vector.load %arg3[%c0_3, %c0_4] : memref<1x128xf32, #tpu.memory_space<vmem>>, vector<1x128xf32>
    %c0_5 = arith.constant 0 : index
    %c0_6 = arith.constant 0 : index
    %4 = vector.load %arg4[%c0_5, %c0_6] : memref<1x128xf32, #tpu.memory_space<vmem>>, vector<1x128xf32>
    %cst_7 = arith.constant dense<0.000000e+00> : vector<128xf32>
    %5 = vector.multi_reduction <add>, %2, %cst_7 [0] : vector<8x128xf32> to vector<128xf32>
    %6 = vector.shape_cast %5 : vector<128xf32> to vector<1x128xf32>
    %cst_8 = arith.constant 1.250000e-01 : f32
    %7 = vector.broadcast %cst_8 : f32 to vector<1x128xf32>
    %8 = arith.mulf %6, %7 : vector<1x128xf32>
    %9 = arith.mulf %2, %2 : vector<8x128xf32>
    %cst_9 = arith.constant dense<0.000000e+00> : vector<128xf32>
    %10 = vector.multi_reduction <add>, %9, %cst_9 [0] : vector<8x128xf32> to vector<128xf32>
    %11 = vector.shape_cast %10 : vector<128xf32> to vector<1x128xf32>
    %cst_10 = arith.constant 1.250000e-01 : f32
    %12 = vector.broadcast %cst_10 : f32 to vector<1x128xf32>
    %13 = arith.mulf %11, %12 : vector<1x128xf32>
    %14 = arith.mulf %8, %8 : vector<1x128xf32>
    %15 = arith.subf %13, %14 : vector<1x128xf32>
    %16 = vector.broadcast %8 : vector<1x128xf32> to vector<8x128xf32>
    %17 = arith.subf %2, %16 : vector<8x128xf32>
    %cst_11 = arith.constant 9.99999974E-6 : f32
    %18 = vector.broadcast %cst_11 : f32 to vector<1x128xf32>
    %19 = arith.addf %15, %18 : vector<1x128xf32>
    %20 = math.rsqrt %19 : vector<1x128xf32>
    %21 = vector.broadcast %20 : vector<1x128xf32> to vector<8x128xf32>
    %22 = arith.mulf %17, %21 : vector<8x128xf32>
    %23 = vector.broadcast %3 : vector<1x128xf32> to vector<8x128xf32>
    %24 = arith.mulf %22, %23 : vector<8x128xf32>
    %25 = vector.broadcast %4 : vector<1x128xf32> to vector<8x128xf32>
    %26 = arith.addf %24, %25 : vector<8x128xf32>
    %cst_12 = arith.constant 0.000000e+00 : f32
    %27 = vector.broadcast %cst_12 : f32 to vector<8x128xf32>
    %28 = arith.maximumf %26, %27 : vector<8x128xf32>
    %29 = arith.truncf %28 : vector<8x128xf32> to vector<8x128xbf16>
    %c0_13 = arith.constant 0 : index
    %c0_14 = arith.constant 0 : index
    %30 = vector.load %arg5[%c0_13, %c0_14] : memref<8x128xbf16, #tpu.memory_space<vmem>>, vector<8x128xbf16>
    tpu.vector_store %arg5[%c0_13, %c0_14], %29 {strides = array<i32>} : memref<8x128xbf16, #tpu.memory_space<vmem>>, vector<8x128xbf16>,
    return
  }
  func.func @transform_0(%arg0: i32) -> (i32, i32) {
    %c0_i32 = arith.constant 0 : i32
    %c0_i32_0 = arith.constant 0 : i32
    %c0_i32_1 = arith.constant 0 : i32
    return %c0_i32, %c0_i32_0 : i32, i32
  }
  func.func @transform_1(%arg0: i32) -> (i32, i32) {
    %c0_i32 = arith.constant 0 : i32
    %c0_i32_0 = arith.constant 0 : i32
    %c0_i32_1 = arith.constant 0 : i32
    return %c0_i32, %c0_i32_0 : i32, i32
  }
  func.func @transform_2(%arg0: i32) -> (i32, i32) {
    %c0_i32 = arith.constant 0 : i32
    %c0_i32_0 = arith.constant 0 : i32
    %c0_i32_1 = arith.constant 0 : i32
    return %c0_i32, %c0_i32_0 : i32, i32
  }
  func.func @transform_3(%arg0: i32) -> (i32, i32) {
    %c0_i32 = arith.constant 0 : i32
    %c0_i32_0 = arith.constant 0 : i32
    %c0_i32_1 = arith.constant 0 : i32
    return %c0_i32, %c0_i32_0 : i32, i32
  }
  func.func @transform_4(%arg0: i32) -> (i32, i32) {
    %c0_i32 = arith.constant 0 : i32
    %c0_i32_0 = arith.constant 0 : i32
    %c0_i32_1 = arith.constant 0 : i32
    return %c0_i32, %c0_i32_0 : i32, i32
  }
}

module attributes {stable_mosaic.version = 11 : i64} {
  func.func @_conv_bn_dual_add_relu_kernel(%arg0: i32, %arg1: memref<8x1152xbf16, #tpu.memory_space<vmem>>, %arg2: memref<1152x128xbf16, #tpu.memory_space<vmem>>, %arg3: memref<1x128xf32, #tpu.memory_space<vmem>>, %arg4: memref<1x128xf32, #tpu.memory_space<vmem>>, %arg5: memref<8x128xbf16, #tpu.memory_space<vmem>>, %arg6: memref<128x128xbf16, #tpu.memory_space<vmem>>, %arg7: memref<1x128xf32, #tpu.memory_space<vmem>>, %arg8: memref<1x128xf32, #tpu.memory_space<vmem>>, %arg9: memref<8x128xbf16, #tpu.memory_space<vmem>>) attributes {dimension_semantics = [#tpu.dimension_semantics<arbitrary>], iteration_bounds = array<i64: 1>, scalar_prefetch = 0 : i64, scratch_operands = 0 : i64, tpu.core_type = #tpu.core_type<tc>, window_params = [{pipeline_mode = #tpu.pipeline_mode<synchronous>, transform_indices = @transform_0, window_bounds = array<i64: 8, 1152>}, {pipeline_mode = #tpu.pipeline_mode<synchronous>, transform_indices = @transform_1, window_bounds = array<i64: 1152, 128>}, {pipeline_mode = #tpu.pipeline_mode<synchronous>, transform_indices = @transform_2, window_bounds = array<i64: 1, 128>}, {pipeline_mode = #tpu.pipeline_mode<synchronous>, transform_indices = @transform_3, window_bounds = array<i64: 1, 128>}, {pipeline_mode = #tpu.pipeline_mode<synchronous>, transform_indices = @transform_4, window_bounds = array<i64: 8, 128>}, {pipeline_mode = #tpu.pipeline_mode<synchronous>, transform_indices = @transform_5, window_bounds = array<i64: 128, 128>}, {pipeline_mode = #tpu.pipeline_mode<synchronous>, transform_indices = @transform_6, window_bounds = array<i64: 1, 128>}, {pipeline_mode = #tpu.pipeline_mode<synchronous>, transform_indices = @transform_7, window_bounds = array<i64: 1, 128>}, {pipeline_mode = #tpu.pipeline_mode<synchronous>, transform_indices = @transform_8, window_bounds = array<i64: 8, 128>}]} {
    %c0 = arith.constant 0 : index
    %c0_0 = arith.constant 0 : index
    %0 = vector.load %arg1[%c0, %c0_0] : memref<8x1152xbf16, #tpu.memory_space<vmem>>, vector<8x1152xbf16>
    %c0_1 = arith.constant 0 : index
    %c0_2 = arith.constant 0 : index
    %1 = vector.load %arg2[%c0_1, %c0_2] : memref<1152x128xbf16, #tpu.memory_space<vmem>>, vector<1152x128xbf16>
    %cst = arith.constant dense<0.000000e+00> : vector<8x128xf32>
    %2 = tpu.matmul %0, %1, %cst {dimension_numbers = #tpu.dot_dimension_numbers<[1], [0], [0], [1], [0, 0, 1, 1], [], []>} : vector<8x1152xbf16>, vector<1152x128xbf16>, vector<8x128xf32> -> vector<8x128xf32>
    %c0_3 = arith.constant 0 : index
    %c0_4 = arith.constant 0 : index
    %3 = vector.load %arg5[%c0_3, %c0_4] : memref<8x128xbf16, #tpu.memory_space<vmem>>, vector<8x128xbf16>
    %c0_5 = arith.constant 0 : index
    %c0_6 = arith.constant 0 : index
    %4 = vector.load %arg6[%c0_5, %c0_6] : memref<128x128xbf16, #tpu.memory_space<vmem>>, vector<128x128xbf16>
    %cst_7 = arith.constant dense<0.000000e+00> : vector<8x128xf32>
    %5 = tpu.matmul %3, %4, %cst_7 {dimension_numbers = #tpu.dot_dimension_numbers<[1], [0], [0], [1], [0, 0, 1, 1], [], []>} : vector<8x128xbf16>, vector<128x128xbf16>, vector<8x128xf32> -> vector<8x128xf32>
    %c0_8 = arith.constant 0 : index
    %c0_9 = arith.constant 0 : index
    %6 = vector.load %arg3[%c0_8, %c0_9] : memref<1x128xf32, #tpu.memory_space<vmem>>, vector<1x128xf32>
    %c0_10 = arith.constant 0 : index
    %c0_11 = arith.constant 0 : index
    %7 = vector.load %arg4[%c0_10, %c0_11] : memref<1x128xf32, #tpu.memory_space<vmem>>, vector<1x128xf32>
    %cst_12 = arith.constant dense<0.000000e+00> : vector<128xf32>
    %8 = vector.multi_reduction <add>, %2, %cst_12 [0] : vector<8x128xf32> to vector<128xf32>
    %9 = vector.shape_cast %8 : vector<128xf32> to vector<1x128xf32>
    %cst_13 = arith.constant 1.250000e-01 : f32
    %10 = vector.broadcast %cst_13 : f32 to vector<1x128xf32>
    %11 = arith.mulf %9, %10 : vector<1x128xf32>
    %12 = arith.mulf %2, %2 : vector<8x128xf32>
    %cst_14 = arith.constant dense<0.000000e+00> : vector<128xf32>
    %13 = vector.multi_reduction <add>, %12, %cst_14 [0] : vector<8x128xf32> to vector<128xf32>
    %14 = vector.shape_cast %13 : vector<128xf32> to vector<1x128xf32>
    %cst_15 = arith.constant 1.250000e-01 : f32
    %15 = vector.broadcast %cst_15 : f32 to vector<1x128xf32>
    %16 = arith.mulf %14, %15 : vector<1x128xf32>
    %17 = arith.mulf %11, %11 : vector<1x128xf32>
    %18 = arith.subf %16, %17 : vector<1x128xf32>
    %19 = vector.broadcast %11 : vector<1x128xf32> to vector<8x128xf32>
    %20 = arith.subf %2, %19 : vector<8x128xf32>
    %cst_16 = arith.constant 9.99999974E-6 : f32
    %21 = vector.broadcast %cst_16 : f32 to vector<1x128xf32>
    %22 = arith.addf %18, %21 : vector<1x128xf32>
    %23 = math.rsqrt %22 : vector<1x128xf32>
    %24 = vector.broadcast %23 : vector<1x128xf32> to vector<8x128xf32>
    %25 = arith.mulf %20, %24 : vector<8x128xf32>
    %26 = vector.broadcast %6 : vector<1x128xf32> to vector<8x128xf32>
    %27 = arith.mulf %25, %26 : vector<8x128xf32>
    %28 = vector.broadcast %7 : vector<1x128xf32> to vector<8x128xf32>
    %29 = arith.addf %27, %28 : vector<8x128xf32>
    %c0_17 = arith.constant 0 : index
    %c0_18 = arith.constant 0 : index
    %30 = vector.load %arg7[%c0_17, %c0_18] : memref<1x128xf32, #tpu.memory_space<vmem>>, vector<1x128xf32>
    %c0_19 = arith.constant 0 : index
    %c0_20 = arith.constant 0 : index
    %31 = vector.load %arg8[%c0_19, %c0_20] : memref<1x128xf32, #tpu.memory_space<vmem>>, vector<1x128xf32>
    %cst_21 = arith.constant dense<0.000000e+00> : vector<128xf32>
    %32 = vector.multi_reduction <add>, %5, %cst_21 [0] : vector<8x128xf32> to vector<128xf32>
    %33 = vector.shape_cast %32 : vector<128xf32> to vector<1x128xf32>
    %cst_22 = arith.constant 1.250000e-01 : f32
    %34 = vector.broadcast %cst_22 : f32 to vector<1x128xf32>
    %35 = arith.mulf %33, %34 : vector<1x128xf32>
    %36 = arith.mulf %5, %5 : vector<8x128xf32>
    %cst_23 = arith.constant dense<0.000000e+00> : vector<128xf32>
    %37 = vector.multi_reduction <add>, %36, %cst_23 [0] : vector<8x128xf32> to vector<128xf32>
    %38 = vector.shape_cast %37 : vector<128xf32> to vector<1x128xf32>
    %cst_24 = arith.constant 1.250000e-01 : f32
    %39 = vector.broadcast %cst_24 : f32 to vector<1x128xf32>
    %40 = arith.mulf %38, %39 : vector<1x128xf32>
    %41 = arith.mulf %35, %35 : vector<1x128xf32>
    %42 = arith.subf %40, %41 : vector<1x128xf32>
    %43 = vector.broadcast %35 : vector<1x128xf32> to vector<8x128xf32>
    %44 = arith.subf %5, %43 : vector<8x128xf32>
    %cst_25 = arith.constant 9.99999974E-6 : f32
    %45 = vector.broadcast %cst_25 : f32 to vector<1x128xf32>
    %46 = arith.addf %42, %45 : vector<1x128xf32>
    %47 = math.rsqrt %46 : vector<1x128xf32>
    %48 = vector.broadcast %47 : vector<1x128xf32> to vector<8x128xf32>
    %49 = arith.mulf %44, %48 : vector<8x128xf32>
    %50 = vector.broadcast %30 : vector<1x128xf32> to vector<8x128xf32>
    %51 = arith.mulf %49, %50 : vector<8x128xf32>
    %52 = vector.broadcast %31 : vector<1x128xf32> to vector<8x128xf32>
    %53 = arith.addf %51, %52 : vector<8x128xf32>
    %54 = arith.addf %29, %53 : vector<8x128xf32>
    %cst_26 = arith.constant 0.000000e+00 : f32
    %55 = vector.broadcast %cst_26 : f32 to vector<8x128xf32>
    %56 = arith.maximumf %54, %55 : vector<8x128xf32>
    %57 = arith.truncf %56 : vector<8x128xf32> to vector<8x128xbf16>
    %c0_27 = arith.constant 0 : index
    %c0_28 = arith.constant 0 : index
    %58 = vector.load %arg9[%c0_27, %c0_28] : memref<8x128xbf16, #tpu.memory_space<vmem>>, vector<8x128xbf16>
    tpu.vector_store %arg9[%c0_27, %c0_28], %57 {strides = array<i32>} : memref<8x128xbf16, #tpu.memory_space<vmem>>, vector<8x128xbf16>,
    return
  }
  func.func @transform_0(%arg0: i32) -> (i32, i32) {
    %c0_i32 = arith.constant 0 : i32
    %c0_i32_0 = arith.constant 0 : i32
    %c0_i32_1 = arith.constant 0 : i32
    return %c0_i32, %c0_i32_0 : i32, i32
  }
  func.func @transform_1(%arg0: i32) -> (i32, i32) {
    %c0_i32 = arith.constant 0 : i32
    %c0_i32_0 = arith.constant 0 : i32
    %c0_i32_1 = arith.constant 0 : i32
    return %c0_i32, %c0_i32_0 : i32, i32
  }
  func.func @transform_2(%arg0: i32) -> (i32, i32) {
    %c0_i32 = arith.constant 0 : i32
    %c0_i32_0 = arith.constant 0 : i32
    %c0_i32_1 = arith.constant 0 : i32
    return %c0_i32, %c0_i32_0 : i32, i32
  }
  func.func @transform_3(%arg0: i32) -> (i32, i32) {
    %c0_i32 = arith.constant 0 : i32
    %c0_i32_0 = arith.constant 0 : i32
    %c0_i32_1 = arith.constant 0 : i32
    return %c0_i32, %c0_i32_0 : i32, i32
  }
  func.func @transform_4(%arg0: i32) -> (i32, i32) {
    %c0_i32 = arith.constant 0 : i32
    %c0_i32_0 = arith.constant 0 : i32
    %c0_i32_1 = arith.constant 0 : i32
    return %c0_i32, %c0_i32_0 : i32, i32
  }
  func.func @transform_5(%arg0: i32) -> (i32, i32) {
    %c0_i32 = arith.constant 0 : i32
    %c0_i32_0 = arith.constant 0 : i32
    %c0_i32_1 = arith.constant 0 : i32
    return %c0_i32, %c0_i32_0 : i32, i32
  }
  func.func @transform_6(%arg0: i32) -> (i32, i32) {
    %c0_i32 = arith.constant 0 : i32
    %c0_i32_0 = arith.constant 0 : i32
    %c0_i32_1 = arith.constant 0 : i32
    return %c0_i32, %c0_i32_0 : i32, i32
  }
  func.func @transform_7(%arg0: i32) -> (i32, i32) {
    %c0_i32 = arith.constant 0 : i32
    %c0_i32_0 = arith.constant 0 : i32
    %c0_i32_1 = arith.constant 0 : i32
    return %c0_i32, %c0_i32_0 : i32, i32
  }
  func.func @transform_8(%arg0: i32) -> (i32, i32) {
    %c0_i32 = arith.constant 0 : i32
    %c0_i32_0 = arith.constant 0 : i32
    %c0_i32_1 = arith.constant 0 : i32
    return %c0_i32, %c0_i32_0 : i32, i32
  }
}

module attributes {stable_mosaic.version = 11 : i64} {
  func.func @_conv_bn_kernel(%arg0: i32, %arg1: memref<2x1152xbf16, #tpu.memory_space<vmem>>, %arg2: memref<1152x128xbf16, #tpu.memory_space<vmem>>, %arg3: memref<1x128xf32, #tpu.memory_space<vmem>>, %arg4: memref<1x128xf32, #tpu.memory_space<vmem>>, %arg5: memref<2x128xbf16, #tpu.memory_space<vmem>>) attributes {dimension_semantics = [#tpu.dimension_semantics<arbitrary>], iteration_bounds = array<i64: 1>, scalar_prefetch = 0 : i64, scratch_operands = 0 : i64, tpu.core_type = #tpu.core_type<tc>, window_params = [{pipeline_mode = #tpu.pipeline_mode<synchronous>, transform_indices = @transform_0, window_bounds = array<i64: 2, 1152>}, {pipeline_mode = #tpu.pipeline_mode<synchronous>, transform_indices = @transform_1, window_bounds = array<i64: 1152, 128>}, {pipeline_mode = #tpu.pipeline_mode<synchronous>, transform_indices = @transform_2, window_bounds = array<i64: 1, 128>}, {pipeline_mode = #tpu.pipeline_mode<synchronous>, transform_indices = @transform_3, window_bounds = array<i64: 1, 128>}, {pipeline_mode = #tpu.pipeline_mode<synchronous>, transform_indices = @transform_4, window_bounds = array<i64: 2, 128>}]} {
    %c0 = arith.constant 0 : index
    %c0_0 = arith.constant 0 : index
    %0 = vector.load %arg1[%c0, %c0_0] : memref<2x1152xbf16, #tpu.memory_space<vmem>>, vector<2x1152xbf16>
    %c0_1 = arith.constant 0 : index
    %c0_2 = arith.constant 0 : index
    %1 = vector.load %arg2[%c0_1, %c0_2] : memref<1152x128xbf16, #tpu.memory_space<vmem>>, vector<1152x128xbf16>
    %cst = arith.constant dense<0.000000e+00> : vector<2x128xf32>
    %2 = tpu.matmul %0, %1, %cst {dimension_numbers = #tpu.dot_dimension_numbers<[1], [0], [0], [1], [0, 0, 1, 1], [], []>} : vector<2x1152xbf16>, vector<1152x128xbf16>, vector<2x128xf32> -> vector<2x128xf32>
    %c0_3 = arith.constant 0 : index
    %c0_4 = arith.constant 0 : index
    %3 = vector.load %arg3[%c0_3, %c0_4] : memref<1x128xf32, #tpu.memory_space<vmem>>, vector<1x128xf32>
    %c0_5 = arith.constant 0 : index
    %c0_6 = arith.constant 0 : index
    %4 = vector.load %arg4[%c0_5, %c0_6] : memref<1x128xf32, #tpu.memory_space<vmem>>, vector<1x128xf32>
    %cst_7 = arith.constant dense<0.000000e+00> : vector<128xf32>
    %5 = vector.multi_reduction <add>, %2, %cst_7 [0] : vector<2x128xf32> to vector<128xf32>
    %6 = vector.shape_cast %5 : vector<128xf32> to vector<1x128xf32>
    %cst_8 = arith.constant 5.000000e-01 : f32
    %7 = vector.broadcast %cst_8 : f32 to vector<1x128xf32>
    %8 = arith.mulf %6, %7 : vector<1x128xf32>
    %9 = arith.mulf %2, %2 : vector<2x128xf32>
    %cst_9 = arith.constant dense<0.000000e+00> : vector<128xf32>
    %10 = vector.multi_reduction <add>, %9, %cst_9 [0] : vector<2x128xf32> to vector<128xf32>
    %11 = vector.shape_cast %10 : vector<128xf32> to vector<1x128xf32>
    %cst_10 = arith.constant 5.000000e-01 : f32
    %12 = vector.broadcast %cst_10 : f32 to vector<1x128xf32>
    %13 = arith.mulf %11, %12 : vector<1x128xf32>
    %14 = arith.mulf %8, %8 : vector<1x128xf32>
    %15 = arith.subf %13, %14 : vector<1x128xf32>
    %16 = vector.broadcast %8 : vector<1x128xf32> to vector<2x128xf32>
    %17 = arith.subf %2, %16 : vector<2x128xf32>
    %cst_11 = arith.constant 9.99999974E-6 : f32
    %18 = vector.broadcast %cst_11 : f32 to vector<1x128xf32>
    %19 = arith.addf %15, %18 : vector<1x128xf32>
    %20 = math.rsqrt %19 : vector<1x128xf32>
    %21 = vector.broadcast %20 : vector<1x128xf32> to vector<2x128xf32>
    %22 = arith.mulf %17, %21 : vector<2x128xf32>
    %23 = vector.broadcast %3 : vector<1x128xf32> to vector<2x128xf32>
    %24 = arith.mulf %22, %23 : vector<2x128xf32>
    %25 = vector.broadcast %4 : vector<1x128xf32> to vector<2x128xf32>
    %26 = arith.addf %24, %25 : vector<2x128xf32>
    %cst_12 = arith.constant 0.000000e+00 : f32
    %27 = vector.broadcast %cst_12 : f32 to vector<2x128xf32>
    %28 = arith.maximumf %26, %27 : vector<2x128xf32>
    %29 = arith.truncf %28 : vector<2x128xf32> to vector<2x128xbf16>
    %c0_13 = arith.constant 0 : index
    %c0_14 = arith.constant 0 : index
    %30 = vector.load %arg5[%c0_13, %c0_14] : memref<2x128xbf16, #tpu.memory_space<vmem>>, vector<2x128xbf16>
    tpu.vector_store %arg5[%c0_13, %c0_14], %29 {strides = array<i32>} : memref<2x128xbf16, #tpu.memory_space<vmem>>, vector<2x128xbf16>,
    return
  }
  func.func @transform_0(%arg0: i32) -> (i32, i32) {
    %c0_i32 = arith.constant 0 : i32
    %c0_i32_0 = arith.constant 0 : i32
    %c0_i32_1 = arith.constant 0 : i32
    return %c0_i32, %c0_i32_0 : i32, i32
  }
  func.func @transform_1(%arg0: i32) -> (i32, i32) {
    %c0_i32 = arith.constant 0 : i32
    %c0_i32_0 = arith.constant 0 : i32
    %c0_i32_1 = arith.constant 0 : i32
    return %c0_i32, %c0_i32_0 : i32, i32
  }
  func.func @transform_2(%arg0: i32) -> (i32, i32) {
    %c0_i32 = arith.constant 0 : i32
    %c0_i32_0 = arith.constant 0 : i32
    %c0_i32_1 = arith.constant 0 : i32
    return %c0_i32, %c0_i32_0 : i32, i32
  }
  func.func @transform_3(%arg0: i32) -> (i32, i32) {
    %c0_i32 = arith.constant 0 : i32
    %c0_i32_0 = arith.constant 0 : i32
    %c0_i32_1 = arith.constant 0 : i32
    return %c0_i32, %c0_i32_0 : i32, i32
  }
  func.func @transform_4(%arg0: i32) -> (i32, i32) {
    %c0_i32 = arith.constant 0 : i32
    %c0_i32_0 = arith.constant 0 : i32
    %c0_i32_1 = arith.constant 0 : i32
    return %c0_i32, %c0_i32_0 : i32, i32
  }
}

module attributes {stable_mosaic.version = 11 : i64} {
  func.func @_conv_bn_dual_add_relu_kernel(%arg0: i32, %arg1: memref<2x1152xbf16, #tpu.memory_space<vmem>>, %arg2: memref<1152x128xbf16, #tpu.memory_space<vmem>>, %arg3: memref<1x128xf32, #tpu.memory_space<vmem>>, %arg4: memref<1x128xf32, #tpu.memory_space<vmem>>, %arg5: memref<2x128xbf16, #tpu.memory_space<vmem>>, %arg6: memref<128x128xbf16, #tpu.memory_space<vmem>>, %arg7: memref<1x128xf32, #tpu.memory_space<vmem>>, %arg8: memref<1x128xf32, #tpu.memory_space<vmem>>, %arg9: memref<2x128xbf16, #tpu.memory_space<vmem>>) attributes {dimension_semantics = [#tpu.dimension_semantics<arbitrary>], iteration_bounds = array<i64: 1>, scalar_prefetch = 0 : i64, scratch_operands = 0 : i64, tpu.core_type = #tpu.core_type<tc>, window_params = [{pipeline_mode = #tpu.pipeline_mode<synchronous>, transform_indices = @transform_0, window_bounds = array<i64: 2, 1152>}, {pipeline_mode = #tpu.pipeline_mode<synchronous>, transform_indices = @transform_1, window_bounds = array<i64: 1152, 128>}, {pipeline_mode = #tpu.pipeline_mode<synchronous>, transform_indices = @transform_2, window_bounds = array<i64: 1, 128>}, {pipeline_mode = #tpu.pipeline_mode<synchronous>, transform_indices = @transform_3, window_bounds = array<i64: 1, 128>}, {pipeline_mode = #tpu.pipeline_mode<synchronous>, transform_indices = @transform_4, window_bounds = array<i64: 2, 128>}, {pipeline_mode = #tpu.pipeline_mode<synchronous>, transform_indices = @transform_5, window_bounds = array<i64: 128, 128>}, {pipeline_mode = #tpu.pipeline_mode<synchronous>, transform_indices = @transform_6, window_bounds = array<i64: 1, 128>}, {pipeline_mode = #tpu.pipeline_mode<synchronous>, transform_indices = @transform_7, window_bounds = array<i64: 1, 128>}, {pipeline_mode = #tpu.pipeline_mode<synchronous>, transform_indices = @transform_8, window_bounds = array<i64: 2, 128>}]} {
    %c0 = arith.constant 0 : index
    %c0_0 = arith.constant 0 : index
    %0 = vector.load %arg1[%c0, %c0_0] : memref<2x1152xbf16, #tpu.memory_space<vmem>>, vector<2x1152xbf16>
    %c0_1 = arith.constant 0 : index
    %c0_2 = arith.constant 0 : index
    %1 = vector.load %arg2[%c0_1, %c0_2] : memref<1152x128xbf16, #tpu.memory_space<vmem>>, vector<1152x128xbf16>
    %cst = arith.constant dense<0.000000e+00> : vector<2x128xf32>
    %2 = tpu.matmul %0, %1, %cst {dimension_numbers = #tpu.dot_dimension_numbers<[1], [0], [0], [1], [0, 0, 1, 1], [], []>} : vector<2x1152xbf16>, vector<1152x128xbf16>, vector<2x128xf32> -> vector<2x128xf32>
    %c0_3 = arith.constant 0 : index
    %c0_4 = arith.constant 0 : index
    %3 = vector.load %arg5[%c0_3, %c0_4] : memref<2x128xbf16, #tpu.memory_space<vmem>>, vector<2x128xbf16>
    %c0_5 = arith.constant 0 : index
    %c0_6 = arith.constant 0 : index
    %4 = vector.load %arg6[%c0_5, %c0_6] : memref<128x128xbf16, #tpu.memory_space<vmem>>, vector<128x128xbf16>
    %cst_7 = arith.constant dense<0.000000e+00> : vector<2x128xf32>
    %5 = tpu.matmul %3, %4, %cst_7 {dimension_numbers = #tpu.dot_dimension_numbers<[1], [0], [0], [1], [0, 0, 1, 1], [], []>} : vector<2x128xbf16>, vector<128x128xbf16>, vector<2x128xf32> -> vector<2x128xf32>
    %c0_8 = arith.constant 0 : index
    %c0_9 = arith.constant 0 : index
    %6 = vector.load %arg3[%c0_8, %c0_9] : memref<1x128xf32, #tpu.memory_space<vmem>>, vector<1x128xf32>
    %c0_10 = arith.constant 0 : index
    %c0_11 = arith.constant 0 : index
    %7 = vector.load %arg4[%c0_10, %c0_11] : memref<1x128xf32, #tpu.memory_space<vmem>>, vector<1x128xf32>
    %cst_12 = arith.constant dense<0.000000e+00> : vector<128xf32>
    %8 = vector.multi_reduction <add>, %2, %cst_12 [0] : vector<2x128xf32> to vector<128xf32>
    %9 = vector.shape_cast %8 : vector<128xf32> to vector<1x128xf32>
    %cst_13 = arith.constant 5.000000e-01 : f32
    %10 = vector.broadcast %cst_13 : f32 to vector<1x128xf32>
    %11 = arith.mulf %9, %10 : vector<1x128xf32>
    %12 = arith.mulf %2, %2 : vector<2x128xf32>
    %cst_14 = arith.constant dense<0.000000e+00> : vector<128xf32>
    %13 = vector.multi_reduction <add>, %12, %cst_14 [0] : vector<2x128xf32> to vector<128xf32>
    %14 = vector.shape_cast %13 : vector<128xf32> to vector<1x128xf32>
    %cst_15 = arith.constant 5.000000e-01 : f32
    %15 = vector.broadcast %cst_15 : f32 to vector<1x128xf32>
    %16 = arith.mulf %14, %15 : vector<1x128xf32>
    %17 = arith.mulf %11, %11 : vector<1x128xf32>
    %18 = arith.subf %16, %17 : vector<1x128xf32>
    %19 = vector.broadcast %11 : vector<1x128xf32> to vector<2x128xf32>
    %20 = arith.subf %2, %19 : vector<2x128xf32>
    %cst_16 = arith.constant 9.99999974E-6 : f32
    %21 = vector.broadcast %cst_16 : f32 to vector<1x128xf32>
    %22 = arith.addf %18, %21 : vector<1x128xf32>
    %23 = math.rsqrt %22 : vector<1x128xf32>
    %24 = vector.broadcast %23 : vector<1x128xf32> to vector<2x128xf32>
    %25 = arith.mulf %20, %24 : vector<2x128xf32>
    %26 = vector.broadcast %6 : vector<1x128xf32> to vector<2x128xf32>
    %27 = arith.mulf %25, %26 : vector<2x128xf32>
    %28 = vector.broadcast %7 : vector<1x128xf32> to vector<2x128xf32>
    %29 = arith.addf %27, %28 : vector<2x128xf32>
    %c0_17 = arith.constant 0 : index
    %c0_18 = arith.constant 0 : index
    %30 = vector.load %arg7[%c0_17, %c0_18] : memref<1x128xf32, #tpu.memory_space<vmem>>, vector<1x128xf32>
    %c0_19 = arith.constant 0 : index
    %c0_20 = arith.constant 0 : index
    %31 = vector.load %arg8[%c0_19, %c0_20] : memref<1x128xf32, #tpu.memory_space<vmem>>, vector<1x128xf32>
    %cst_21 = arith.constant dense<0.000000e+00> : vector<128xf32>
    %32 = vector.multi_reduction <add>, %5, %cst_21 [0] : vector<2x128xf32> to vector<128xf32>
    %33 = vector.shape_cast %32 : vector<128xf32> to vector<1x128xf32>
    %cst_22 = arith.constant 5.000000e-01 : f32
    %34 = vector.broadcast %cst_22 : f32 to vector<1x128xf32>
    %35 = arith.mulf %33, %34 : vector<1x128xf32>
    %36 = arith.mulf %5, %5 : vector<2x128xf32>
    %cst_23 = arith.constant dense<0.000000e+00> : vector<128xf32>
    %37 = vector.multi_reduction <add>, %36, %cst_23 [0] : vector<2x128xf32> to vector<128xf32>
    %38 = vector.shape_cast %37 : vector<128xf32> to vector<1x128xf32>
    %cst_24 = arith.constant 5.000000e-01 : f32
    %39 = vector.broadcast %cst_24 : f32 to vector<1x128xf32>
    %40 = arith.mulf %38, %39 : vector<1x128xf32>
    %41 = arith.mulf %35, %35 : vector<1x128xf32>
    %42 = arith.subf %40, %41 : vector<1x128xf32>
    %43 = vector.broadcast %35 : vector<1x128xf32> to vector<2x128xf32>
    %44 = arith.subf %5, %43 : vector<2x128xf32>
    %cst_25 = arith.constant 9.99999974E-6 : f32
    %45 = vector.broadcast %cst_25 : f32 to vector<1x128xf32>
    %46 = arith.addf %42, %45 : vector<1x128xf32>
    %47 = math.rsqrt %46 : vector<1x128xf32>
    %48 = vector.broadcast %47 : vector<1x128xf32> to vector<2x128xf32>
    %49 = arith.mulf %44, %48 : vector<2x128xf32>
    %50 = vector.broadcast %30 : vector<1x128xf32> to vector<2x128xf32>
    %51 = arith.mulf %49, %50 : vector<2x128xf32>
    %52 = vector.broadcast %31 : vector<1x128xf32> to vector<2x128xf32>
    %53 = arith.addf %51, %52 : vector<2x128xf32>
    %54 = arith.addf %29, %53 : vector<2x128xf32>
    %cst_26 = arith.constant 0.000000e+00 : f32
    %55 = vector.broadcast %cst_26 : f32 to vector<2x128xf32>
    %56 = arith.maximumf %54, %55 : vector<2x128xf32>
    %57 = arith.truncf %56 : vector<2x128xf32> to vector<2x128xbf16>
    %c0_27 = arith.constant 0 : index
    %c0_28 = arith.constant 0 : index
    %58 = vector.load %arg9[%c0_27, %c0_28] : memref<2x128xbf16, #tpu.memory_space<vmem>>, vector<2x128xbf16>
    tpu.vector_store %arg9[%c0_27, %c0_28], %57 {strides = array<i32>} : memref<2x128xbf16, #tpu.memory_space<vmem>>, vector<2x128xbf16>,
    return
  }
  func.func @transform_0(%arg0: i32) -> (i32, i32) {
    %c0_i32 = arith.constant 0 : i32
    %c0_i32_0 = arith.constant 0 : i32
    %c0_i32_1 = arith.constant 0 : i32
    return %c0_i32, %c0_i32_0 : i32, i32
  }
  func.func @transform_1(%arg0: i32) -> (i32, i32) {
    %c0_i32 = arith.constant 0 : i32
    %c0_i32_0 = arith.constant 0 : i32
    %c0_i32_1 = arith.constant 0 : i32
    return %c0_i32, %c0_i32_0 : i32, i32
  }
  func.func @transform_2(%arg0: i32) -> (i32, i32) {
    %c0_i32 = arith.constant 0 : i32
    %c0_i32_0 = arith.constant 0 : i32
    %c0_i32_1 = arith.constant 0 : i32
    return %c0_i32, %c0_i32_0 : i32, i32
  }
  func.func @transform_3(%arg0: i32) -> (i32, i32) {
    %c0_i32 = arith.constant 0 : i32
    %c0_i32_0 = arith.constant 0 : i32
    %c0_i32_1 = arith.constant 0 : i32
    return %c0_i32, %c0_i32_0 : i32, i32
  }
  func.func @transform_4(%arg0: i32) -> (i32, i32) {
    %c0_i32 = arith.constant 0 : i32
    %c0_i32_0 = arith.constant 0 : i32
    %c0_i32_1 = arith.constant 0 : i32
    return %c0_i32, %c0_i32_0 : i32, i32
  }
  func.func @transform_5(%arg0: i32) -> (i32, i32) {
    %c0_i32 = arith.constant 0 : i32
    %c0_i32_0 = arith.constant 0 : i32
    %c0_i32_1 = arith.constant 0 : i32
    return %c0_i32, %c0_i32_0 : i32, i32
  }
  func.func @transform_6(%arg0: i32) -> (i32, i32) {
    %c0_i32 = arith.constant 0 : i32
    %c0_i32_0 = arith.constant 0 : i32
    %c0_i32_1 = arith.constant 0 : i32
    return %c0_i32, %c0_i32_0 : i32, i32
  }
  func.func @transform_7(%arg0: i32) -> (i32, i32) {
    %c0_i32 = arith.constant 0 : i32
    %c0_i32_0 = arith.constant 0 : i32
    %c0_i32_1 = arith.constant 0 : i32
    return %c0_i32, %c0_i32_0 : i32, i32
  }
  func.func @transform_8(%arg0: i32) -> (i32, i32) {
    %c0_i32 = arith.constant 0 : i32
    %c0_i32_0 = arith.constant 0 : i32
    %c0_i32_1 = arith.constant 0 : i32
    return %c0_i32, %c0_i32_0 : i32, i32
  }
}

module attributes {stable_mosaic.version = 11 : i64} {
  func.func @_pool_fc_kernel(%arg0: i32, %arg1: memref<2x1x128xbf16, #tpu.memory_space<vmem>>, %arg2: memref<128x10xbf16, #tpu.memory_space<vmem>>, %arg3: memref<1x10xf32, #tpu.memory_space<vmem>>, %arg4: memref<2x10xf32, #tpu.memory_space<vmem>>) attributes {dimension_semantics = [#tpu.dimension_semantics<arbitrary>], iteration_bounds = array<i64: 1>, scalar_prefetch = 0 : i64, scratch_operands = 0 : i64, tpu.core_type = #tpu.core_type<tc>, window_params = [{pipeline_mode = #tpu.pipeline_mode<synchronous>, transform_indices = @transform_0, window_bounds = array<i64: 2, 1, 128>}, {pipeline_mode = #tpu.pipeline_mode<synchronous>, transform_indices = @transform_1, window_bounds = array<i64: 128, 10>}, {pipeline_mode = #tpu.pipeline_mode<synchronous>, transform_indices = @transform_2, window_bounds = array<i64: 1, 10>}, {pipeline_mode = #tpu.pipeline_mode<synchronous>, transform_indices = @transform_3, window_bounds = array<i64: 2, 10>}]} {
    %c0 = arith.constant 0 : index
    %c0_0 = arith.constant 0 : index
    %c0_1 = arith.constant 0 : index
    %0 = vector.load %arg1[%c0, %c0_0, %c0_1] : memref<2x1x128xbf16, #tpu.memory_space<vmem>>, vector<2x1x128xbf16>
    %1 = arith.extf %0 : vector<2x1x128xbf16> to vector<2x1x128xf32>
    %cst = arith.constant dense<0.000000e+00> : vector<2x128xf32>
    %2 = vector.multi_reduction <add>, %1, %cst [1] : vector<2x1x128xf32> to vector<2x128xf32>
    %cst_2 = arith.constant 1.000000e+00 : f32
    %3 = vector.broadcast %cst_2 : f32 to vector<2x128xf32>
    %4 = arith.divf %2, %3 : vector<2x128xf32>
    %5 = arith.truncf %4 : vector<2x128xf32> to vector<2x128xbf16>
    %c0_3 = arith.constant 0 : index
    %c0_4 = arith.constant 0 : index
    %6 = vector.load %arg2[%c0_3, %c0_4] : memref<128x10xbf16, #tpu.memory_space<vmem>>, vector<128x10xbf16>
    %cst_5 = arith.constant dense<0.000000e+00> : vector<2x10xf32>
    %7 = tpu.matmul %5, %6, %cst_5 {dimension_numbers = #tpu.dot_dimension_numbers<[1], [0], [0], [1], [0, 0, 1, 1], [], []>} : vector<2x128xbf16>, vector<128x10xbf16>, vector<2x10xf32> -> vector<2x10xf32>
    %c0_6 = arith.constant 0 : index
    %c0_7 = arith.constant 0 : index
    %8 = vector.load %arg3[%c0_6, %c0_7] : memref<1x10xf32, #tpu.memory_space<vmem>>, vector<1x10xf32>
    %9 = vector.broadcast %8 : vector<1x10xf32> to vector<2x10xf32>
    %10 = arith.addf %7, %9 : vector<2x10xf32>
    %c0_8 = arith.constant 0 : index
    %c0_9 = arith.constant 0 : index
    %11 = vector.load %arg4[%c0_8, %c0_9] : memref<2x10xf32, #tpu.memory_space<vmem>>, vector<2x10xf32>
    tpu.vector_store %arg4[%c0_8, %c0_9], %10 {strides = array<i32>} : memref<2x10xf32, #tpu.memory_space<vmem>>, vector<2x10xf32>,
    return
  }
  func.func @transform_0(%arg0: i32) -> (i32, i32, i32) {
    %c0_i32 = arith.constant 0 : i32
    %c0_i32_0 = arith.constant 0 : i32
    %c0_i32_1 = arith.constant 0 : i32
    %c0_i32_2 = arith.constant 0 : i32
    return %c0_i32, %c0_i32_0, %c0_i32_1 : i32, i32, i32
  }
  func.func @transform_1(%arg0: i32) -> (i32, i32) {
    %c0_i32 = arith.constant 0 : i32
    %c0_i32_0 = arith.constant 0 : i32
    %c0_i32_1 = arith.constant 0 : i32
    return %c0_i32, %c0_i32_0 : i32, i32
  }
  func.func @transform_2(%arg0: i32) -> (i32, i32) {
    %c0_i32 = arith.constant 0 : i32
    %c0_i32_0 = arith.constant 0 : i32
    %c0_i32_1 = arith.constant 0 : i32
    return %c0_i32, %c0_i32_0 : i32, i32
  }
  func.func @transform_3(%arg0: i32) -> (i32, i32) {
    %c0_i32 = arith.constant 0 : i32
    %c0_i32_0 = arith.constant 0 : i32
    %c0_i32_1 = arith.constant 0 : i32
    return %c0_i32, %c0_i32_0 : i32, i32
  }
}

</mosaic_0001>

<bundles_post_ra>
// kernel: resnet_forward.14
= control target key start
LH: loop header
LB: loop body
LE: loop exit
PB: predicated region body
PF: predicated region fallthrough
CT: control target
= control target key end

     0   :  { %vm136_vm0 = vcmask 1040384   ;;  %vm489_vm1 = vcmask 1041409   ;;  %vm491_vm2 = vcmask 1042434   ;;  %vm493_vm3 = vcmask 1043459   ;;  %s1238_s0 = inlined_call_operand.vmem [shape: bf16[32,9,128], index: 0, kind: input, shape index: {}]   ;;  %s1239_s1 = inlined_call_operand.vmem [shape: bf16[32,128], index: 1, kind: output, shape index: {}]  }
   0x1   :  { %v553_v0 = vld [vmem:[%s1238_s0] sm:$0xf]  ;;  %v558_v1 = vld [vmem:[%s1238_s0 + $0x4] sm:$0x1]  ;;  %v563_v2 = vld [vmem:[%s1238_s0 + $0x8] sm:$0xf] }
   0x2   :  { %v568_v3 = vld [vmem:[%s1238_s0 + $0xc] sm:$0x1]  ;;  %v573_v4 = vld [vmem:[%s1238_s0 + $0x10] sm:$0xf]  ;;  %v578_v5 = vld [vmem:[%s1238_s0 + $0x14] sm:$0x1]  ;;  %v1275_v22 = vunpack.c.l.bf16 %v553_v0 }
   0x3   :  { %v583_v6 = vld [vmem:[%s1238_s0 + $0x18] sm:$0xf]  ;;  %v588_v7 = vld [vmem:[%s1238_s0 + $0x1c] sm:$0x1]  ;;  %v593_v8 = vld [vmem:[%s1238_s0 + $0x20] sm:$0xf] }
   0x4   :  { %v598_v9 = vld [vmem:[%s1238_s0 + $0x24] sm:$0x1]  ;;  %v603_v10 = vld [vmem:[%s1238_s0 + $0x28] sm:$0xf]  ;;  %v608_v11 = vld [vmem:[%s1238_s0 + $0x2c] sm:$0x1] }
   0x5   :  { %v613_v12 = vld [vmem:[%s1238_s0 + $0x30] sm:$0xf]  ;;  %v618_v13 = vld [vmem:[%s1238_s0 + $0x34] sm:$0x1]  ;;  %v623_v14 = vld [vmem:[%s1238_s0 + $0x38] sm:$0xf]  ;;  %v1281_v0 = vunpack.c.l.bf16 %v598_v9 }
   0x6   :  { %v628_v15 = vld [vmem:[%s1238_s0 + $0x3c] sm:$0x1]  ;;  %v633_v16 = vld [vmem:[%s1238_s0 + $0x40] sm:$0xf]  ;;  %v638_v17 = vld [vmem:[%s1238_s0 + $0x44] sm:$0x1]  ;;  %v1286_v9 = vunpack.c.l.bf16 %v618_v13 }
   0x7   :  { %v643_v18 = vld [vmem:[%s1238_s0 + $0x48] sm:$0xf]  ;;  %v648_v19 = vld [vmem:[%s1238_s0 + $0x4c] sm:$0x1]  ;;  %v653_v20 = vld [vmem:[%s1238_s0 + $0x50] sm:$0xf] }
   0x8   :  { %v662_v25 = vld [vmem:[%s1238_s0 + $0x54] sm:$0x1]  ;;  %v667_v26 = vld [vmem:[%s1238_s0 + $0x58] sm:$0xf]  ;;  %v672_v27 = vld [vmem:[%s1238_s0 + $0x5c] sm:$0x1] }
   0x9   :  { %v681_v32 = vld [vmem:[%s1238_s0 + $0x60] sm:$0xf]  ;;  %v686_v33 = vld [vmem:[%s1238_s0 + $0x64] sm:$0x1]  ;;  %v691_v34 = vld [vmem:[%s1238_s0 + $0x68] sm:$0xf] }
   0xa   :  { %v700_v39 = vld [vmem:[%s1238_s0 + $0x6c] sm:$0x1]  ;;  %v705_v40 = vld [vmem:[%s1238_s0 + $0x70] sm:$0xf]  ;;  %v710_v41 = vld [vmem:[%s1238_s0 + $0x74] sm:$0x1] }
   0xb   :  { %v719_v46 = vld [vmem:[%s1238_s0 + $0x78] sm:$0xf]  ;;  %v724_v47 = vld [vmem:[%s1238_s0 + $0x7c] sm:$0x1]  ;;  %v729_v48 = vld [vmem:[%s1238_s0 + $0x80] sm:$0xf] }
   0xc   :  { %v738_v53 = vld [vmem:[%s1238_s0 + $0x84] sm:$0x1]  ;;  %v743_v54 = vld [vmem:[%s1238_s0 + $0x88] sm:$0xf]  ;;  %v748_v55 = vld [vmem:[%s1238_s0 + $0x8c] sm:$0x1] }
   0xd   :  { %v757_v60 = vld [vmem:[%s1238_s0 + $0x90] sm:$0xf]  ;;  %v762_v61 = vld [vmem:[%s1238_s0 + $0x94] sm:$0x1]  ;;  %v767_v62 = vld [vmem:[%s1238_s0 + $0x98] sm:$0xf] }
   0xe   :  { %v776_v57 = vld [vmem:[%s1238_s0 + $0x9c] sm:$0x1]  ;;  %v781_v51 = vld [vmem:[%s1238_s0 + $0xa0] sm:$0xf]  ;;  %v786_v63 = vld [vmem:[%s1238_s0 + $0xa4] sm:$0x1] }
   0xf   :  { %v795_v49 = vld [vmem:[%s1238_s0 + $0xa8] sm:$0xf]  ;;  %v800_v50 = vld [vmem:[%s1238_s0 + $0xac] sm:$0x1]  ;;  %v805_v58 = vld [vmem:[%s1238_s0 + $0xb0] sm:$0xf] }
  0x10   :  { %v814_v45 = vld [vmem:[%s1238_s0 + $0xb4] sm:$0x1]  ;;  %v819_v42 = vld [vmem:[%s1238_s0 + $0xb8] sm:$0xf]  ;;  %v824_v56 = vld [vmem:[%s1238_s0 + $0xbc] sm:$0x1] }
  0x11   :  { %1257 = vst [vmem:[#allocation2_spill] sm:$0xff] %v819_v42  ;;  %v833_v37 = vld [vmem:[%s1238_s0 + $0xc0] sm:$0xf]  ;;  %v838_v38 = vld [vmem:[%s1238_s0 + $0xc4] sm:$0x1]  ;;  %vm495_vm4 = vcmask 1044484  }
  0x12   :  { %1258 = vst [vmem:[#allocation3_spill] sm:$0xff] %v833_v37  ;;  %v843_v59 = vld [vmem:[%s1238_s0 + $0xc8] sm:$0xf]  ;;  %v852_v30 = vld [vmem:[%s1238_s0 + $0xcc] sm:$0x1]  ;;  %vm497_vm5 = vcmask 1045509  }
  0x13   :  { %1259 = vst [vmem:[#allocation4_spill] sm:$0xff] %v838_v38  ;;  %v857_v36 = vld [vmem:[%s1238_s0 + $0xd0] sm:$0xf]  ;;  %v862_v52 = vld [vmem:[%s1238_s0 + $0xd4] sm:$0x1]  ;;  %v1274_v38 = vunpack.c.l.bf16 %v558_v1  ;;  %v1279_v1 = vunpack.c.l.bf16 %v573_v4  ;;  %vm499_vm6 = vcmask 1046534  }
  0x14   :  { %1260 = vst [vmem:[#allocation5_spill] sm:$0xff] %v843_v59  ;;  %v871_v28 = vld [vmem:[%s1238_s0 + $0xd8] sm:$0xf]  ;;  %v876_v23 = vld [vmem:[%s1238_s0 + $0xdc] sm:$0x1]  ;;  %vm501_vm7 = vcmask 1047559  }
  0x15   :  { %1261 = vst [vmem:[#allocation6_spill] sm:$0xff] %v852_v30  ;;  %v881_v44 = vld [vmem:[%s1238_s0 + $0xe0] sm:$0xf]  ;;  %v890_v24 = vld [vmem:[%s1238_s0 + $0xe4] sm:$0x1]  ;;  %v137_v31 = vsel %vm136_vm0, %v1274_v38, -inf  ;;  %v1280_v38 = vunpack.c.l.bf16 %v588_v7  ;;  %v1285_v7 = vunpack.c.l.bf16 %v603_v10 }
  0x16   :  { %1262 = vst [vmem:[#allocation7_spill] sm:$0xff] %v857_v36  ;;  %v895_v21 = vld [vmem:[%s1238_s0 + $0xe8] sm:$0xf]  ;;  %v900_v43 = vld [vmem:[%s1238_s0 + $0xec] sm:$0x1] }
  0x17   :  { %1263 = vst [vmem:[#allocation8_spill] sm:$0xff] %v862_v52  ;;  %v909_v59 = vld [vmem:[%s1238_s0 + $0xf0] sm:$0xf]  ;;  %v914_v30 = vld [vmem:[%s1238_s0 + $0xf4] sm:$0x1]  ;;  %v1278_v52 = vunpack.c.l.bf16 %v563_v2  ;;  %v161_v29 = vsel %vm136_vm0, %v1280_v38, -inf  ;;  %v1284_v2 = vunpack.c.l.bf16 %v608_v11 }
  0x18   :  { %1264 = vst [vmem:[#allocation9_spill] sm:$0xff] %v871_v28  ;;  %v919_v35 = vld [vmem:[%s1238_s0 + $0xf8] sm:$0xf]  ;;  %v928_v36 = vld [vmem:[%s1238_s0 + $0xfc] sm:$0x1]  ;;  %v138_v28 = vmax.f32 %v1275_v22, %v137_v31  ;;  %v1283_v31 = vunpack.c.l.bf16 %v593_v8 }
  0x19   :  { %1265 = vst [vmem:[#allocation10_spill] sm:$0xff] %v876_v23  ;;  %v177_v4 = vsel %vm136_vm0, %v1284_v2, -inf }
  0x1a   :  { %1266 = vst [vmem:[#allocation11_spill] sm:$0xff] %v881_v44  ;;  %v139_v22 = vrot.slane %v138_v28, 4 }
  0x1b   :  { %1267 = vst [vmem:[#allocation12_spill] sm:$0xff] %v890_v24 }
  0x1c   :  { %1268 = vst [vmem:[#allocation13_spill] sm:$0xff] %v895_v21  ;;  %v1276_v21 = vunpack.c.l.bf16 %v568_v3  ;;  %v169_v3 = vsel %vm136_vm0, %v1281_v0, -inf  ;;  %v140_v38 = vmax.f32 %v138_v28, %v139_v22  ;;  %v1289_v28 = vunpack.c.l.bf16 %v623_v14 }
  0x1d   :  { %1269 = vst [vmem:[#allocation14_spill] sm:$0xff] %v900_v43  ;;  %v1277_v43 = vunpack.c.l.bf16 %v578_v5 }
  0x1e   :  { %1270 = vst [vmem:[#allocation15_spill] sm:$0xff] %v909_v59  ;;  %v145_v44 = vsel %vm136_vm0, %v1276_v21, -inf  ;;  %v1282_v21 = vunpack.c.l.bf16 %v583_v6 }
  0x1f   :  { %1271 = vst [vmem:[#allocation16_spill] sm:$0xff] %v914_v30  ;;  %v153_v23 = vsel %vm136_vm0, %v1277_v43, -inf  ;;  %v146_v37 = vmax.f32 %v1278_v52, %v145_v44  ;;  %v170_v43 = vmax.f32 %v1283_v31, %v169_v3  ;;  %v178_v52 = vmax.f32 %v1285_v7, %v177_v4 }
  0x20   :  { %1272 = vst [vmem:[#allocation17_spill] sm:$0xff] %v919_v35  ;;  %v154_v35 = vmax.f32 %v1279_v1, %v153_v23  ;;  %v162_v5 = vmax.f32 %v1282_v21, %v161_v29  ;;  %v185_v1 = vsel %vm136_vm0, %v1286_v9, -inf  ;;  %v1287_v29 = vunpack.c.l.bf16 %v613_v12 }
  0x21   :  { %1273 = vst [vmem:[#allocation18_spill] sm:$0xff] %v928_v36  ;;  %v147_v23 = vrot.slane %v146_v37, 4  ;;  %v171_v6 = vrot.slane %v170_v43, 4  ;;  %v179_v11 = vrot.slane %v178_v52, 4  ;;  %v1288_v31 = vunpack.c.l.bf16 %v628_v15 }
  0x22   :  { %v155_v44 = vrot.slane %v154_v35, 4  ;;  %v163_v0 = vrot.slane %v162_v5, 4  ;;  %v186_v8 = vmax.f32 %v1287_v29, %v185_v1  ;;  %v141_v36 = vrot.slane %v140_v38, 2 }
  0x23   :  { %v148_v3 = vmax.f32 %v146_v37, %v147_v23  ;;  %v193_v2 = vsel %vm136_vm0, %v1288_v31, -inf  ;;  %v172_v4 = vmax.f32 %v170_v43, %v171_v6  ;;  %v180_v9 = vmax.f32 %v178_v52, %v179_v11 }
  0x24   :  { %v156_v21 = vmax.f32 %v154_v35, %v155_v44  ;;  %v164_v10 = vmax.f32 %v162_v5, %v163_v0  ;;  %v187_v7 = vrot.slane %v186_v8, 4  ;;  %v194_v22 = vmax.f32 %v1289_v28, %v193_v2 }
  0x25   :  { %v149_v13 = vrot.slane %v148_v3, 2  ;;  %v142_v30 = vmax.f32 %v140_v38, %v141_v36  ;;  %v173_v1 = vrot.slane %v172_v4, 2  ;;  %v181_v44 = vrot.slane %v180_v9, 2 }
  0x26   :  { %v157_v59 = vrot.slane %v156_v21, 2  ;;  %v165_v12 = vrot.slane %v164_v10, 2  ;;  %v188_v37 = vmax.f32 %v186_v8, %v187_v7  ;;  %v195_v15 = vrot.slane %v194_v22, 4 }
  0x27   :  { %v150_v35 = vmax.f32 %v148_v3, %v149_v13  ;;  %v143_v29 = vrot.slane %v142_v30, 1  ;;  %v174_v24 = vmax.f32 %v172_v4, %v173_v1  ;;  %v182_v6 = vmax.f32 %v180_v9, %v181_v44 }
  0x28   :  { %v158_v23 = vmax.f32 %v156_v21, %v157_v59  ;;  %v166_v31 = vmax.f32 %v164_v10, %v165_v12  ;;  %v189_v5 = vrot.slane %v188_v37, 2  ;;  %v196_v42 = vmax.f32 %v194_v22, %v195_v15 }
  0x29   :  { %v151_v43 = vrot.slane %v150_v35, 1  ;;  %v974_v52 = vmax.f32 %v142_v30, %v143_v29  ;;  %v175_v11 = vrot.slane %v174_v24, 1  ;;  %v183_v59 = vrot.slane %v182_v6, 1 }
  0x2a   :  { %v159_v0 = vrot.slane %v158_v23, 1  ;;  %v167_v14 = vrot.slane %v166_v31, 1  ;;  %v190_v36 = vmax.f32 %v188_v37, %v189_v5  ;;  %v197_v3 = vrot.slane %v196_v42, 2 }
  0x2b   :  { %v976_v38 = vmax.f32 %v150_v35, %v151_v43  ;;  %v982_v2 = vmax.f32 %v174_v24, %v175_v11  ;;  %v1290_v4 = vunpack.c.l.bf16 %v638_v17  ;;  %v987_v30 = vmax.f32 %v182_v6, %v183_v59 }
  0x2c   :  { %v978_v8 = vmax.f32 %v158_v23, %v159_v0  ;;  %v980_v21 = vmax.f32 %v166_v31, %v167_v14  ;;  %v191_v10 = vrot.slane %v190_v36, 1  ;;  %v198_v13 = vmax.f32 %v196_v42, %v197_v3 }
  0x2d   :  { %v201_v7 = vsel %vm136_vm0, %v1290_v4, -inf  ;;  %v1291_v9 = vunpack.c.l.bf16 %v633_v16  ;;  %v1292_v22 = vunpack.c.l.bf16 %v648_v19  ;;  %v1293_v24 = vunpack.c.l.bf16 %v643_v18 }
  0x2e   :  { %v994_v1 = vmax.f32 %v190_v36, %v191_v10  ;;  %v1294_v35 = vunpack.c.l.bf16 %v662_v25  ;;  %v1295_v23 = vunpack.c.l.bf16 %v672_v27  ;;  %v199_v44 = vrot.slane %v198_v13, 1 }
  0x2f   :  { %v202_v28 = vmax.f32 %v1291_v9, %v201_v7  ;;  %v209_v12 = vsel %vm136_vm0, %v1292_v22, -inf  ;;  %v1296_v15 = vunpack.c.l.bf16 %v653_v20  ;;  %v1297_v29 = vunpack.c.l.bf16 %v667_v26 }
  0x30   :  { %v210_v37 = vmax.f32 %v1293_v24, %v209_v12  ;;  %v217_v17 = vsel %vm136_vm0, %v1294_v35, -inf  ;;  %v225_v42 = vsel %vm136_vm0, %v1295_v23, -inf  ;;  %v1298_v18 = vunpack.c.l.bf16 %v686_v33 }
  0x31   :  { %v203_v16 = vrot.slane %v202_v28, 4  ;;  %v218_v19 = vmax.f32 %v1296_v15, %v217_v17  ;;  %v226_v31 = vmax.f32 %v1297_v29, %v225_v42  ;;  %v1299_v25 = vunpack.c.l.bf16 %v700_v39 }
  0x32   :  { %v211_v5 = vrot.slane %v210_v37, 4  ;;  %v233_v43 = vsel %vm136_vm0, %v1298_v18, -inf  ;;  %v1300_v27 = vunpack.c.l.bf16 %v710_v41  ;;  %v1017_v14 = vmax.f32 %v198_v13, %v199_v44 }
  0x33   :  { %v241_v0 = vsel %vm136_vm0, %v1299_v25, -inf  ;;  %v204_v20 = vmax.f32 %v202_v28, %v203_v16  ;;  %v219_v11 = vrot.slane %v218_v19, 4  ;;  %v227_v36 = vrot.slane %v226_v31, 4 }
  0x34   :  { %v249_v6 = vsel %vm136_vm0, %v1300_v27, -inf  ;;  %v212_v26 = vmax.f32 %v210_v37, %v211_v5  ;;  %v1301_v59 = vunpack.c.l.bf16 %v681_v32  ;;  %v1302_v33 = vunpack.c.l.bf16 %v691_v34 }
  0x35   :  { %v1303_v39 = vunpack.c.l.bf16 %v705_v40  ;;  %v205_v7 = vrot.slane %v204_v20, 2  ;;  %v220_v9 = vmax.f32 %v218_v19, %v219_v11  ;;  %v228_v41 = vmax.f32 %v226_v31, %v227_v36 }
  0x36   :  { %v234_v3 = vmax.f32 %v1301_v59, %v233_v43  ;;  %v242_v10 = vmax.f32 %v1302_v33, %v241_v0  ;;  %v1304_v22 = vunpack.c.l.bf16 %v724_v47  ;;  %v213_v28 = vrot.slane %v212_v26, 2 }
  0x37   :  { %v250_v4 = vmax.f32 %v1303_v39, %v249_v6  ;;  %v206_v35 = vmax.f32 %v204_v20, %v205_v7  ;;  %v221_v32 = vrot.slane %v220_v9, 2  ;;  %v229_v17 = vrot.slane %v228_v41, 2 }
  0x38   :  { %v257_v13 = vsel %vm136_vm0, %v1304_v22, -inf  ;;  %v235_v12 = vrot.slane %v234_v3, 4  ;;  %v243_v24 = vrot.slane %v242_v10, 4  ;;  %v1305_v34 = vunpack.c.l.bf16 %v719_v46 }
  0x39   :  { %v251_v37 = vrot.slane %v250_v4, 4  ;;  %v214_v42 = vmax.f32 %v212_v26, %v213_v28  ;;  %v207_v15 = vrot.slane %v206_v35, 1  ;;  %v222_v19 = vmax.f32 %v220_v9, %v221_v32 }
  0x3a   :  { %v258_v23 = vmax.f32 %v1305_v34, %v257_v13  ;;  %v236_v40 = vmax.f32 %v234_v3, %v235_v12  ;;  %v244_v44 = vmax.f32 %v242_v10, %v243_v24  ;;  %v230_v29 = vmax.f32 %v228_v41, %v229_v17 }
  0x3b   :  { %v252_v16 = vmax.f32 %v250_v4, %v251_v37  ;;  %v215_v31 = vrot.slane %v214_v42, 1  ;;  %v1030_v25 = vmax.f32 %v206_v35, %v207_v15  ;;  %v223_v0 = vrot.slane %v222_v19, 1 }
  0x3c   :  { %v259_v47 = vrot.slane %v258_v23, 4  ;;  %v237_v5 = vrot.slane %v236_v40, 2  ;;  %v245_v18 = vrot.slane %v244_v44, 2  ;;  %v231_v27 = vrot.slane %v230_v29, 1 }
  0x3d   :  { %v253_v43 = vrot.slane %v252_v16, 2  ;;  %v1032_v20 = vmax.f32 %v214_v42, %v215_v31  ;;  %v1034_v26 = vmax.f32 %v222_v19, %v223_v0  ;;  %v1306_v33 = vunpack.c.l.bf16 %v738_v53 }
  0x3e   :  { %v260_v6 = vmax.f32 %v258_v23, %v259_v47  ;;  %v238_v46 = vmax.f32 %v236_v40, %v237_v5  ;;  %v246_v11 = vmax.f32 %v244_v44, %v245_v18  ;;  %v1036_v59 = vmax.f32 %v230_v29, %v231_v27 }
  0x3f   :  { %v254_v36 = vmax.f32 %v252_v16, %v253_v43  ;;  %v265_v10 = vsel %vm136_vm0, %v1306_v33, -inf  ;;  %v1307_v9 = vunpack.c.l.bf16 %v729_v48  ;;  %v1308_v13 = vunpack.c.l.bf16 %v748_v55 }
  0x40   :  { %v261_v3 = vrot.slane %v260_v6, 2  ;;  %v239_v39 = vrot.slane %v238_v46, 1  ;;  %v247_v4 = vrot.slane %v246_v11, 1  ;;  %v1309_v12 = vunpack.c.l.bf16 %v762_v61 }
  0x41   :  { %v255_v7 = vrot.slane %v254_v36, 1  ;;  %v266_v41 = vmax.f32 %v1307_v9, %v265_v10  ;;  %v273_v28 = vsel %vm136_vm0, %v1308_v13, -inf  ;;  %v1310_v37 = vunpack.c.l.bf16 %v776_v57 }
  0x42   :  { %v262_v22 = vmax.f32 %v260_v6, %v261_v3  ;;  %v281_v24 = vsel %vm136_vm0, %v1309_v12, -inf  ;;  %v1052_v35 = vmax.f32 %v238_v46, %v239_v39  ;;  %v1054_v32 = vmax.f32 %v246_v11, %v247_v4 }
  0x43   :  { %v289_v53 = vsel %vm136_vm0, %v1310_v37, -inf  ;;  %v1056_v17 = vmax.f32 %v254_v36, %v255_v7  ;;  %v267_v48 = vrot.slane %v266_v41, 4  ;;  %v1311_v55 = vunpack.c.l.bf16 %v743_v54 }
  0x44   :  { %v263_v34 = vrot.slane %v262_v22, 1  ;;  %v1312_v42 = vunpack.c.l.bf16 %v757_v60  ;;  %v1313_v40 = vunpack.c.l.bf16 %v767_v62  ;;  %v1314_v16 = vunpack.c.l.bf16 %v786_v63 }
  0x45   :  { %v274_v23 = vmax.f32 %v1311_v55, %v273_v28  ;;  %v268_v57 = vmax.f32 %v266_v41, %v267_v48  ;;  %v1315_v19 = vunpack.c.l.bf16 %v800_v50  ;;  %v1316_v47 = vunpack.c.l.bf16 %v814_v45  ;;  %v1321_v41 = vld [vmem:[#allocation2_spill] sm:$0xff] }
  0x46   :  { %v282_v61 = vmax.f32 %v1312_v42, %v281_v24  ;;  %v290_v44 = vmax.f32 %v1313_v40, %v289_v53  ;;  %v297_v15 = vsel %vm136_vm0, %v1314_v16, -inf  ;;  %v1073_v31 = vmax.f32 %v262_v22, %v263_v34 }
  0x47   :  { %v305_v29 = vsel %vm136_vm0, %v1315_v19, -inf  ;;  %v313_v54 = vsel %vm136_vm0, %v1316_v47, -inf  ;;  %v275_v60 = vrot.slane %v274_v23, 4  ;;  %v269_v62 = vrot.slane %v268_v57, 2  ;;  %v1323_v19 = vld [vmem:[#allocation4_spill] sm:$0xff] }
  0x48   :  { %v283_v5 = vrot.slane %v282_v61, 4  ;;  %v291_v18 = vrot.slane %v290_v44, 4  ;;  %v1317_v43 = vunpack.c.l.bf16 %v781_v51  ;;  %v1318_v63 = vunpack.c.l.bf16 %v795_v49 }
  0x49   :  { %v1319_v50 = vunpack.c.l.bf16 %v805_v58  ;;  %v276_v46 = vmax.f32 %v274_v23, %v275_v60  ;;  %v1320_v36 = vunpack.c.l.bf16 %v824_v56  ;;  %v270_v33 = vmax.f32 %v268_v57, %v269_v62 }
  0x4a   :  { %v298_v0 = vmax.f32 %v1317_v43, %v297_v15  ;;  %v306_v27 = vmax.f32 %v1318_v63, %v305_v29  ;;  %v284_v11 = vmax.f32 %v282_v61, %v283_v5  ;;  %v292_v45 = vmax.f32 %v290_v44, %v291_v18  ;;  %v1325_v63 = vld [vmem:[#allocation3_spill] sm:$0xff] }
  0x4b   :  { %v314_v6 = vmax.f32 %v1319_v50, %v313_v54  ;;  %v321_v3 = vsel %vm136_vm0, %v1320_v36, -inf  ;;  %v277_v7 = vrot.slane %v276_v46, 2  ;;  %v1322_v49 = vunpack.c.l.bf16 %v1321_v41  ;;  %v1329_v36 = vld [vmem:[#allocation8_spill] sm:$0xff] }
  0x4c   :  { %v299_v10 = vrot.slane %v298_v0, 4  ;;  %v307_v39 = vrot.slane %v306_v27, 4  ;;  %v285_v51 = vrot.slane %v284_v11, 2  ;;  %v293_v9 = vrot.slane %v292_v45, 2 }
  0x4d   :  { %v315_v4 = vrot.slane %v314_v6, 4  ;;  %v322_v22 = vmax.f32 %v1322_v49, %v321_v3  ;;  %v271_v13 = vrot.slane %v270_v33, 1  ;;  %v278_v24 = vmax.f32 %v276_v46, %v277_v7  ;;  %v1327_v46 = vld [vmem:[#allocation6_spill] sm:$0xff] }
  0x4e   :  { %v300_v58 = vmax.f32 %v298_v0, %v299_v10  ;;  %v308_v28 = vmax.f32 %v306_v27, %v307_v39  ;;  %v286_v37 = vmax.f32 %v284_v11, %v285_v51  ;;  %v294_v53 = vmax.f32 %v292_v45, %v293_v9  ;;  %v1331_v10 = vld [vmem:[#allocation10_spill] sm:$0xff] }
  0x4f   :  { %v316_v12 = vmax.f32 %v314_v6, %v315_v4  ;;  %v323_v56 = vrot.slane %v322_v22, 4  ;;  %v1086_v48 = vmax.f32 %v270_v33, %v271_v13  ;;  %v279_v42 = vrot.slane %v278_v24, 1 }
  0x50   :  { %v301_v34 = vrot.slane %v300_v58, 2  ;;  %v309_v55 = vrot.slane %v308_v28, 2  ;;  %v287_v61 = vrot.slane %v286_v37, 1  ;;  %v295_v40 = vrot.slane %v294_v53, 1 }
  0x51   :  { %v317_v23 = vrot.slane %v316_v12, 2  ;;  %v324_v44 = vmax.f32 %v322_v22, %v323_v56  ;;  %v1324_v29 = vunpack.c.l.bf16 %v1323_v19  ;;  %v1091_v54 = vmax.f32 %v278_v24, %v279_v42  ;;  %v1333_v22 = vld [vmem:[#allocation5_spill] sm:$0xff] }
  0x52   :  { %v302_v57 = vmax.f32 %v300_v58, %v301_v34  ;;  %v310_v16 = vmax.f32 %v308_v28, %v309_v55  ;;  %v1093_v60 = vmax.f32 %v286_v37, %v287_v61  ;;  %v1095_v5 = vmax.f32 %v294_v53, %v295_v40  ;;  %v1335_v28 = vld [vmem:[#allocation7_spill] sm:$0xff]  ;;  %v1337_v37 = vld [vmem:[#allocation9_spill] sm:$0xff]  ;;  %v1339_v55 = vld [vmem:[#allocation12_spill] sm:$0xff] }
  0x53   :  { %v318_v15 = vmax.f32 %v316_v12, %v317_v23  ;;  %v329_v47 = vsel %vm136_vm0, %v1324_v29, -inf  ;;  %v325_v18 = vrot.slane %v324_v44, 2  ;;  %v1326_v27 = vunpack.c.l.bf16 %v1325_v63  ;;  %v1341_v61 = vld [vmem:[#allocation14_spill] sm:$0xff] }
  0x54   :  { %v303_v62 = vrot.slane %v302_v57, 1  ;;  %v311_v43 = vrot.slane %v310_v16, 1  ;;  %v1328_v11 = vunpack.c.l.bf16 %v1327_v46  ;;  %v1330_v3 = vunpack.c.l.bf16 %v1329_v36 }
  0x55   :  { %v319_v0 = vrot.slane %v318_v15, 1  ;;  %v330_v50 = vmax.f32 %v1326_v27, %v329_v47  ;;  %v326_v6 = vmax.f32 %v324_v44, %v325_v18  ;;  %v1332_v39 = vunpack.c.l.bf16 %v1331_v10  ;;  %v1347_v27 = vld [vmem:[#allocation13_spill] sm:$0xff] }
  0x56   :  { %v337_v45 = vsel %vm136_vm0, %v1328_v11, -inf  ;;  %v345_v33 = vsel %vm136_vm0, %v1330_v3, -inf  ;;  %v1108_v7 = vmax.f32 %v302_v57, %v303_v62  ;;  %v1110_v51 = vmax.f32 %v310_v16, %v311_v43  ;;  %v1343_v57 = vld [vmem:[#allocation16_spill] sm:$0xff]  ;;  %v1345_v43 = vld [vmem:[#allocation11_spill] sm:$0xff] }
  0x57   :  { %v353_v4 = vsel %vm136_vm0, %v1332_v39, -inf  ;;  %v1112_v9 = vmax.f32 %v318_v15, %v319_v0  ;;  %v331_v41 = vrot.slane %v330_v50, 4  ;;  %v327_v49 = vrot.slane %v326_v6, 1  ;;  %v1349_v11 = vld [vmem:[#allocation15_spill] sm:$0xff]  ;;  %v1351_v39 = vld [vmem:[#allocation18_spill] sm:$0xff] }
  0x58   :  { %v1334_v13 = vunpack.c.l.bf16 %v1333_v22  ;;  %v1336_v12 = vunpack.c.l.bf16 %v1335_v28  ;;  %v1338_v53 = vunpack.c.l.bf16 %v1337_v37  ;;  %v1340_v23 = vunpack.c.l.bf16 %v1339_v55 }
  0x59   :  { %v332_v34 = vmax.f32 %v330_v50, %v331_v41  ;;  %v1342_v40 = vunpack.c.l.bf16 %v1341_v61  ;;  %v1344_v16 = vunpack.c.l.bf16 %v1343_v57  ;;  %v1129_v19 = vmax.f32 %v326_v6, %v327_v49 }
  0x5a   :  { %v338_v58 = vmax.f32 %v1334_v13, %v337_v45  ;;  %v346_v24 = vmax.f32 %v1336_v12, %v345_v33  ;;  %v354_v56 = vmax.f32 %v1338_v53, %v353_v4  ;;  %v361_v42 = vsel %vm136_vm0, %v1340_v23, -inf  ;;  %v1353_v53 = vld [vmem:[#allocation17_spill] sm:$0xff] }
  0x5b   :  { %v369_v44 = vsel %vm136_vm0, %v1342_v40, -inf  ;;  %v377_v15 = vsel %vm136_vm0, %v1344_v16, -inf  ;;  %v333_v62 = vrot.slane %v332_v34, 2  ;;  %v1346_v0 = vunpack.c.l.bf16 %v1345_v43 }
  0x5c   :  { %v339_v29 = vrot.slane %v338_v58, 4  ;;  %v347_v47 = vrot.slane %v346_v24, 4  ;;  %v355_v18 = vrot.slane %v354_v56, 4  ;;  %v1348_v50 = vunpack.c.l.bf16 %v1347_v27 }
  0x5d   :  { %v362_v63 = vmax.f32 %v1346_v0, %v361_v42  ;;  %v1350_v45 = vunpack.c.l.bf16 %v1349_v11  ;;  %v1352_v4 = vunpack.c.l.bf16 %v1351_v39  ;;  %v334_v41 = vmax.f32 %v332_v34, %v333_v62 }
  0x5e   :  { %v370_v46 = vmax.f32 %v1348_v50, %v369_v44  ;;  %v340_v3 = vmax.f32 %v338_v58, %v339_v29  ;;  %v348_v33 = vmax.f32 %v346_v24, %v347_v47  ;;  %v356_v10 = vmax.f32 %v354_v56, %v355_v18 }
  0x5f   :  { %v378_v36 = vmax.f32 %v1350_v45, %v377_v15  ;;  %v385_v6 = vsel %vm136_vm0, %v1352_v4, -inf  ;;  %v363_v49 = vrot.slane %v362_v63, 4  ;;  %v1354_v55 = vunpack.c.l.bf16 %v1353_v53 }
  0x60   :  { %v371_v22 = vrot.slane %v370_v46, 4  ;;  %v341_v28 = vrot.slane %v340_v3, 2  ;;  %v349_v12 = vrot.slane %v348_v33, 2  ;;  %v357_v37 = vrot.slane %v356_v10, 2 }
  0x61   :  { %v379_v13 = vrot.slane %v378_v36, 4  ;;  %v386_v23 = vmax.f32 %v1354_v55, %v385_v6  ;;  %v335_v42 = vrot.slane %v334_v41, 1  ;;  %v364_v61 = vmax.f32 %v362_v63, %v363_v49 }
  0x62   :  { %v372_v40 = vmax.f32 %v370_v46, %v371_v22  ;;  %v342_v24 = vmax.f32 %v340_v3, %v341_v28  ;;  %v350_v56 = vmax.f32 %v348_v33, %v349_v12  ;;  %v358_v44 = vmax.f32 %v356_v10, %v357_v37 }
  0x63   :  { %v380_v58 = vmax.f32 %v378_v36, %v379_v13  ;;  %v387_v57 = vrot.slane %v386_v23, 4  ;;  %v1142_v16 = vmax.f32 %v334_v41, %v335_v42  ;;  %v365_v34 = vrot.slane %v364_v61, 2 }
  0x64   :  { %v373_v15 = vrot.slane %v372_v40, 2  ;;  %v343_v47 = vrot.slane %v342_v24, 1  ;;  %v351_v18 = vrot.slane %v350_v56, 1  ;;  %v359_v62 = vrot.slane %v358_v44, 1 }
  0x65   :  { %v381_v29 = vrot.slane %v380_v58, 2  ;;  %v388_v43 = vmax.f32 %v386_v23, %v387_v57  ;;  %v366_v0 = vmax.f32 %v364_v61, %v365_v34  ;;  %v393_v63 = vpack.c.bf16 %v974_v52, %v974_v52 }
  0x66   :  { %v374_v27 = vmax.f32 %v372_v40, %v373_v15  ;;  %v1146_v46 = vmax.f32 %v342_v24, %v343_v47  ;;  %v1148_v11 = vmax.f32 %v350_v56, %v351_v18  ;;  %v1150_v45 = vmax.f32 %v358_v44, %v359_v62 }
  0x67   :  { %v382_v50 = vmax.f32 %v380_v58, %v381_v29  ;;  %v389_v36 = vrot.slane %v388_v43, 2  ;;  %v367_v3 = vrot.slane %v366_v0, 1  ;;  %v394_v39 = vpack.c.bf16 %v976_v38, %v976_v38 }
  0x68   :  { %v375_v33 = vrot.slane %v374_v27, 1  ;;  %v395_v6 = vpack.c.bf16 %v978_v8, %v978_v8  ;;  %v396_v52 = vpack.c.bf16 %v980_v21, %v980_v21  ;;  %v397_v41 = vpack.c.bf16 %v982_v2, %v982_v2 }
  0x69   :  { %v383_v10 = vrot.slane %v382_v50, 1  ;;  %v390_v4 = vmax.f32 %v388_v43, %v389_v36  ;;  %v368_v49 = vmax.f32 %v366_v0, %v367_v3  ;;  %v398_v28 = vpack.c.bf16 %v987_v30, %v987_v30 }
  0x6a   :  { %v376_v22 = vmax.f32 %v374_v27, %v375_v33  ;;  %v399_v38 = vpack.c.bf16 %v994_v1, %v994_v1  ;;  %v400_v37 = vpack.c.bf16 %v1017_v14, %v1017_v14  ;;  %v401_v8 = vpack.c.bf16 %v1030_v25, %v1030_v25 }
  0x6b   :  { %v384_v13 = vmax.f32 %v382_v50, %v383_v10  ;;  %v391_v12 = vrot.slane %v390_v4, 1  ;;  %v402_v21 = vpack.c.bf16 %v1032_v20, %v1032_v20  ;;  %v403_v2 = vpack.c.bf16 %v1034_v26, %v1034_v26 }
  0x6c   :  { %v404_v53 = vpack.c.bf16 %v1036_v59, %v1036_v59  ;;  %v405_v30 = vpack.c.bf16 %v1052_v35, %v1052_v35  ;;  %v406_v1 = vpack.c.bf16 %v1054_v32, %v1054_v32  ;;  %v407_v14 = vpack.c.bf16 %v1056_v17, %v1056_v17 }
  0x6d   :  { %v392_v55 = vmax.f32 %v390_v4, %v391_v12  ;;  %v408_v25 = vpack.c.bf16 %v1073_v31, %v1073_v31  ;;  %v409_v20 = vpack.c.bf16 %v1086_v48, %v1086_v48  ;;  %v410_v26 = vpack.c.bf16 %v1091_v54, %v1091_v54 }
  0x6e   :  { %v411_v59 = vpack.c.bf16 %v1093_v60, %v1093_v60  ;;  %v412_v35 = vpack.c.bf16 %v1095_v5, %v1095_v5  ;;  %v413_v32 = vpack.c.bf16 %v1108_v7, %v1108_v7  ;;  %v414_v17 = vpack.c.bf16 %v1110_v51, %v1110_v51 }
  0x6f   :  { %v415_v31 = vpack.c.bf16 %v1112_v9, %v1112_v9  ;;  %v416_v48 = vpack.c.bf16 %v1129_v19, %v1129_v19  ;;  %v417_v54 = vpack.c.bf16 %v1142_v16, %v1142_v16  ;;  %v418_v60 = vpack.c.bf16 %v1146_v46, %v1146_v46 }
  0x70   :  { %v419_v5 = vpack.c.bf16 %v1148_v11, %v1148_v11  ;;  %v420_v7 = vpack.c.bf16 %v1150_v45, %v1150_v45  ;;  %v421_v23 = vpack.c.bf16 %v368_v49, %v368_v49  ;;  %v422_v51 = vpack.c.bf16 %v376_v22, %v376_v22 }
  0x71   :  { %v423_v42 = vpack.c.bf16 %v384_v13, %v384_v13  ;;  %v424_v61 = vpack.c.bf16 %v392_v55, %v392_v55  ;;  %v457_v9 = vunpack.c.l.b16 %v393_v63  ;;  %v458_v40 = vunpack.c.l.b16 %v394_v39 }
  0x72   :  { %v459_v58 = vunpack.c.l.b16 %v395_v6  ;;  %v460_v19 = vunpack.c.l.b16 %v396_v52  ;;  %v461_v24 = vunpack.c.l.b16 %v397_v41  ;;  %v462_v56 = vunpack.c.l.b16 %v398_v28 }
  0x73   :  { %v463_v44 = vunpack.c.l.b16 %v399_v38  ;;  %v464_v57 = vunpack.c.l.b16 %v400_v37  ;;  %v465_v16 = vunpack.c.l.b16 %v401_v8  ;;  %v466_v34 = vunpack.c.l.b16 %v402_v21 }
  0x74   :  { %v467_v15 = vunpack.c.l.b16 %v403_v2  ;;  %v468_v29 = vunpack.c.l.b16 %v404_v53  ;;  %v469_v47 = vunpack.c.l.b16 %v405_v30  ;;  %v470_v18 = vunpack.c.l.b16 %v406_v1 }
  0x75   :  { %v471_v62 = vunpack.c.l.b16 %v407_v14  ;;  %v472_v43 = vunpack.c.l.b16 %v408_v25  ;;  %v473_v0 = vunpack.c.l.b16 %v409_v20  ;;  %v474_v27 = vunpack.c.l.b16 %v410_v26 }
  0x76   :  { %v475_v50 = vunpack.c.l.b16 %v411_v59  ;;  %v476_v46 = vunpack.c.l.b16 %v412_v35  ;;  %v477_v63 = vunpack.c.l.b16 %v413_v32  ;;  %v478_v11 = vunpack.c.l.b16 %v414_v17 }
  0x77   :  { %v479_v45 = vunpack.c.l.b16 %v415_v31  ;;  %v480_v36 = vunpack.c.l.b16 %v416_v48  ;;  %v481_v3 = vunpack.c.l.b16 %v417_v54  ;;  %v482_v33 = vunpack.c.l.b16 %v418_v60 }
  0x78   :  { %v483_v10 = vunpack.c.l.b16 %v419_v5  ;;  %v484_v39 = vunpack.c.l.b16 %v420_v7  ;;  %v485_v4 = vunpack.c.l.b16 %v421_v23  ;;  %v486_v6 = vunpack.c.l.b16 %v422_v51 }
  0x79   :  { %v487_v52 = vunpack.c.l.b16 %v423_v42  ;;  %v488_v41 = vunpack.c.l.b16 %v424_v61  ;;  %v490_v49 = vsel %vm489_vm1, %v458_v40, %v457_v9  ;;  %v503_v13 = vsel %vm489_vm1, %v466_v34, %v465_v16 }
  0x7a   :  { %v492_v22 = vsel %vm491_vm2, %v459_v58, %v490_v49  ;;  %v510_v28 = vsel %vm489_vm1, %v474_v27, %v473_v0  ;;  %v517_v12 = vsel %vm489_vm1, %v482_v33, %v481_v3  ;;  %v504_v37 = vsel %vm491_vm2, %v467_v15, %v503_v13 }
  0x7b   :  { %v494_v38 = vsel %vm493_vm3, %v460_v19, %v492_v22  ;;  %v511_v8 = vsel %vm491_vm2, %v475_v50, %v510_v28  ;;  %v518_v21 = vsel %vm491_vm2, %v483_v10, %v517_v12  ;;  %v505_v53 = vsel %vm493_vm3, %v468_v29, %v504_v37 }
  0x7c   :  { %v496_v2 = vsel %vm495_vm4, %v461_v24, %v494_v38  ;;  %v512_v30 = vsel %vm493_vm3, %v476_v46, %v511_v8  ;;  %v519_v55 = vsel %vm493_vm3, %v484_v39, %v518_v21  ;;  %v506_v14 = vsel %vm495_vm4, %v469_v47, %v505_v53 }
  0x7d   :  { %v498_v1 = vsel %vm497_vm5, %v462_v56, %v496_v2  ;;  %v513_v25 = vsel %vm495_vm4, %v477_v63, %v512_v30  ;;  %v520_v20 = vsel %vm495_vm4, %v485_v4, %v519_v55  ;;  %v507_v59 = vsel %vm497_vm5, %v470_v18, %v506_v14 }
  0x7e   :  { %v500_v26 = vsel %vm499_vm6, %v463_v44, %v498_v1  ;;  %v514_v35 = vsel %vm497_vm5, %v478_v11, %v513_v25  ;;  %v521_v32 = vsel %vm497_vm5, %v486_v6, %v520_v20  ;;  %v508_v31 = vsel %vm499_vm6, %v471_v62, %v507_v59 }
  0x7f   :  { %v502_v17 = vsel %vm501_vm7, %v464_v57, %v500_v26  ;;  %v515_v48 = vsel %vm499_vm6, %v479_v45, %v514_v35  ;;  %v522_v54 = vsel %vm499_vm6, %v487_v52, %v521_v32  ;;  %v509_v60 = vsel %vm501_vm7, %v472_v43, %v508_v31 }
  0x80   :  { %v516_v5 = vsel %vm501_vm7, %v480_v36, %v515_v48  ;;  %v523_v7 = vsel %vm501_vm7, %v488_v41, %v522_v54  ;;  %v524_v23 = vpack.c.b16 %v502_v17, %v502_v17  ;;  %v525_v51 = vpack.c.b16 %v509_v60, %v509_v60 }
  0x81   :  { %v526_v42 = vpack.c.b16 %v516_v5, %v516_v5  ;;  %v527_v61 = vpack.c.b16 %v523_v7, %v523_v7 }
  0x82   :  { %532 = vst [vmem:[%s1239_s1] sm:$0xf] %v524_v23 }
  0x83   :  { %533 = vst [vmem:[%s1239_s1 + $0x4] sm:$0xf] %v525_v51 }
  0x84   :  { %534 = vst [vmem:[%s1239_s1 + $0x8] sm:$0xf] %v526_v42 }
  0x85   :  { %535 = vst [vmem:[%s1239_s1 + $0xc] sm:$0xf] %v527_v61 }

// kernel: resnet_forward.13
= control target key start
LH: loop header
LB: loop body
LE: loop exit
PB: predicated region body
PF: predicated region fallthrough
CT: control target
= control target key end

     0   :  { %s1058_s1 = inlined_call_operand.vmem [shape: bf16[256,128], index: 1, kind: input, shape index: {}]   ;;  %s1059_s0 = inlined_call_operand.vmem [shape: bf16[128,256], index: 0, kind: input, shape index: {}]   ;;  %s1060_s2 = inlined_call_operand.vmem [shape: f32[1,128], index: 2, kind: input, shape index: {}]   ;;  %s1061_s3 = inlined_call_operand.vmem [shape: f32[1,128], index: 3, kind: input, shape index: {}]   ;;  %s1062_s4 = inlined_call_operand.vmem [shape: bf16[128,128], index: 4, kind: output, shape index: {}]  }
   0x1   :  { %v687_v0 = vld [vmem:[%s1058_s1 + $0x38] sm:$0xff]  ;;  %v686_v2 = vld [vmem:[%s1058_s1 + $0x30] sm:$0xff]  ;;  %v685_v4 = vld [vmem:[%s1058_s1 + $0x28] sm:$0xff] }
   0x2   :  { %v695_v1 = vld [vmem:[%s1058_s1 + $0x78] sm:$0xff]  ;;  %241 = vmatpush.bf16.msra.mxu0 %v687_v0  ;;  %v694_v3 = vld [vmem:[%s1058_s1 + $0x70] sm:$0xff]  ;;  %743 = vmatpush.bf16.msra.mxu2 %v687_v0  ;;  %v693_v5 = vld [vmem:[%s1058_s1 + $0x68] sm:$0xff] }
   0x3   :  { %290 = vmatpush.bf16.msra.mxu1 %v695_v1  ;;  %751 = vmatpush.bf16.msra.mxu3 %v695_v1  ;;  %v684_v6 = vld [vmem:[%s1058_s1 + $0x20] sm:$0xff]  ;;  %v683_v8 = vld [vmem:[%s1058_s1 + $0x18] sm:$0xff]  ;;  %v682_v10 = vld [vmem:[%s1058_s1 + $0x10] sm:$0xff] }
   0x4   :  { %v692_v7 = vld [vmem:[%s1058_s1 + $0x60] sm:$0xff]  ;;  %v691_v9 = vld [vmem:[%s1058_s1 + $0x58] sm:$0xff]  ;;  %v690_v11 = vld [vmem:[%s1058_s1 + $0x50] sm:$0xff] }
   0x5   :  { %v681_v12 = vld [vmem:[%s1058_s1 + $0x8] sm:$0xff]  ;;  %v680_v14 = vld [vmem:[%s1058_s1] sm:$0xff]  ;;  %v546_v28 = vld [vmem:[%s1059_s0 + $0x10] sm:$0xf] }
   0x6   :  { %242 = vmatpush.bf16.msra.mxu0 %v686_v2  ;;  %744 = vmatpush.bf16.msra.mxu2 %v686_v2  ;;  %v689_v13 = vld [vmem:[%s1058_s1 + $0x48] sm:$0xff]  ;;  %v688_v15 = vld [vmem:[%s1058_s1 + $0x40] sm:$0xff]  ;;  %v667_v29 = vld [vmem:[%s1059_s0 + $0x14] sm:$0xf0] }
   0x7   :  { %291 = vmatpush.bf16.msra.mxu1 %v694_v3  ;;  %752 = vmatpush.bf16.msra.mxu3 %v694_v3  ;;  %v538_v16 = vld [vmem:[%s1059_s0] sm:$0xf]  ;;  %v665_v17 = vld [vmem:[%s1059_s0 + $0x4] sm:$0xf0]  ;;  %v664_v18 = vld [vmem:[%s1059_s0 + $0x4] sm:$0xf]  ;;  %v547_v36 = vor.u32 %v667_v29, %v546_v28 }
   0x8   :  { %v540_v19 = vld [vmem:[%s1059_s0 + $0x8] sm:$0xf0]  ;;  %v570_v20 = vld [vmem:[%s1059_s0 + $0x40] sm:$0xf]  ;;  %v673_v21 = vld [vmem:[%s1059_s0 + $0x44] sm:$0xf0]  ;;  %v539_v24 = vor.u32 %v665_v17, %v538_v16 }
   0x9   :  { %v672_v22 = vld [vmem:[%s1059_s0 + $0x44] sm:$0xf]  ;;  %v572_v23 = vld [vmem:[%s1059_s0 + $0x48] sm:$0xf0]  ;;  %v543_v25 = vor.u32 %v664_v18, %v540_v19  ;;  %v571_v26 = vor.u32 %v673_v21, %v570_v20  ;;  %v666_v30 = vld [vmem:[%s1059_s0 + $0x14] sm:$0xf] }
   0xa   :  { %243 = vmatpush.bf16.msra.mxu0 %v685_v4  ;;  %745 = vmatpush.bf16.msra.mxu2 %v685_v4  ;;  %v575_v27 = vor.u32 %v672_v22, %v572_v23  ;;  %v548_v31 = vld [vmem:[%s1059_s0 + $0x18] sm:$0xf0]  ;;  %v578_v32 = vld [vmem:[%s1059_s0 + $0x50] sm:$0xf]  ;;  %v675_v33 = vld [vmem:[%s1059_s0 + $0x54] sm:$0xf0] }
   0xb   :  { %292 = vmatpush.bf16.msra.mxu1 %v693_v5  ;;  %753 = vmatpush.bf16.msra.mxu3 %v693_v5  ;;  %v674_v34 = vld [vmem:[%s1059_s0 + $0x54] sm:$0xf]  ;;  %v580_v35 = vld [vmem:[%s1059_s0 + $0x58] sm:$0xf0]  ;;  %v551_v37 = vor.u32 %v666_v30, %v548_v31  ;;  %v579_v38 = vor.u32 %v675_v33, %v578_v32  ;;  %v554_v40 = vld [vmem:[%s1059_s0 + $0x20] sm:$0xf] }
   0xc   :  { %v583_v39 = vor.u32 %v674_v34, %v580_v35  ;;  %v669_v41 = vld [vmem:[%s1059_s0 + $0x24] sm:$0xf0]  ;;  %v668_v42 = vld [vmem:[%s1059_s0 + $0x24] sm:$0xf]  ;;  %v556_v43 = vld [vmem:[%s1059_s0 + $0x28] sm:$0xf0] }
   0xd   :  { %v586_v44 = vld [vmem:[%s1059_s0 + $0x60] sm:$0xf]  ;;  %v677_v45 = vld [vmem:[%s1059_s0 + $0x64] sm:$0xf0]  ;;  %v676_v46 = vld [vmem:[%s1059_s0 + $0x64] sm:$0xf]  ;;  %v555_v48 = vor.u32 %v669_v41, %v554_v40  ;;  %v559_v49 = vor.u32 %v668_v42, %v556_v43 }
   0xe   :  { %244 = vmatpush.bf16.msra.mxu0 %v684_v6  ;;  %746 = vmatpush.bf16.msra.mxu2 %v684_v6  ;;  %v588_v47 = vld [vmem:[%s1059_s0 + $0x68] sm:$0xf0]  ;;  %v587_v50 = vor.u32 %v677_v45, %v586_v44  ;;  %v562_v52 = vld [vmem:[%s1059_s0 + $0x30] sm:$0xf]  ;;  %v671_v53 = vld [vmem:[%s1059_s0 + $0x34] sm:$0xf0] }
   0xf   :  { %293 = vmatpush.bf16.msra.mxu1 %v692_v7  ;;  %754 = vmatpush.bf16.msra.mxu3 %v692_v7  ;;  %v591_v51 = vor.u32 %v676_v46, %v588_v47  ;;  %v670_v54 = vld [vmem:[%s1059_s0 + $0x34] sm:$0xf]  ;;  %v564_v55 = vld [vmem:[%s1059_s0 + $0x38] sm:$0xf0]  ;;  %v594_v56 = vld [vmem:[%s1059_s0 + $0x70] sm:$0xf]  ;;  %v563_v60 = vor.u32 %v671_v53, %v562_v52 }
  0x10   :  { %v679_v57 = vld [vmem:[%s1059_s0 + $0x74] sm:$0xf0]  ;;  %v678_v58 = vld [vmem:[%s1059_s0 + $0x74] sm:$0xf]  ;;  %v596_v59 = vld [vmem:[%s1059_s0 + $0x78] sm:$0xf0]  ;;  %v567_v61 = vor.u32 %v670_v54, %v564_v55 }
  0x11   :  { %v595_v62 = vor.u32 %v679_v57, %v594_v56  ;;  %v599_v63 = vor.u32 %v678_v58, %v596_v59 }
  0x12   :  { %245 = vmatpush.bf16.msra.mxu0 %v683_v8  ;;  %747 = vmatpush.bf16.msra.mxu2 %v683_v8 }
  0x13   :  { %294 = vmatpush.bf16.msra.mxu1 %v691_v9  ;;  %755 = vmatpush.bf16.msra.mxu3 %v691_v9 }
  0x16   :  { %246 = vmatpush.bf16.msra.mxu0 %v682_v10  ;;  %748 = vmatpush.bf16.msra.mxu2 %v682_v10 }
  0x17   :  { %295 = vmatpush.bf16.msra.mxu1 %v690_v11  ;;  %756 = vmatpush.bf16.msra.mxu3 %v690_v11 }
  0x1a   :  { %247 = vmatpush.bf16.msra.mxu0 %v681_v12  ;;  %749 = vmatpush.bf16.msra.mxu2 %v681_v12 }
  0x1b   :  { %296 = vmatpush.bf16.msra.mxu1 %v689_v13  ;;  %757 = vmatpush.bf16.msra.mxu3 %v689_v13 }
  0x1e   :  { %248 = vmatpush.bf16.msra.mxu0 %v680_v14  ;;  %750 = vmatpush.bf16.msra.mxu2 %v680_v14 }
  0x1f   :  { %297 = vmatpush.bf16.msra.mxu1 %v688_v15  ;;  %758 = vmatpush.bf16.msra.mxu3 %v688_v15 }
  0x21   :  { %249 = vmatmul.bf16.vlgmr.msra.gmra.mxu0 %v539_v24  ;;  %269 = vmatmul.bf16.vlgmr.msra.gmra.mxu2 %v571_v26 }
  0x22   :  { %298 = vmatmul.bf16.vlgmr.msra.gmra.mxu1 %v543_v25  ;;  %318 = vmatmul.bf16.vlgmr.msra.gmra.mxu3 %v575_v27 }
  0x31   :  { %254 = vmatmul.bf16.gmra.mxu0 %v547_v36  ;;  %274 = vmatmul.bf16.gmra.mxu2 %v579_v38 }
  0x32   :  { %303 = vmatmul.bf16.gmra.mxu1 %v551_v37  ;;  %323 = vmatmul.bf16.gmra.mxu3 %v583_v39 }
  0x41   :  { %259 = vmatmul.bf16.gmra.mxu0 %v555_v48  ;;  %279 = vmatmul.bf16.gmra.mxu2 %v587_v50 }
  0x42   :  { %308 = vmatmul.bf16.gmra.mxu1 %v559_v49  ;;  %328 = vmatmul.bf16.gmra.mxu3 %v591_v51 }
  0x51   :  { %264 = vmatmul.bf16.gmra.mxu0 %v563_v60  ;;  %284 = vmatmul.bf16.gmra.mxu2 %v595_v62 }
  0x52   :  { %313 = vmatmul.bf16.gmra.mxu1 %v567_v61  ;;  %333 = vmatmul.bf16.gmra.mxu3 %v599_v63 }
  0x9e   :  { %v250_v0 = vpop.f32.mrf.mxu0 }
  0x9f   :  { %v299_v1 = vpop.f32.mrf.mxu1 }
  0xa0   :  { %v934_v23 = vadd.f32 %v299_v1, %v250_v0 }
  0xa2   :  { %v363_v27 = vmul.f32 %v934_v23, %v934_v23 }
  0xa4   :  { %v270_v2 = vpop.f32.mrf.mxu2 }
  0xa5   :  { %v319_v3 = vpop.f32.mrf.mxu3 }
  0xa6   :  { %v252_v4 = vpop.f32.mrf.mxu0  ;;  %v966_v51 = vadd.f32 %v319_v3, %v270_v2 }
  0xa7   :  { %v301_v5 = vpop.f32.mrf.mxu1 }
  0xa8   :  { %v932_v22 = vadd.f32 %v301_v5, %v252_v4  ;;  %v371_v61 = vmul.f32 %v966_v51, %v966_v51 }
  0xaa   :  { %v364_v25 = vmul.f32 %v932_v22, %v932_v22  ;;  %v341_v28 = vadd.f32 %v932_v22, %v934_v23 }
  0xac   :  { %v272_v6 = vpop.f32.mrf.mxu2  ;;  %v379_v35 = vadd.f32 %v364_v25, %v363_v27 }
  0xad   :  { %v321_v7 = vpop.f32.mrf.mxu3 }
  0xae   :  { %v255_v8 = vpop.f32.mrf.mxu0  ;;  %v971_v57 = vadd.f32 %v321_v7, %v272_v6 }
  0xaf   :  { %v304_v9 = vpop.f32.mrf.mxu1 }
  0xb0   :  { %v936_v24 = vadd.f32 %v304_v9, %v255_v8  ;;  %v372_v1 = vmul.f32 %v971_v57, %v971_v57 }
  0xb2   :  { %v365_v29 = vmul.f32 %v936_v24, %v936_v24  ;;  %v342_v36 = vadd.f32 %v341_v28, %v936_v24 }
  0xb4   :  { %v275_v10 = vpop.f32.mrf.mxu2  ;;  %v380_v39 = vadd.f32 %v379_v35, %v365_v29 }
  0xb5   :  { %v324_v11 = vpop.f32.mrf.mxu3 }
  0xb6   :  { %v257_v12 = vpop.f32.mrf.mxu0  ;;  %v978_v62 = vadd.f32 %v324_v11, %v275_v10 }
  0xb7   :  { %v306_v13 = vpop.f32.mrf.mxu1 }
  0xb8   :  { %v940_v26 = vadd.f32 %v306_v13, %v257_v12  ;;  %v373_v5 = vmul.f32 %v978_v62, %v978_v62 }
  0xba   :  { %v366_v37 = vmul.f32 %v940_v26, %v940_v26  ;;  %v343_v40 = vadd.f32 %v342_v36, %v940_v26 }
  0xbc   :  { %v277_v14 = vpop.f32.mrf.mxu2  ;;  %v381_v43 = vadd.f32 %v380_v39, %v366_v37 }
  0xbd   :  { %v326_v15 = vpop.f32.mrf.mxu3 }
  0xbe   :  { %v260_v16 = vpop.f32.mrf.mxu0  ;;  %v983_v2 = vadd.f32 %v326_v15, %v277_v14 }
  0xbf   :  { %v309_v17 = vpop.f32.mrf.mxu1 }
  0xc0   :  { %v948_v30 = vadd.f32 %v309_v17, %v260_v16  ;;  %v374_v9 = vmul.f32 %v983_v2, %v983_v2 }
  0xc2   :  { %v367_v41 = vmul.f32 %v948_v30, %v948_v30  ;;  %v344_v44 = vadd.f32 %v343_v40, %v948_v30 }
  0xc4   :  { %v280_v18 = vpop.f32.mrf.mxu2  ;;  %v382_v46 = vadd.f32 %v381_v43, %v367_v41 }
  0xc5   :  { %v329_v19 = vpop.f32.mrf.mxu3 }
  0xc6   :  { %v262_v20 = vpop.f32.mrf.mxu0  ;;  %v988_v6 = vadd.f32 %v329_v19, %v280_v18 }
  0xc7   :  { %v311_v21 = vpop.f32.mrf.mxu1 }
  0xc8   :  { %v953_v38 = vadd.f32 %v311_v21, %v262_v20  ;;  %v375_v15 = vmul.f32 %v988_v6, %v988_v6 }
  0xca   :  { %v368_v45 = vmul.f32 %v953_v38, %v953_v38  ;;  %v345_v47 = vadd.f32 %v344_v44, %v953_v38 }
  0xcc   :  { %v282_v31 = vpop.f32.mrf.mxu2  ;;  %v383_v52 = vadd.f32 %v382_v46, %v368_v45 }
  0xcd   :  { %v331_v32 = vpop.f32.mrf.mxu3 }
  0xce   :  { %v265_v33 = vpop.f32.mrf.mxu0  ;;  %v993_v10 = vadd.f32 %v331_v32, %v282_v31 }
  0xcf   :  { %v314_v34 = vpop.f32.mrf.mxu1 }
  0xd0   :  { %v958_v42 = vadd.f32 %v314_v34, %v265_v33  ;;  %v376_v19 = vmul.f32 %v993_v10, %v993_v10 }
  0xd2   :  { %v369_v48 = vmul.f32 %v958_v42, %v958_v42  ;;  %v346_v53 = vadd.f32 %v345_v47, %v958_v42 }
  0xd4   :  { %v285_v55 = vpop.f32.mrf.mxu2  ;;  %v384_v58 = vadd.f32 %v383_v52, %v369_v48 }
  0xd5   :  { %v334_v56 = vpop.f32.mrf.mxu3 }
  0xd6   :  { %v267_v49 = vpop.f32.mrf.mxu0  ;;  %v998_v16 = vadd.f32 %v334_v56, %v285_v55 }
  0xd7   :  { %v316_v50 = vpop.f32.mrf.mxu1 }
  0xd8   :  { %v969_v54 = vadd.f32 %v316_v50, %v267_v49  ;;  %v377_v28 = vmul.f32 %v998_v16, %v998_v16 }
  0xda   :  { %v347_v59 = vadd.f32 %v346_v53, %v969_v54  ;;  %v370_v60 = vmul.f32 %v969_v54, %v969_v54 }
  0xdc   :  { %v348_v63 = vadd.f32 %v347_v59, %v966_v51  ;;  %v385_v0 = vadd.f32 %v384_v58, %v370_v60  ;;  %v287_v13 = vpop.f32.mrf.mxu2 }
  0xdd   :  { %v336_v14 = vpop.f32.mrf.mxu3 }
  0xde   :  { %v349_v3 = vadd.f32 %v348_v63, %v971_v57  ;;  %v386_v4 = vadd.f32 %v385_v0, %v371_v61  ;;  %v1004_v25 = vadd.f32 %v336_v14, %v287_v13 }
  0xe0   :  { %v350_v7 = vadd.f32 %v349_v3, %v978_v62  ;;  %v387_v8 = vadd.f32 %v386_v4, %v372_v1  ;;  %v378_v33 = vmul.f32 %v1004_v25, %v1004_v25 }
  0xe2   :  { %v388_v11 = vadd.f32 %v387_v8, %v373_v5  ;;  %v351_v12 = vadd.f32 %v350_v7, %v983_v2 }
  0xe4   :  { %v352_v17 = vadd.f32 %v351_v12, %v988_v6  ;;  %v389_v18 = vadd.f32 %v388_v11, %v374_v9 }
  0xe6   :  { %v353_v20 = vadd.f32 %v352_v17, %v993_v10  ;;  %v390_v21 = vadd.f32 %v389_v18, %v375_v15 }
  0xe8   :  { %v354_v27 = vadd.f32 %v353_v20, %v998_v16  ;;  %v391_v29 = vadd.f32 %v390_v21, %v376_v19 }
  0xea   :  { %v392_v31 = vadd.f32 %v391_v29, %v377_v28  ;;  %v355_v32 = vadd.f32 %v354_v27, %v1004_v25 }
  0xec   :  { %v356_v34 = vrot.slane %v355_v32, 4  ;;  %v393_v35 = vadd.f32 %v392_v31, %v378_v33 }
  0xee   :  { %v357_v36 = vadd.f32 %v356_v34, %v355_v32  ;;  %v394_v37 = vrot.slane %v393_v35, 4  ;;  %v760_v32 = vld [vmem:[%s1061_s3] ss:$0 sm:$0xff] }
  0xf0   :  { %v358_v39 = vrot.slane %v357_v36, 2  ;;  %v395_v40 = vadd.f32 %v394_v37, %v393_v35 }
  0xf2   :  { %v359_v41 = vadd.f32 %v358_v39, %v357_v36  ;;  %v396_v43 = vrot.slane %v395_v40, 2 }
  0xf4   :  { %v360_v44 = vrot.slane %v359_v41, 1  ;;  %v397_v45 = vadd.f32 %v396_v43, %v395_v40 }
  0xf6   :  { %v361_v46 = vadd.f32 %v360_v44, %v359_v41  ;;  %v398_v47 = vrot.slane %v397_v45, 1 }
  0xf8   :  { %v362_v48 = vmul.f32 0.0078125, %v361_v46  ;;  %v399_v49 = vadd.f32 %v398_v47, %v397_v45 }
  0xfa   :  { %v400_v50 = vmul.f32 0.0078125, %v399_v49  ;;  %v401_v52 = vmul.f32 %v362_v48, %v362_v48  ;;  %v403_v61 = vsub.f32 %v934_v23, %v362_v48  ;;  %v404_v63 = vsub.f32 %v932_v22, %v362_v48 }
  0xfb   :  { %v405_v0 = vsub.f32 %v936_v24, %v362_v48  ;;  %v406_v3 = vsub.f32 %v940_v26, %v362_v48  ;;  %v407_v4 = vsub.f32 %v948_v30, %v362_v48  ;;  %v408_v5 = vsub.f32 %v953_v38, %v362_v48 }
  0xfc   :  { %v402_v53 = vsub.f32 %v400_v50, %v401_v52  ;;  %v409_v7 = vsub.f32 %v958_v42, %v362_v48  ;;  %v410_v8 = vsub.f32 %v969_v54, %v362_v48  ;;  %v411_v9 = vsub.f32 %v966_v51, %v362_v48 }
  0xfd   :  { %v412_v22 = vsub.f32 %v971_v57, %v362_v48  ;;  %v413_v23 = vsub.f32 %v978_v62, %v362_v48  ;;  %v414_v24 = vsub.f32 %v983_v2, %v362_v48  ;;  %v415_v26 = vsub.f32 %v988_v6, %v362_v48  ;;  %v759_v57 = vld [vmem:[%s1060_s2] ss:$0 sm:$0xff] }
  0xfe   :  { %v419_v55 = vadd.f32 1e-05, %v402_v53  ;;  %v416_v30 = vsub.f32 %v993_v10, %v362_v48  ;;  %v417_v38 = vsub.f32 %v998_v16, %v362_v48  ;;  %v418_v42 = vsub.f32 %v1004_v25, %v362_v48 }
 0x100   :  { %761 = vrsqrt.f32 %v419_v55  ;;  %vm426_vm1 = vweird.f32 %v419_v55 }
 0x106   :  { %v762_v56 = vpop.eup %761 }
 0x107   :  { %v421_v58 = vmul.f32 %v762_v56, %v419_v55  ;;  %vm427_vm0 = vweird.f32 %v762_v56 }
 0x108   :  { %vm428_vm2 = vmor %vm426_vm1, %vm427_vm0 }
 0x109   :  { %v422_v59 = vmul.f32 %v762_v56, %v421_v58 }
 0x10b   :  { %v423_v60 = vmul.f32 0.5, %v422_v59 }
 0x10d   :  { %v424_v1 = vsub.f32 1.5, %v423_v60 }
 0x10f   :  { %v425_v11 = vmul.f32 %v762_v56, %v424_v1 }
 0x111   :  { %v429_v54 = vsel %vm428_vm2, %v762_v56, %v425_v11 }
 0x112   :  { %v430_v12 = vmul.f32 %v429_v54, %v403_v61  ;;  %v431_v51 = vmul.f32 %v429_v54, %v404_v63  ;;  %v432_v13 = vmul.f32 %v429_v54, %v405_v0  ;;  %v433_v14 = vmul.f32 %v429_v54, %v406_v3 }
 0x113   :  { %v434_v62 = vmul.f32 %v429_v54, %v407_v4  ;;  %v435_v2 = vmul.f32 %v429_v54, %v408_v5  ;;  %v436_v15 = vmul.f32 %v429_v54, %v409_v7  ;;  %v437_v6 = vmul.f32 %v429_v54, %v410_v8 }
 0x114   :  { %v438_v17 = vmul.f32 %v429_v54, %v411_v9  ;;  %v439_v18 = vmul.f32 %v429_v54, %v412_v22  ;;  %v440_v10 = vmul.f32 %v429_v54, %v413_v23  ;;  %v441_v19 = vmul.f32 %v429_v54, %v414_v24 }
 0x115   :  { %v442_v16 = vmul.f32 %v429_v54, %v415_v26  ;;  %v443_v20 = vmul.f32 %v429_v54, %v416_v30  ;;  %v444_v21 = vmul.f32 %v429_v54, %v417_v38  ;;  %v445_v25 = vmul.f32 %v429_v54, %v418_v42 }
 0x116   :  { %v449_v27 = vmul.f32 %v759_v57, %v430_v12  ;;  %v450_v28 = vmul.f32 %v759_v57, %v431_v51  ;;  %v451_v29 = vmul.f32 %v759_v57, %v432_v13  ;;  %v452_v31 = vmul.f32 %v759_v57, %v433_v14 }
 0x117   :  { %v453_v33 = vmul.f32 %v759_v57, %v434_v62  ;;  %v454_v34 = vmul.f32 %v759_v57, %v435_v2  ;;  %v455_v35 = vmul.f32 %v759_v57, %v436_v15  ;;  %v456_v36 = vmul.f32 %v759_v57, %v437_v6 }
 0x118   :  { %v457_v37 = vmul.f32 %v759_v57, %v438_v17  ;;  %v458_v39 = vmul.f32 %v759_v57, %v439_v18  ;;  %v459_v40 = vmul.f32 %v759_v57, %v440_v10  ;;  %v460_v41 = vmul.f32 %v759_v57, %v441_v19 }
 0x119   :  { %v461_v43 = vmul.f32 %v759_v57, %v442_v16  ;;  %v462_v44 = vmul.f32 %v759_v57, %v443_v20  ;;  %v463_v45 = vmul.f32 %v759_v57, %v444_v21  ;;  %v464_v46 = vmul.f32 %v759_v57, %v445_v25 }
 0x11a   :  { %v468_v47 = vadd.f32 %v760_v32, %v449_v27  ;;  %v469_v48 = vadd.f32 %v760_v32, %v450_v28  ;;  %v470_v49 = vadd.f32 %v760_v32, %v451_v29  ;;  %v471_v50 = vadd.f32 %v760_v32, %v452_v31 }
 0x11b   :  { %v472_v52 = vadd.f32 %v760_v32, %v453_v33  ;;  %v473_v53 = vadd.f32 %v760_v32, %v454_v34  ;;  %v474_v55 = vadd.f32 %v760_v32, %v455_v35  ;;  %v475_v56 = vadd.f32 %v760_v32, %v456_v36 }
 0x11c   :  { %v476_v58 = vadd.f32 %v760_v32, %v457_v37  ;;  %v477_v59 = vadd.f32 %v760_v32, %v458_v39  ;;  %v478_v60 = vadd.f32 %v760_v32, %v459_v40  ;;  %v479_v61 = vadd.f32 %v760_v32, %v460_v41 }
 0x11d   :  { %v480_v63 = vadd.f32 %v760_v32, %v461_v43  ;;  %v481_v0 = vadd.f32 %v760_v32, %v462_v44  ;;  %v482_v1 = vadd.f32 %v760_v32, %v463_v45  ;;  %v483_v3 = vadd.f32 %v760_v32, %v464_v46 }
 0x11e   :  { %v484_v4 = vmax.f32 %v468_v47, 0.0  ;;  %v485_v5 = vmax.f32 %v469_v48, 0.0  ;;  %v486_v7 = vmax.f32 %v470_v49, 0.0  ;;  %v487_v8 = vmax.f32 %v471_v50, 0.0 }
 0x11f   :  { %v488_v9 = vmax.f32 %v472_v52, 0.0  ;;  %v489_v11 = vmax.f32 %v473_v53, 0.0  ;;  %v490_v22 = vmax.f32 %v474_v55, 0.0  ;;  %v491_v23 = vmax.f32 %v475_v56, 0.0 }
 0x120   :  { %v492_v24 = vmax.f32 %v476_v58, 0.0  ;;  %v493_v26 = vmax.f32 %v477_v59, 0.0  ;;  %v494_v30 = vmax.f32 %v478_v60, 0.0  ;;  %v495_v38 = vmax.f32 %v479_v61, 0.0 }
 0x121   :  { %v496_v42 = vmax.f32 %v480_v63, 0.0  ;;  %v497_v54 = vmax.f32 %v481_v0, 0.0  ;;  %v699_v12 = vpack.c.bf16 %v485_v5, %v484_v4  ;;  %v704_v51 = vpack.c.bf16 %v487_v8, %v486_v7 }
 0x122   :  { %v709_v13 = vpack.c.bf16 %v489_v11, %v488_v9  ;;  %v498_v14 = vmax.f32 %v482_v1, 0.0  ;;  %v499_v57 = vmax.f32 %v483_v3, 0.0  ;;  %v714_v62 = vpack.c.bf16 %v491_v23, %v490_v22 }
 0x123   :  { %700 = vst [vmem:[%s1062_s4] sm:$0xff] %v699_v12   ;;  %v719_v2 = vpack.c.bf16 %v493_v26, %v492_v24  ;;  %v724_v15 = vpack.c.bf16 %v495_v38, %v494_v30  ;;  %v729_v6 = vpack.c.bf16 %v497_v54, %v496_v42 }
 0x124   :  { %736 = vst [vmem:[%s1062_s4 + $0x8] sm:$0xff] %v704_v51   ;;  %v734_v17 = vpack.c.bf16 %v499_v57, %v498_v14 }
 0x125   :  { %737 = vst [vmem:[%s1062_s4 + $0x10] sm:$0xff] %v709_v13  }
 0x126   :  { %738 = vst [vmem:[%s1062_s4 + $0x18] sm:$0xff] %v714_v62  }
 0x127   :  { %739 = vst [vmem:[%s1062_s4 + $0x20] sm:$0xff] %v719_v2  }
 0x128   :  { %740 = vst [vmem:[%s1062_s4 + $0x28] sm:$0xff] %v724_v15  }
 0x129   :  { %741 = vst [vmem:[%s1062_s4 + $0x30] sm:$0xff] %v729_v6  }
 0x12a   :  { %742 = vst [vmem:[%s1062_s4 + $0x38] sm:$0xff] %v734_v17  }

// kernel: resnet_forward.15
= control target key start
LH: loop header
LB: loop body
LE: loop exit
PB: predicated region body
PF: predicated region fallthrough
CT: control target
= control target key end

     0   :  { %s1787_s1 = inlined_call_operand.vmem [shape: bf16[1152,128], index: 1, kind: input, shape index: {}]   ;;  %s1788_s0 = inlined_call_operand.vmem [shape: bf16[32,1152], index: 0, kind: input, shape index: {}]   ;;  %s1789_s2 = inlined_call_operand.vmem [shape: f32[1,128], index: 2, kind: input, shape index: {}]   ;;  %s1790_s3 = inlined_call_operand.vmem [shape: f32[1,128], index: 3, kind: input, shape index: {}]   ;;  %s1791_s4 = inlined_call_operand.vmem [shape: bf16[32,128], index: 4, kind: output, shape index: {}]  }
   0x1   :  { %v1338_v0 = vld [vmem:[%s1787_s1 + $0x38] sm:$0xff]  ;;  %v1337_v4 = vld [vmem:[%s1787_s1 + $0x30] sm:$0xff]  ;;  %v1336_v8 = vld [vmem:[%s1787_s1 + $0x28] sm:$0xff] }
   0x2   :  { %v1346_v1 = vld [vmem:[%s1787_s1 + $0x78] sm:$0xff]  ;;  %705 = vmatpush.bf16.msra.mxu0 %v1338_v0  ;;  %v1345_v5 = vld [vmem:[%s1787_s1 + $0x70] sm:$0xff]  ;;  %v1344_v9 = vld [vmem:[%s1787_s1 + $0x68] sm:$0xff] }
   0x3   :  { %v1354_v2 = vld [vmem:[%s1787_s1 + $0xb8] sm:$0xff]  ;;  %724 = vmatpush.bf16.msra.mxu1 %v1346_v1  ;;  %v1353_v6 = vld [vmem:[%s1787_s1 + $0xb0] sm:$0xff]  ;;  %v1352_v10 = vld [vmem:[%s1787_s1 + $0xa8] sm:$0xff] }
   0x4   :  { %v1362_v3 = vld [vmem:[%s1787_s1 + $0xf8] sm:$0xff]  ;;  %743 = vmatpush.bf16.msra.mxu2 %v1354_v2  ;;  %v1361_v7 = vld [vmem:[%s1787_s1 + $0xf0] sm:$0xff]  ;;  %v1360_v11 = vld [vmem:[%s1787_s1 + $0xe8] sm:$0xff] }
   0x5   :  { %762 = vmatpush.bf16.msra.mxu3 %v1362_v3  ;;  %v1335_v12 = vld [vmem:[%s1787_s1 + $0x20] sm:$0xff]  ;;  %v1334_v16 = vld [vmem:[%s1787_s1 + $0x18] sm:$0xff]  ;;  %v1333_v20 = vld [vmem:[%s1787_s1 + $0x10] sm:$0xff] }
   0x6   :  { %706 = vmatpush.bf16.msra.mxu0 %v1337_v4  ;;  %v1343_v13 = vld [vmem:[%s1787_s1 + $0x60] sm:$0xff]  ;;  %v1342_v17 = vld [vmem:[%s1787_s1 + $0x58] sm:$0xff]  ;;  %v1341_v21 = vld [vmem:[%s1787_s1 + $0x50] sm:$0xff] }
   0x7   :  { %725 = vmatpush.bf16.msra.mxu1 %v1345_v5  ;;  %v1351_v14 = vld [vmem:[%s1787_s1 + $0xa0] sm:$0xff]  ;;  %v1350_v18 = vld [vmem:[%s1787_s1 + $0x98] sm:$0xff]  ;;  %v1349_v22 = vld [vmem:[%s1787_s1 + $0x90] sm:$0xff] }
   0x8   :  { %744 = vmatpush.bf16.msra.mxu2 %v1353_v6  ;;  %v1359_v15 = vld [vmem:[%s1787_s1 + $0xe0] sm:$0xff]  ;;  %v1358_v19 = vld [vmem:[%s1787_s1 + $0xd8] sm:$0xff]  ;;  %v1357_v23 = vld [vmem:[%s1787_s1 + $0xd0] sm:$0xff] }
   0x9   :  { %763 = vmatpush.bf16.msra.mxu3 %v1361_v7  ;;  %v1332_v24 = vld [vmem:[%s1787_s1 + $0x8] sm:$0xff]  ;;  %v1331_v28 = vld [vmem:[%s1787_s1] sm:$0xff]  ;;  %v965_v39 = vld [vmem:[%s1788_s0 + $0x2c] sm:$0xf0] }
   0xa   :  { %707 = vmatpush.bf16.msra.mxu0 %v1336_v8  ;;  %v1340_v25 = vld [vmem:[%s1787_s1 + $0x48] sm:$0xff]  ;;  %v1339_v29 = vld [vmem:[%s1787_s1 + $0x40] sm:$0xff]  ;;  %v1370_v40 = vld [vmem:[%s1787_s1 + $0x138] sm:$0xff] }
   0xb   :  { %726 = vmatpush.bf16.msra.mxu1 %v1344_v9  ;;  %v1348_v26 = vld [vmem:[%s1787_s1 + $0x88] sm:$0xff]  ;;  %v1347_v30 = vld [vmem:[%s1787_s1 + $0x80] sm:$0xff]  ;;  %v1378_v41 = vld [vmem:[%s1787_s1 + $0x178] sm:$0xff] }
   0xc   :  { %745 = vmatpush.bf16.msra.mxu2 %v1352_v10  ;;  %v1356_v27 = vld [vmem:[%s1787_s1 + $0xc8] sm:$0xff]  ;;  %v1355_v31 = vld [vmem:[%s1787_s1 + $0xc0] sm:$0xff]  ;;  %v1386_v46 = vld [vmem:[%s1787_s1 + $0x1b8] sm:$0xff] }
   0xd   :  { %764 = vmatpush.bf16.msra.mxu3 %v1360_v11  ;;  %v955_v32 = vld [vmem:[%s1788_s0] sm:$0xf]  ;;  %v1317_v33 = vld [vmem:[%s1788_s0 + $0x20] sm:$0xf0]  ;;  %v957_v35 = vld [vmem:[%s1788_s0 + $0x24] sm:$0xf0] }
   0xe   :  { %708 = vmatpush.bf16.msra.mxu0 %v1335_v12  ;;  %v1313_v34 = vld [vmem:[%s1788_s0 + $0x4] sm:$0xf]  ;;  %v963_v36 = vld [vmem:[%s1788_s0 + $0x8] sm:$0xf]  ;;  %v1318_v37 = vld [vmem:[%s1788_s0 + $0x28] sm:$0xf0]  ;;  %v956_v42 = vor.u32 %v1317_v33, %v955_v32 }
   0xf   :  { %727 = vmatpush.bf16.msra.mxu1 %v1343_v13  ;;  %v1314_v38 = vld [vmem:[%s1788_s0 + $0xc] sm:$0xf]  ;;  %v960_v43 = vor.u32 %v1313_v34, %v957_v35  ;;  %v964_v44 = vor.u32 %v1318_v37, %v963_v36  ;;  %v1394_v47 = vld [vmem:[%s1787_s1 + $0x1f8] sm:$0xff]  ;;  %v1369_v48 = vld [vmem:[%s1787_s1 + $0x130] sm:$0xff] }
  0x10   :  { %746 = vmatpush.bf16.msra.mxu2 %v1351_v14  ;;  %v968_v45 = vor.u32 %v1314_v38, %v965_v39  ;;  %v1377_v49 = vld [vmem:[%s1787_s1 + $0x170] sm:$0xff]  ;;  %v1368_v52 = vld [vmem:[%s1787_s1 + $0x128] sm:$0xff]  ;;  %v1367_v56 = vld [vmem:[%s1787_s1 + $0x120] sm:$0xff] }
  0x11   :  { %765 = vmatpush.bf16.msra.mxu3 %v1359_v15  ;;  %v1385_v50 = vld [vmem:[%s1787_s1 + $0x1b0] sm:$0xff]  ;;  %v1376_v53 = vld [vmem:[%s1787_s1 + $0x168] sm:$0xff]  ;;  %v1375_v57 = vld [vmem:[%s1787_s1 + $0x160] sm:$0xff] }
  0x12   :  { %709 = vmatpush.bf16.msra.mxu0 %v1334_v16  ;;  %v1393_v51 = vld [vmem:[%s1787_s1 + $0x1f0] sm:$0xff]  ;;  %v1384_v54 = vld [vmem:[%s1787_s1 + $0x1a8] sm:$0xff]  ;;  %v1383_v58 = vld [vmem:[%s1787_s1 + $0x1a0] sm:$0xff] }
  0x13   :  { %728 = vmatpush.bf16.msra.mxu1 %v1342_v17  ;;  %v1392_v55 = vld [vmem:[%s1787_s1 + $0x1e8] sm:$0xff]  ;;  %v1391_v59 = vld [vmem:[%s1787_s1 + $0x1e0] sm:$0xff]  ;;  %v993_v63 = vld [vmem:[%s1788_s0 + $0x6c] sm:$0xf0] }
  0x14   :  { %747 = vmatpush.bf16.msra.mxu2 %v1350_v18  ;;  %v991_v60 = vld [vmem:[%s1788_s0 + $0x48] sm:$0xf]  ;;  %v1326_v61 = vld [vmem:[%s1788_s0 + $0x68] sm:$0xf0]  ;;  %v999_v0 = vld [vmem:[%s1788_s0 + $0x50] sm:$0xf] }
  0x15   :  { %766 = vmatpush.bf16.msra.mxu3 %v1358_v19  ;;  %v1322_v62 = vld [vmem:[%s1788_s0 + $0x4c] sm:$0xf]  ;;  %v1327_v1 = vld [vmem:[%s1788_s0 + $0x70] sm:$0xf0]  ;;  %v1001_v3 = vld [vmem:[%s1788_s0 + $0x74] sm:$0xf0]  ;;  %v992_v6 = vor.u32 %v1326_v61, %v991_v60 }
  0x16   :  { %710 = vmatpush.bf16.msra.mxu0 %v1333_v20  ;;  %v1323_v2 = vld [vmem:[%s1788_s0 + $0x54] sm:$0xf]  ;;  %v1366_v4 = vld [vmem:[%s1787_s1 + $0x118] sm:$0xff]  ;;  %v996_v7 = vor.u32 %v1322_v62, %v993_v63  ;;  %v1000_v8 = vor.u32 %v1327_v1, %v999_v0  ;;  %v1364_v16 = vld [vmem:[%s1787_s1 + $0x108] sm:$0xff] }
  0x17   :  { %729 = vmatpush.bf16.msra.mxu1 %v1341_v21  ;;  %v1374_v5 = vld [vmem:[%s1787_s1 + $0x158] sm:$0xff]  ;;  %v1004_v9 = vor.u32 %v1323_v2, %v1001_v3  ;;  %v1365_v12 = vld [vmem:[%s1787_s1 + $0x110] sm:$0xff]  ;;  %v1372_v17 = vld [vmem:[%s1787_s1 + $0x148] sm:$0xff] }
  0x18   :  { %748 = vmatpush.bf16.msra.mxu2 %v1349_v22  ;;  %v1382_v10 = vld [vmem:[%s1787_s1 + $0x198] sm:$0xff]  ;;  %v1373_v13 = vld [vmem:[%s1787_s1 + $0x150] sm:$0xff]  ;;  %v1380_v18 = vld [vmem:[%s1787_s1 + $0x188] sm:$0xff] }
  0x19   :  { %767 = vmatpush.bf16.msra.mxu3 %v1357_v23  ;;  %v1390_v11 = vld [vmem:[%s1787_s1 + $0x1d8] sm:$0xff]  ;;  %v1381_v14 = vld [vmem:[%s1787_s1 + $0x190] sm:$0xff]  ;;  %v1388_v19 = vld [vmem:[%s1787_s1 + $0x1c8] sm:$0xff] }
  0x1a   :  { %711 = vmatpush.bf16.msra.mxu0 %v1332_v24  ;;  %v1389_v15 = vld [vmem:[%s1787_s1 + $0x1d0] sm:$0xff]  ;;  %v1363_v20 = vld [vmem:[%s1787_s1 + $0x100] sm:$0xff]  ;;  %v1400_v38 = vld [vmem:[%s1787_s1 + $0x228] sm:$0xff] }
  0x1b   :  { %730 = vmatpush.bf16.msra.mxu1 %v1340_v25  ;;  %v1371_v21 = vld [vmem:[%s1787_s1 + $0x140] sm:$0xff]  ;;  %v971_v24 = vld [vmem:[%s1788_s0 + $0x10] sm:$0xf]  ;;  %v1319_v25 = vld [vmem:[%s1788_s0 + $0x30] sm:$0xf0] }
  0x1c   :  { %749 = vmatpush.bf16.msra.mxu2 %v1348_v26  ;;  %v1379_v22 = vld [vmem:[%s1787_s1 + $0x180] sm:$0xff]  ;;  %v1402_v26 = vld [vmem:[%s1787_s1 + $0x238] sm:$0xff]  ;;  %v972_v33 = vor.u32 %v1319_v25, %v971_v24  ;;  %v1401_v37 = vld [vmem:[%s1787_s1 + $0x230] sm:$0xff] }
  0x1d   :  { %768 = vmatpush.bf16.msra.mxu3 %v1356_v27  ;;  %v1387_v23 = vld [vmem:[%s1787_s1 + $0x1c0] sm:$0xff]  ;;  %v1315_v27 = vld [vmem:[%s1788_s0 + $0x14] sm:$0xf] }
  0x1e   :  { %712 = vmatpush.bf16.msra.mxu0 %v1331_v28  ;;  %v973_v28 = vld [vmem:[%s1788_s0 + $0x34] sm:$0xf0]  ;;  %v981_v32 = vld [vmem:[%s1788_s0 + $0x3c] sm:$0xf0] }
  0x1f   :  { %731 = vmatpush.bf16.msra.mxu1 %v1339_v29  ;;  %v979_v29 = vld [vmem:[%s1788_s0 + $0x18] sm:$0xf]  ;;  %v976_v34 = vor.u32 %v1315_v27, %v973_v28  ;;  %v1399_v39 = vld [vmem:[%s1787_s1 + $0x220] sm:$0xff] }
  0x20   :  { %750 = vmatpush.bf16.msra.mxu2 %v1347_v30  ;;  %v1320_v30 = vld [vmem:[%s1788_s0 + $0x38] sm:$0xf0] }
  0x21   :  { %769 = vmatpush.bf16.msra.mxu3 %v1355_v31  ;;  %713 = vmatmul.bf16.vlgmr.msra.gmra.mxu0 %v956_v42  ;;  %v1316_v31 = vld [vmem:[%s1788_s0 + $0x1c] sm:$0xf]  ;;  %v980_v35 = vor.u32 %v1320_v30, %v979_v29 }
  0x22   :  { %781 = vmatpush.bf16.msrb.mxu0 %v1370_v40  ;;  %732 = vmatmul.bf16.vlgmr.msra.gmra.mxu1 %v960_v43  ;;  %v984_v36 = vor.u32 %v1316_v31, %v981_v32  ;;  %v1007_v40 = vld [vmem:[%s1788_s0 + $0x58] sm:$0xf]  ;;  %v1324_v42 = vld [vmem:[%s1788_s0 + $0x5c] sm:$0xf]  ;;  %v1009_v43 = vld [vmem:[%s1788_s0 + $0x7c] sm:$0xf0] }
  0x23   :  { %800 = vmatpush.bf16.msrb.mxu1 %v1378_v41  ;;  %751 = vmatmul.bf16.vlgmr.msra.gmra.mxu2 %v964_v44  ;;  %v1328_v41 = vld [vmem:[%s1788_s0 + $0x78] sm:$0xf0]  ;;  %v1015_v44 = vld [vmem:[%s1788_s0 + $0x60] sm:$0xf] }
  0x24   :  { %770 = vmatmul.bf16.vlgmr.msra.gmra.mxu3 %v968_v45  ;;  %819 = vmatpush.bf16.msrb.mxu2 %v1386_v46  ;;  %v1329_v45 = vld [vmem:[%s1788_s0 + $0x80] sm:$0xf0]  ;;  %v1398_v46 = vld [vmem:[%s1787_s1 + $0x218] sm:$0xff] }
  0x25   :  { %838 = vmatpush.bf16.msrb.mxu3 %v1394_v47  ;;  %v1325_v47 = vld [vmem:[%s1788_s0 + $0x64] sm:$0xf] }
  0x26   :  { %782 = vmatpush.bf16.msrb.mxu0 %v1369_v48  ;;  %v1017_v48 = vld [vmem:[%s1788_s0 + $0x84] sm:$0xf0] }
  0x27   :  { %801 = vmatpush.bf16.msrb.mxu1 %v1377_v49  ;;  %v1008_v49 = vor.u32 %v1328_v41, %v1007_v40 }
  0x28   :  { %820 = vmatpush.bf16.msrb.mxu2 %v1385_v50  ;;  %v1012_v50 = vor.u32 %v1324_v42, %v1009_v43 }
  0x29   :  { %839 = vmatpush.bf16.msrb.mxu3 %v1393_v51  ;;  %v1016_v51 = vor.u32 %v1329_v45, %v1015_v44 }
  0x2a   :  { %783 = vmatpush.bf16.msrb.mxu0 %v1368_v52  ;;  %v1020_v52 = vor.u32 %v1325_v47, %v1017_v48 }
  0x2b   :  { %802 = vmatpush.bf16.msrb.mxu1 %v1376_v53  ;;  %v1397_v53 = vld [vmem:[%s1787_s1 + $0x210] sm:$0xff] }
  0x2c   :  { %821 = vmatpush.bf16.msrb.mxu2 %v1384_v54  ;;  %v1396_v54 = vld [vmem:[%s1787_s1 + $0x208] sm:$0xff] }
  0x2d   :  { %840 = vmatpush.bf16.msrb.mxu3 %v1392_v55  ;;  %v1395_v55 = vld [vmem:[%s1787_s1 + $0x200] sm:$0xff] }
  0x2e   :  { %784 = vmatpush.bf16.msrb.mxu0 %v1367_v56  ;;  %v987_v56 = vld [vmem:[%s1788_s0 + $0x20] sm:$0xf] }
  0x2f   :  { %803 = vmatpush.bf16.msrb.mxu1 %v1375_v57  ;;  %v1321_v57 = vld [vmem:[%s1788_s0 + $0x40] sm:$0xf0] }
  0x30   :  { %822 = vmatpush.bf16.msrb.mxu2 %v1383_v58  ;;  %v1023_v58 = vld [vmem:[%s1788_s0 + $0x68] sm:$0xf]  ;;  %v988_v60 = vor.u32 %v1321_v57, %v987_v56 }
  0x31   :  { %841 = vmatpush.bf16.msrb.mxu3 %v1391_v59  ;;  %718 = vmatmul.bf16.gmra.mxu0 %v992_v6  ;;  %v1330_v59 = vld [vmem:[%s1788_s0 + $0x88] sm:$0xf0] }
  0x32   :  { %785 = vmatpush.bf16.msrb.mxu0 %v1366_v4  ;;  %737 = vmatmul.bf16.gmra.mxu1 %v996_v7  ;;  %v1024_v61 = vor.u32 %v1330_v59, %v1023_v58 }
  0x33   :  { %804 = vmatpush.bf16.msrb.mxu1 %v1374_v5  ;;  %756 = vmatmul.bf16.gmra.mxu2 %v1000_v8 }
  0x34   :  { %775 = vmatmul.bf16.gmra.mxu3 %v1004_v9  ;;  %823 = vmatpush.bf16.msrb.mxu2 %v1382_v10 }
  0x35   :  { %842 = vmatpush.bf16.msrb.mxu3 %v1390_v11 }
  0x36   :  { %786 = vmatpush.bf16.msrb.mxu0 %v1365_v12 }
  0x37   :  { %805 = vmatpush.bf16.msrb.mxu1 %v1373_v13 }
  0x38   :  { %824 = vmatpush.bf16.msrb.mxu2 %v1381_v14 }
  0x39   :  { %843 = vmatpush.bf16.msrb.mxu3 %v1389_v15 }
  0x3a   :  { %787 = vmatpush.bf16.msrb.mxu0 %v1364_v16 }
  0x3b   :  { %806 = vmatpush.bf16.msrb.mxu1 %v1372_v17 }
  0x3c   :  { %825 = vmatpush.bf16.msrb.mxu2 %v1380_v18 }
  0x3d   :  { %844 = vmatpush.bf16.msrb.mxu3 %v1388_v19 }
  0x3e   :  { %788 = vmatpush.bf16.msrb.mxu0 %v1363_v20 }
  0x3f   :  { %807 = vmatpush.bf16.msrb.mxu1 %v1371_v21 }
  0x40   :  { %826 = vmatpush.bf16.msrb.mxu2 %v1379_v22 }
  0x41   :  { %845 = vmatpush.bf16.msrb.mxu3 %v1387_v23  ;;  %789 = vmatmul.bf16.vlgmr.msrb.gmra.mxu0 %v972_v33 }
  0x42   :  { %857 = vmatpush.bf16.msra.mxu0 %v1402_v26  ;;  %808 = vmatmul.bf16.vlgmr.msrb.gmra.mxu1 %v976_v34 }
  0x43   :  { %1414 = vmatpush.bf16.msra.mxu1 %v1402_v26  ;;  %827 = vmatmul.bf16.vlgmr.msrb.gmra.mxu2 %v980_v35 }
  0x44   :  { %846 = vmatmul.bf16.vlgmr.msrb.gmra.mxu3 %v984_v36 }
  0x46   :  { %858 = vmatpush.bf16.msra.mxu0 %v1401_v37 }
  0x47   :  { %1415 = vmatpush.bf16.msra.mxu1 %v1401_v37 }
  0x4a   :  { %859 = vmatpush.bf16.msra.mxu0 %v1400_v38 }
  0x4b   :  { %1416 = vmatpush.bf16.msra.mxu1 %v1400_v38 }
  0x4e   :  { %860 = vmatpush.bf16.msra.mxu0 %v1399_v39 }
  0x4f   :  { %1417 = vmatpush.bf16.msra.mxu1 %v1399_v39 }
  0x51   :  { %794 = vmatmul.bf16.gmra.mxu0 %v1008_v49 }
  0x52   :  { %861 = vmatpush.bf16.msra.mxu0 %v1398_v46  ;;  %813 = vmatmul.bf16.gmra.mxu1 %v1012_v50 }
  0x53   :  { %1418 = vmatpush.bf16.msra.mxu1 %v1398_v46  ;;  %832 = vmatmul.bf16.gmra.mxu2 %v1016_v51 }
  0x54   :  { %851 = vmatmul.bf16.gmra.mxu3 %v1020_v52 }
  0x56   :  { %862 = vmatpush.bf16.msra.mxu0 %v1397_v53 }
  0x57   :  { %1419 = vmatpush.bf16.msra.mxu1 %v1397_v53 }
  0x5a   :  { %863 = vmatpush.bf16.msra.mxu0 %v1396_v54 }
  0x5b   :  { %1420 = vmatpush.bf16.msra.mxu1 %v1396_v54 }
  0x5e   :  { %864 = vmatpush.bf16.msra.mxu0 %v1395_v55 }
  0x5f   :  { %1421 = vmatpush.bf16.msra.mxu1 %v1395_v55 }
  0x61   :  { %865 = vmatmul.bf16.vlgmr.msra.gmra.mxu0 %v988_v60 }
  0x62   :  { %870 = vmatmul.bf16.vlgmr.msra.gmra.mxu1 %v1024_v61 }
  0x9e   :  { %v714_v62 = vpop.f32.mrf.mxu0 }
  0x9f   :  { %v733_v63 = vpop.f32.mrf.mxu1 }
  0xa0   :  { %v734_v24 = vadd.f32 %v733_v63, %v714_v62 }
  0xa6   :  { %v752_v0 = vpop.f32.mrf.mxu2  ;;  %v716_v2 = vpop.f32.mrf.mxu0 }
  0xa7   :  { %v771_v1 = vpop.f32.mrf.mxu3  ;;  %v735_v3 = vpop.f32.mrf.mxu1  ;;  %v753_v25 = vadd.f32 %v752_v0, %v734_v24 }
  0xa8   :  { %v736_v26 = vadd.f32 %v735_v3, %v716_v2 }
  0xa9   :  { %v772_v34 = vadd.f32 %v771_v1, %v753_v25 }
  0xae   :  { %v754_v4 = vpop.f32.mrf.mxu2  ;;  %v719_v6 = vpop.f32.mrf.mxu0 }
  0xaf   :  { %v773_v5 = vpop.f32.mrf.mxu3  ;;  %v738_v7 = vpop.f32.mrf.mxu1  ;;  %v755_v28 = vadd.f32 %v754_v4, %v736_v26 }
  0xb0   :  { %v739_v27 = vadd.f32 %v738_v7, %v719_v6 }
  0xb1   :  { %v774_v36 = vadd.f32 %v773_v5, %v755_v28 }
  0xb6   :  { %v757_v8 = vpop.f32.mrf.mxu2  ;;  %v721_v10 = vpop.f32.mrf.mxu0 }
  0xb7   :  { %v776_v9 = vpop.f32.mrf.mxu3  ;;  %v740_v11 = vpop.f32.mrf.mxu1  ;;  %v758_v29 = vadd.f32 %v757_v8, %v739_v27 }
  0xb8   :  { %v741_v30 = vadd.f32 %v740_v11, %v721_v10 }
  0xb9   :  { %v777_v37 = vadd.f32 %v776_v9, %v758_v29 }
  0xbe   :  { %v759_v12 = vpop.f32.mrf.mxu2  ;;  %v790_v14 = vpop.f32.mrf.mxu0 }
  0xbf   :  { %v778_v13 = vpop.f32.mrf.mxu3  ;;  %v809_v15 = vpop.f32.mrf.mxu1  ;;  %v760_v35 = vadd.f32 %v759_v12, %v741_v30  ;;  %v791_v38 = vadd.f32 %v790_v14, %v772_v34 }
  0xc1   :  { %v779_v40 = vadd.f32 %v778_v13, %v760_v35  ;;  %v810_v43 = vadd.f32 %v809_v15, %v791_v38 }
  0xc6   :  { %v828_v16 = vpop.f32.mrf.mxu2  ;;  %v792_v18 = vpop.f32.mrf.mxu0 }
  0xc7   :  { %v847_v17 = vpop.f32.mrf.mxu3  ;;  %v811_v19 = vpop.f32.mrf.mxu1  ;;  %v793_v41 = vadd.f32 %v792_v18, %v774_v36  ;;  %v829_v47 = vadd.f32 %v828_v16, %v810_v43 }
  0xc9   :  { %v812_v48 = vadd.f32 %v811_v19, %v793_v41  ;;  %v848_v54 = vadd.f32 %v847_v17, %v829_v47 }
  0xce   :  { %v830_v20 = vpop.f32.mrf.mxu2  ;;  %v795_v21 = vpop.f32.mrf.mxu0 }
  0xcf   :  { %v814_v22 = vpop.f32.mrf.mxu1  ;;  %v849_v23 = vpop.f32.mrf.mxu3  ;;  %v796_v42 = vadd.f32 %v795_v21, %v777_v37  ;;  %v831_v51 = vadd.f32 %v830_v20, %v812_v48 }
  0xd1   :  { %v815_v49 = vadd.f32 %v814_v22, %v796_v42  ;;  %v850_v57 = vadd.f32 %v849_v23, %v831_v51 }
  0xd6   :  { %v833_v31 = vpop.f32.mrf.mxu2  ;;  %v797_v32 = vpop.f32.mrf.mxu0 }
  0xd7   :  { %v816_v33 = vpop.f32.mrf.mxu1  ;;  %v852_v39 = vpop.f32.mrf.mxu3  ;;  %v798_v44 = vadd.f32 %v797_v32, %v779_v40  ;;  %v834_v52 = vadd.f32 %v833_v31, %v815_v49 }
  0xd9   :  { %v817_v53 = vadd.f32 %v816_v33, %v798_v44  ;;  %v853_v58 = vadd.f32 %v852_v39, %v834_v52  ;;  %v1422_v39 = vld [vmem:[%s1789_s2] ss:$0 sm:$0xff] }
  0xde   :  { %v866_v45 = vpop.f32.mrf.mxu0  ;;  %v835_v50 = vpop.f32.mrf.mxu2 }
  0xdf   :  { %v871_v46 = vpop.f32.mrf.mxu1  ;;  %v836_v55 = vadd.f32 %v835_v50, %v817_v53  ;;  %v854_v56 = vpop.f32.mrf.mxu3  ;;  %v867_v59 = vadd.f32 %v866_v45, %v848_v54  ;;  %v1423_v45 = vld [vmem:[%s1790_s3] ss:$0 sm:$0xff] }
  0xe0   :  { %v872_v63 = vadd.f32 %v871_v46, %v853_v58 }
  0xe1   :  { %v855_v62 = vadd.f32 %v854_v56, %v836_v55  ;;  %v888_v1 = vmul.f32 %v867_v59, %v867_v59 }
  0xe2   :  { %v890_v5 = vmul.f32 %v872_v63, %v872_v63 }
  0xe6   :  { %v868_v60 = vpop.f32.mrf.mxu0 }
  0xe7   :  { %v873_v61 = vpop.f32.mrf.mxu1  ;;  %v869_v0 = vadd.f32 %v868_v60, %v850_v57 }
  0xe8   :  { %v874_v4 = vadd.f32 %v873_v61, %v855_v62 }
  0xe9   :  { %v878_v2 = vadd.f32 %v869_v0, %v867_v59  ;;  %v889_v3 = vmul.f32 %v869_v0, %v869_v0 }
  0xea   :  { %v891_v9 = vmul.f32 %v874_v4, %v874_v4 }
  0xeb   :  { %v892_v6 = vadd.f32 %v889_v3, %v888_v1  ;;  %v879_v7 = vadd.f32 %v878_v2, %v872_v63 }
  0xed   :  { %v880_v8 = vadd.f32 %v879_v7, %v874_v4  ;;  %v893_v10 = vadd.f32 %v892_v6, %v890_v5 }
  0xef   :  { %v881_v11 = vrot.slane %v880_v8, 4  ;;  %v894_v12 = vadd.f32 %v893_v10, %v891_v9 }
  0xf1   :  { %v882_v13 = vadd.f32 %v881_v11, %v880_v8  ;;  %v895_v14 = vrot.slane %v894_v12, 4 }
  0xf3   :  { %v883_v15 = vrot.slane %v882_v13, 2  ;;  %v896_v16 = vadd.f32 %v895_v14, %v894_v12 }
  0xf5   :  { %v884_v17 = vadd.f32 %v883_v15, %v882_v13  ;;  %v897_v18 = vrot.slane %v896_v16, 2 }
  0xf7   :  { %v885_v19 = vrot.slane %v884_v17, 1  ;;  %v898_v20 = vadd.f32 %v897_v18, %v896_v16 }
  0xf9   :  { %v886_v21 = vadd.f32 %v885_v19, %v884_v17  ;;  %v899_v22 = vrot.slane %v898_v20, 1 }
  0xfb   :  { %v887_v23 = vmul.f32 0.03125, %v886_v21  ;;  %v900_v24 = vadd.f32 %v899_v22, %v898_v20 }
  0xfd   :  { %v901_v25 = vmul.f32 0.03125, %v900_v24  ;;  %v902_v26 = vmul.f32 %v887_v23, %v887_v23  ;;  %v904_v35 = vsub.f32 %v867_v59, %v887_v23  ;;  %v905_v36 = vsub.f32 %v869_v0, %v887_v23 }
  0xfe   :  { %v906_v37 = vsub.f32 %v872_v63, %v887_v23  ;;  %v907_v38 = vsub.f32 %v874_v4, %v887_v23 }
  0xff   :  { %v903_v27 = vsub.f32 %v901_v25, %v902_v26 }
 0x101   :  { %v908_v28 = vadd.f32 1e-05, %v903_v27 }
 0x103   :  { %1424 = vrsqrt.f32 %v908_v28  ;;  %vm915_vm1 = vweird.f32 %v908_v28 }
 0x109   :  { %v1425_v29 = vpop.eup %1424 }
 0x10a   :  { %v910_v30 = vmul.f32 %v1425_v29, %v908_v28  ;;  %vm916_vm0 = vweird.f32 %v1425_v29 }
 0x10b   :  { %vm917_vm2 = vmor %vm915_vm1, %vm916_vm0 }
 0x10c   :  { %v911_v31 = vmul.f32 %v1425_v29, %v910_v30 }
 0x10e   :  { %v912_v32 = vmul.f32 0.5, %v911_v31 }
 0x110   :  { %v913_v33 = vsub.f32 1.5, %v912_v32 }
 0x112   :  { %v914_v34 = vmul.f32 %v1425_v29, %v913_v33 }
 0x114   :  { %v918_v40 = vsel %vm917_vm2, %v1425_v29, %v914_v34 }
 0x115   :  { %v919_v41 = vmul.f32 %v918_v40, %v904_v35  ;;  %v920_v42 = vmul.f32 %v918_v40, %v905_v36  ;;  %v921_v43 = vmul.f32 %v918_v40, %v906_v37  ;;  %v922_v44 = vmul.f32 %v918_v40, %v907_v38 }
 0x117   :  { %v926_v46 = vmul.f32 %v1422_v39, %v919_v41  ;;  %v927_v47 = vmul.f32 %v1422_v39, %v920_v42  ;;  %v928_v48 = vmul.f32 %v1422_v39, %v921_v43  ;;  %v929_v49 = vmul.f32 %v1422_v39, %v922_v44 }
 0x119   :  { %v933_v50 = vadd.f32 %v1423_v45, %v926_v46  ;;  %v934_v51 = vadd.f32 %v1423_v45, %v927_v47  ;;  %v935_v52 = vadd.f32 %v1423_v45, %v928_v48  ;;  %v936_v53 = vadd.f32 %v1423_v45, %v929_v49 }
 0x11b   :  { %v937_v54 = vmax.f32 %v933_v50, 0.0  ;;  %v938_v55 = vmax.f32 %v934_v51, 0.0  ;;  %v939_v56 = vmax.f32 %v935_v52, 0.0  ;;  %v940_v57 = vmax.f32 %v936_v53, 0.0 }
 0x11d   :  { %v1406_v58 = vpack.c.bf16 %v938_v55, %v937_v54  ;;  %v1411_v59 = vpack.c.bf16 %v940_v57, %v939_v56 }
 0x11f   :  { %1407 = vst [vmem:[%s1791_s4] sm:$0xff] %v1406_v58  }
 0x120   :  { %1413 = vst [vmem:[%s1791_s4 + $0x8] sm:$0xff] %v1411_v59  }

// kernel: resnet_forward.16
= control target key start
LH: loop header
LB: loop body
LE: loop exit
PB: predicated region body
PF: predicated region fallthrough
CT: control target
= control target key end

     0   :  { %s1822_s1 = inlined_call_operand.vmem [shape: bf16[1152,128], index: 1, kind: input, shape index: {}]   ;;  %s1823_s0 = inlined_call_operand.vmem [shape: bf16[32,1152], index: 0, kind: input, shape index: {}]   ;;  %s1824_s2 = inlined_call_operand.vmem [shape: f32[1,128], index: 2, kind: input, shape index: {}]   ;;  %s1825_s3 = inlined_call_operand.vmem [shape: f32[1,128], index: 3, kind: input, shape index: {}]   ;;  %s1826_s4 = inlined_call_operand.vmem [shape: bf16[32,128], index: 4, kind: input, shape index: {}]   ;;  %s1827_s5 = inlined_call_operand.vmem [shape: bf16[32,128], index: 5, kind: output, shape index: {}]  }
   0x1   :  { %v1353_v0 = vld [vmem:[%s1822_s1 + $0x38] sm:$0xff]  ;;  %v1352_v4 = vld [vmem:[%s1822_s1 + $0x30] sm:$0xff]  ;;  %v1351_v8 = vld [vmem:[%s1822_s1 + $0x28] sm:$0xff] }
   0x2   :  { %v1361_v1 = vld [vmem:[%s1822_s1 + $0x78] sm:$0xff]  ;;  %708 = vmatpush.bf16.msra.mxu0 %v1353_v0  ;;  %v1360_v5 = vld [vmem:[%s1822_s1 + $0x70] sm:$0xff]  ;;  %v1359_v9 = vld [vmem:[%s1822_s1 + $0x68] sm:$0xff] }
   0x3   :  { %v1369_v2 = vld [vmem:[%s1822_s1 + $0xb8] sm:$0xff]  ;;  %727 = vmatpush.bf16.msra.mxu1 %v1361_v1  ;;  %v1368_v6 = vld [vmem:[%s1822_s1 + $0xb0] sm:$0xff]  ;;  %v1367_v10 = vld [vmem:[%s1822_s1 + $0xa8] sm:$0xff] }
   0x4   :  { %v1377_v3 = vld [vmem:[%s1822_s1 + $0xf8] sm:$0xff]  ;;  %746 = vmatpush.bf16.msra.mxu2 %v1369_v2  ;;  %v1376_v7 = vld [vmem:[%s1822_s1 + $0xf0] sm:$0xff]  ;;  %v1375_v11 = vld [vmem:[%s1822_s1 + $0xe8] sm:$0xff] }
   0x5   :  { %765 = vmatpush.bf16.msra.mxu3 %v1377_v3  ;;  %v1350_v12 = vld [vmem:[%s1822_s1 + $0x20] sm:$0xff]  ;;  %v1349_v16 = vld [vmem:[%s1822_s1 + $0x18] sm:$0xff]  ;;  %v1348_v20 = vld [vmem:[%s1822_s1 + $0x10] sm:$0xff] }
   0x6   :  { %709 = vmatpush.bf16.msra.mxu0 %v1352_v4  ;;  %v1358_v13 = vld [vmem:[%s1822_s1 + $0x60] sm:$0xff]  ;;  %v1357_v17 = vld [vmem:[%s1822_s1 + $0x58] sm:$0xff]  ;;  %v1356_v21 = vld [vmem:[%s1822_s1 + $0x50] sm:$0xff] }
   0x7   :  { %728 = vmatpush.bf16.msra.mxu1 %v1360_v5  ;;  %v1366_v14 = vld [vmem:[%s1822_s1 + $0xa0] sm:$0xff]  ;;  %v1365_v18 = vld [vmem:[%s1822_s1 + $0x98] sm:$0xff]  ;;  %v1364_v22 = vld [vmem:[%s1822_s1 + $0x90] sm:$0xff] }
   0x8   :  { %747 = vmatpush.bf16.msra.mxu2 %v1368_v6  ;;  %v1374_v15 = vld [vmem:[%s1822_s1 + $0xe0] sm:$0xff]  ;;  %v1373_v19 = vld [vmem:[%s1822_s1 + $0xd8] sm:$0xff]  ;;  %v1372_v23 = vld [vmem:[%s1822_s1 + $0xd0] sm:$0xff] }
   0x9   :  { %766 = vmatpush.bf16.msra.mxu3 %v1376_v7  ;;  %v1347_v24 = vld [vmem:[%s1822_s1 + $0x8] sm:$0xff]  ;;  %v1346_v28 = vld [vmem:[%s1822_s1] sm:$0xff]  ;;  %v980_v39 = vld [vmem:[%s1823_s0 + $0x2c] sm:$0xf0] }
   0xa   :  { %710 = vmatpush.bf16.msra.mxu0 %v1351_v8  ;;  %v1355_v25 = vld [vmem:[%s1822_s1 + $0x48] sm:$0xff]  ;;  %v1354_v29 = vld [vmem:[%s1822_s1 + $0x40] sm:$0xff]  ;;  %v1385_v40 = vld [vmem:[%s1822_s1 + $0x138] sm:$0xff] }
   0xb   :  { %729 = vmatpush.bf16.msra.mxu1 %v1359_v9  ;;  %v1363_v26 = vld [vmem:[%s1822_s1 + $0x88] sm:$0xff]  ;;  %v1362_v30 = vld [vmem:[%s1822_s1 + $0x80] sm:$0xff]  ;;  %v1393_v41 = vld [vmem:[%s1822_s1 + $0x178] sm:$0xff] }
   0xc   :  { %748 = vmatpush.bf16.msra.mxu2 %v1367_v10  ;;  %v1371_v27 = vld [vmem:[%s1822_s1 + $0xc8] sm:$0xff]  ;;  %v1370_v31 = vld [vmem:[%s1822_s1 + $0xc0] sm:$0xff]  ;;  %v1401_v46 = vld [vmem:[%s1822_s1 + $0x1b8] sm:$0xff] }
   0xd   :  { %767 = vmatpush.bf16.msra.mxu3 %v1375_v11  ;;  %v970_v32 = vld [vmem:[%s1823_s0] sm:$0xf]  ;;  %v1332_v33 = vld [vmem:[%s1823_s0 + $0x20] sm:$0xf0]  ;;  %v972_v35 = vld [vmem:[%s1823_s0 + $0x24] sm:$0xf0] }
   0xe   :  { %711 = vmatpush.bf16.msra.mxu0 %v1350_v12  ;;  %v1328_v34 = vld [vmem:[%s1823_s0 + $0x4] sm:$0xf]  ;;  %v978_v36 = vld [vmem:[%s1823_s0 + $0x8] sm:$0xf]  ;;  %v1333_v37 = vld [vmem:[%s1823_s0 + $0x28] sm:$0xf0]  ;;  %v971_v42 = vor.u32 %v1332_v33, %v970_v32 }
   0xf   :  { %730 = vmatpush.bf16.msra.mxu1 %v1358_v13  ;;  %v1329_v38 = vld [vmem:[%s1823_s0 + $0xc] sm:$0xf]  ;;  %v975_v43 = vor.u32 %v1328_v34, %v972_v35  ;;  %v979_v44 = vor.u32 %v1333_v37, %v978_v36  ;;  %v1409_v47 = vld [vmem:[%s1822_s1 + $0x1f8] sm:$0xff]  ;;  %v1384_v48 = vld [vmem:[%s1822_s1 + $0x130] sm:$0xff] }
  0x10   :  { %749 = vmatpush.bf16.msra.mxu2 %v1366_v14  ;;  %v983_v45 = vor.u32 %v1329_v38, %v980_v39  ;;  %v1392_v49 = vld [vmem:[%s1822_s1 + $0x170] sm:$0xff]  ;;  %v1383_v52 = vld [vmem:[%s1822_s1 + $0x128] sm:$0xff]  ;;  %v1382_v56 = vld [vmem:[%s1822_s1 + $0x120] sm:$0xff] }
  0x11   :  { %768 = vmatpush.bf16.msra.mxu3 %v1374_v15  ;;  %v1400_v50 = vld [vmem:[%s1822_s1 + $0x1b0] sm:$0xff]  ;;  %v1391_v53 = vld [vmem:[%s1822_s1 + $0x168] sm:$0xff]  ;;  %v1390_v57 = vld [vmem:[%s1822_s1 + $0x160] sm:$0xff] }
  0x12   :  { %712 = vmatpush.bf16.msra.mxu0 %v1349_v16  ;;  %v1408_v51 = vld [vmem:[%s1822_s1 + $0x1f0] sm:$0xff]  ;;  %v1399_v54 = vld [vmem:[%s1822_s1 + $0x1a8] sm:$0xff]  ;;  %v1398_v58 = vld [vmem:[%s1822_s1 + $0x1a0] sm:$0xff] }
  0x13   :  { %731 = vmatpush.bf16.msra.mxu1 %v1357_v17  ;;  %v1407_v55 = vld [vmem:[%s1822_s1 + $0x1e8] sm:$0xff]  ;;  %v1406_v59 = vld [vmem:[%s1822_s1 + $0x1e0] sm:$0xff]  ;;  %v1008_v63 = vld [vmem:[%s1823_s0 + $0x6c] sm:$0xf0] }
  0x14   :  { %750 = vmatpush.bf16.msra.mxu2 %v1365_v18  ;;  %v1006_v60 = vld [vmem:[%s1823_s0 + $0x48] sm:$0xf]  ;;  %v1341_v61 = vld [vmem:[%s1823_s0 + $0x68] sm:$0xf0]  ;;  %v1014_v0 = vld [vmem:[%s1823_s0 + $0x50] sm:$0xf] }
  0x15   :  { %769 = vmatpush.bf16.msra.mxu3 %v1373_v19  ;;  %v1337_v62 = vld [vmem:[%s1823_s0 + $0x4c] sm:$0xf]  ;;  %v1342_v1 = vld [vmem:[%s1823_s0 + $0x70] sm:$0xf0]  ;;  %v1016_v3 = vld [vmem:[%s1823_s0 + $0x74] sm:$0xf0]  ;;  %v1007_v6 = vor.u32 %v1341_v61, %v1006_v60 }
  0x16   :  { %713 = vmatpush.bf16.msra.mxu0 %v1348_v20  ;;  %v1338_v2 = vld [vmem:[%s1823_s0 + $0x54] sm:$0xf]  ;;  %v1381_v4 = vld [vmem:[%s1822_s1 + $0x118] sm:$0xff]  ;;  %v1011_v7 = vor.u32 %v1337_v62, %v1008_v63  ;;  %v1015_v8 = vor.u32 %v1342_v1, %v1014_v0  ;;  %v1379_v16 = vld [vmem:[%s1822_s1 + $0x108] sm:$0xff] }
  0x17   :  { %732 = vmatpush.bf16.msra.mxu1 %v1356_v21  ;;  %v1389_v5 = vld [vmem:[%s1822_s1 + $0x158] sm:$0xff]  ;;  %v1019_v9 = vor.u32 %v1338_v2, %v1016_v3  ;;  %v1380_v12 = vld [vmem:[%s1822_s1 + $0x110] sm:$0xff]  ;;  %v1387_v17 = vld [vmem:[%s1822_s1 + $0x148] sm:$0xff] }
  0x18   :  { %751 = vmatpush.bf16.msra.mxu2 %v1364_v22  ;;  %v1397_v10 = vld [vmem:[%s1822_s1 + $0x198] sm:$0xff]  ;;  %v1388_v13 = vld [vmem:[%s1822_s1 + $0x150] sm:$0xff]  ;;  %v1395_v18 = vld [vmem:[%s1822_s1 + $0x188] sm:$0xff] }
  0x19   :  { %770 = vmatpush.bf16.msra.mxu3 %v1372_v23  ;;  %v1405_v11 = vld [vmem:[%s1822_s1 + $0x1d8] sm:$0xff]  ;;  %v1396_v14 = vld [vmem:[%s1822_s1 + $0x190] sm:$0xff]  ;;  %v1403_v19 = vld [vmem:[%s1822_s1 + $0x1c8] sm:$0xff] }
  0x1a   :  { %714 = vmatpush.bf16.msra.mxu0 %v1347_v24  ;;  %v1404_v15 = vld [vmem:[%s1822_s1 + $0x1d0] sm:$0xff]  ;;  %v1378_v20 = vld [vmem:[%s1822_s1 + $0x100] sm:$0xff]  ;;  %v1415_v38 = vld [vmem:[%s1822_s1 + $0x228] sm:$0xff] }
  0x1b   :  { %733 = vmatpush.bf16.msra.mxu1 %v1355_v25  ;;  %v1386_v21 = vld [vmem:[%s1822_s1 + $0x140] sm:$0xff]  ;;  %v986_v24 = vld [vmem:[%s1823_s0 + $0x10] sm:$0xf]  ;;  %v1334_v25 = vld [vmem:[%s1823_s0 + $0x30] sm:$0xf0] }
  0x1c   :  { %752 = vmatpush.bf16.msra.mxu2 %v1363_v26  ;;  %v1394_v22 = vld [vmem:[%s1822_s1 + $0x180] sm:$0xff]  ;;  %v1417_v26 = vld [vmem:[%s1822_s1 + $0x238] sm:$0xff]  ;;  %v987_v33 = vor.u32 %v1334_v25, %v986_v24  ;;  %v1416_v37 = vld [vmem:[%s1822_s1 + $0x230] sm:$0xff] }
  0x1d   :  { %771 = vmatpush.bf16.msra.mxu3 %v1371_v27  ;;  %v1402_v23 = vld [vmem:[%s1822_s1 + $0x1c0] sm:$0xff]  ;;  %v1330_v27 = vld [vmem:[%s1823_s0 + $0x14] sm:$0xf] }
  0x1e   :  { %715 = vmatpush.bf16.msra.mxu0 %v1346_v28  ;;  %v988_v28 = vld [vmem:[%s1823_s0 + $0x34] sm:$0xf0]  ;;  %v996_v32 = vld [vmem:[%s1823_s0 + $0x3c] sm:$0xf0] }
  0x1f   :  { %734 = vmatpush.bf16.msra.mxu1 %v1354_v29  ;;  %v994_v29 = vld [vmem:[%s1823_s0 + $0x18] sm:$0xf]  ;;  %v991_v34 = vor.u32 %v1330_v27, %v988_v28  ;;  %v1414_v39 = vld [vmem:[%s1822_s1 + $0x220] sm:$0xff] }
  0x20   :  { %753 = vmatpush.bf16.msra.mxu2 %v1362_v30  ;;  %v1335_v30 = vld [vmem:[%s1823_s0 + $0x38] sm:$0xf0] }
  0x21   :  { %772 = vmatpush.bf16.msra.mxu3 %v1370_v31  ;;  %716 = vmatmul.bf16.vlgmr.msra.gmra.mxu0 %v971_v42  ;;  %v1331_v31 = vld [vmem:[%s1823_s0 + $0x1c] sm:$0xf]  ;;  %v995_v35 = vor.u32 %v1335_v30, %v994_v29 }
  0x22   :  { %784 = vmatpush.bf16.msrb.mxu0 %v1385_v40  ;;  %735 = vmatmul.bf16.vlgmr.msra.gmra.mxu1 %v975_v43  ;;  %v999_v36 = vor.u32 %v1331_v31, %v996_v32  ;;  %v1022_v40 = vld [vmem:[%s1823_s0 + $0x58] sm:$0xf]  ;;  %v1339_v42 = vld [vmem:[%s1823_s0 + $0x5c] sm:$0xf]  ;;  %v1024_v43 = vld [vmem:[%s1823_s0 + $0x7c] sm:$0xf0] }
  0x23   :  { %803 = vmatpush.bf16.msrb.mxu1 %v1393_v41  ;;  %754 = vmatmul.bf16.vlgmr.msra.gmra.mxu2 %v979_v44  ;;  %v1343_v41 = vld [vmem:[%s1823_s0 + $0x78] sm:$0xf0]  ;;  %v1030_v44 = vld [vmem:[%s1823_s0 + $0x60] sm:$0xf] }
  0x24   :  { %773 = vmatmul.bf16.vlgmr.msra.gmra.mxu3 %v983_v45  ;;  %822 = vmatpush.bf16.msrb.mxu2 %v1401_v46  ;;  %v1344_v45 = vld [vmem:[%s1823_s0 + $0x80] sm:$0xf0]  ;;  %v1413_v46 = vld [vmem:[%s1822_s1 + $0x218] sm:$0xff] }
  0x25   :  { %841 = vmatpush.bf16.msrb.mxu3 %v1409_v47  ;;  %v1340_v47 = vld [vmem:[%s1823_s0 + $0x64] sm:$0xf] }
  0x26   :  { %785 = vmatpush.bf16.msrb.mxu0 %v1384_v48  ;;  %v1032_v48 = vld [vmem:[%s1823_s0 + $0x84] sm:$0xf0] }
  0x27   :  { %804 = vmatpush.bf16.msrb.mxu1 %v1392_v49  ;;  %v1023_v49 = vor.u32 %v1343_v41, %v1022_v40 }
  0x28   :  { %823 = vmatpush.bf16.msrb.mxu2 %v1400_v50  ;;  %v1027_v50 = vor.u32 %v1339_v42, %v1024_v43 }
  0x29   :  { %842 = vmatpush.bf16.msrb.mxu3 %v1408_v51  ;;  %v1031_v51 = vor.u32 %v1344_v45, %v1030_v44 }
  0x2a   :  { %786 = vmatpush.bf16.msrb.mxu0 %v1383_v52  ;;  %v1035_v52 = vor.u32 %v1340_v47, %v1032_v48 }
  0x2b   :  { %805 = vmatpush.bf16.msrb.mxu1 %v1391_v53  ;;  %v1412_v53 = vld [vmem:[%s1822_s1 + $0x210] sm:$0xff] }
  0x2c   :  { %824 = vmatpush.bf16.msrb.mxu2 %v1399_v54  ;;  %v1411_v54 = vld [vmem:[%s1822_s1 + $0x208] sm:$0xff] }
  0x2d   :  { %843 = vmatpush.bf16.msrb.mxu3 %v1407_v55  ;;  %v1410_v55 = vld [vmem:[%s1822_s1 + $0x200] sm:$0xff] }
  0x2e   :  { %787 = vmatpush.bf16.msrb.mxu0 %v1382_v56  ;;  %v1002_v56 = vld [vmem:[%s1823_s0 + $0x20] sm:$0xf] }
  0x2f   :  { %806 = vmatpush.bf16.msrb.mxu1 %v1390_v57  ;;  %v1336_v57 = vld [vmem:[%s1823_s0 + $0x40] sm:$0xf0] }
  0x30   :  { %825 = vmatpush.bf16.msrb.mxu2 %v1398_v58  ;;  %v1038_v58 = vld [vmem:[%s1823_s0 + $0x68] sm:$0xf]  ;;  %v1003_v60 = vor.u32 %v1336_v57, %v1002_v56 }
  0x31   :  { %844 = vmatpush.bf16.msrb.mxu3 %v1406_v59  ;;  %721 = vmatmul.bf16.gmra.mxu0 %v1007_v6  ;;  %v1345_v59 = vld [vmem:[%s1823_s0 + $0x88] sm:$0xf0] }
  0x32   :  { %788 = vmatpush.bf16.msrb.mxu0 %v1381_v4  ;;  %740 = vmatmul.bf16.gmra.mxu1 %v1011_v7  ;;  %v1039_v61 = vor.u32 %v1345_v59, %v1038_v58 }
  0x33   :  { %807 = vmatpush.bf16.msrb.mxu1 %v1389_v5  ;;  %759 = vmatmul.bf16.gmra.mxu2 %v1015_v8 }
  0x34   :  { %778 = vmatmul.bf16.gmra.mxu3 %v1019_v9  ;;  %826 = vmatpush.bf16.msrb.mxu2 %v1397_v10 }
  0x35   :  { %845 = vmatpush.bf16.msrb.mxu3 %v1405_v11 }
  0x36   :  { %789 = vmatpush.bf16.msrb.mxu0 %v1380_v12 }
  0x37   :  { %808 = vmatpush.bf16.msrb.mxu1 %v1388_v13 }
  0x38   :  { %827 = vmatpush.bf16.msrb.mxu2 %v1396_v14 }
  0x39   :  { %846 = vmatpush.bf16.msrb.mxu3 %v1404_v15 }
  0x3a   :  { %790 = vmatpush.bf16.msrb.mxu0 %v1379_v16 }
  0x3b   :  { %809 = vmatpush.bf16.msrb.mxu1 %v1387_v17 }
  0x3c   :  { %828 = vmatpush.bf16.msrb.mxu2 %v1395_v18 }
  0x3d   :  { %847 = vmatpush.bf16.msrb.mxu3 %v1403_v19 }
  0x3e   :  { %791 = vmatpush.bf16.msrb.mxu0 %v1378_v20 }
  0x3f   :  { %810 = vmatpush.bf16.msrb.mxu1 %v1386_v21 }
  0x40   :  { %829 = vmatpush.bf16.msrb.mxu2 %v1394_v22 }
  0x41   :  { %848 = vmatpush.bf16.msrb.mxu3 %v1402_v23  ;;  %792 = vmatmul.bf16.vlgmr.msrb.gmra.mxu0 %v987_v33 }
  0x42   :  { %860 = vmatpush.bf16.msra.mxu0 %v1417_v26  ;;  %811 = vmatmul.bf16.vlgmr.msrb.gmra.mxu1 %v991_v34 }
  0x43   :  { %1438 = vmatpush.bf16.msra.mxu1 %v1417_v26  ;;  %830 = vmatmul.bf16.vlgmr.msrb.gmra.mxu2 %v995_v35 }
  0x44   :  { %849 = vmatmul.bf16.vlgmr.msrb.gmra.mxu3 %v999_v36 }
  0x46   :  { %861 = vmatpush.bf16.msra.mxu0 %v1416_v37 }
  0x47   :  { %1439 = vmatpush.bf16.msra.mxu1 %v1416_v37 }
  0x4a   :  { %862 = vmatpush.bf16.msra.mxu0 %v1415_v38 }
  0x4b   :  { %1440 = vmatpush.bf16.msra.mxu1 %v1415_v38 }
  0x4e   :  { %863 = vmatpush.bf16.msra.mxu0 %v1414_v39 }
  0x4f   :  { %1441 = vmatpush.bf16.msra.mxu1 %v1414_v39 }
  0x51   :  { %797 = vmatmul.bf16.gmra.mxu0 %v1023_v49 }
  0x52   :  { %864 = vmatpush.bf16.msra.mxu0 %v1413_v46  ;;  %816 = vmatmul.bf16.gmra.mxu1 %v1027_v50 }
  0x53   :  { %1442 = vmatpush.bf16.msra.mxu1 %v1413_v46  ;;  %835 = vmatmul.bf16.gmra.mxu2 %v1031_v51 }
  0x54   :  { %854 = vmatmul.bf16.gmra.mxu3 %v1035_v52 }
  0x56   :  { %865 = vmatpush.bf16.msra.mxu0 %v1412_v53 }
  0x57   :  { %1443 = vmatpush.bf16.msra.mxu1 %v1412_v53 }
  0x5a   :  { %866 = vmatpush.bf16.msra.mxu0 %v1411_v54 }
  0x5b   :  { %1444 = vmatpush.bf16.msra.mxu1 %v1411_v54 }
  0x5e   :  { %867 = vmatpush.bf16.msra.mxu0 %v1410_v55 }
  0x5f   :  { %1445 = vmatpush.bf16.msra.mxu1 %v1410_v55 }
  0x61   :  { %868 = vmatmul.bf16.vlgmr.msra.gmra.mxu0 %v1003_v60 }
  0x62   :  { %873 = vmatmul.bf16.vlgmr.msra.gmra.mxu1 %v1039_v61 }
  0x9e   :  { %v717_v62 = vpop.f32.mrf.mxu0 }
  0x9f   :  { %v736_v63 = vpop.f32.mrf.mxu1 }
  0xa0   :  { %v737_v24 = vadd.f32 %v736_v63, %v717_v62 }
  0xa6   :  { %v755_v0 = vpop.f32.mrf.mxu2  ;;  %v719_v2 = vpop.f32.mrf.mxu0 }
  0xa7   :  { %v774_v1 = vpop.f32.mrf.mxu3  ;;  %v738_v3 = vpop.f32.mrf.mxu1  ;;  %v756_v25 = vadd.f32 %v755_v0, %v737_v24 }
  0xa8   :  { %v739_v26 = vadd.f32 %v738_v3, %v719_v2 }
  0xa9   :  { %v775_v34 = vadd.f32 %v774_v1, %v756_v25 }
  0xae   :  { %v757_v4 = vpop.f32.mrf.mxu2  ;;  %v722_v6 = vpop.f32.mrf.mxu0 }
  0xaf   :  { %v776_v5 = vpop.f32.mrf.mxu3  ;;  %v741_v7 = vpop.f32.mrf.mxu1  ;;  %v758_v28 = vadd.f32 %v757_v4, %v739_v26 }
  0xb0   :  { %v742_v27 = vadd.f32 %v741_v7, %v722_v6 }
  0xb1   :  { %v777_v36 = vadd.f32 %v776_v5, %v758_v28 }
  0xb6   :  { %v760_v8 = vpop.f32.mrf.mxu2  ;;  %v724_v10 = vpop.f32.mrf.mxu0 }
  0xb7   :  { %v779_v9 = vpop.f32.mrf.mxu3  ;;  %v743_v11 = vpop.f32.mrf.mxu1  ;;  %v761_v29 = vadd.f32 %v760_v8, %v742_v27 }
  0xb8   :  { %v744_v30 = vadd.f32 %v743_v11, %v724_v10 }
  0xb9   :  { %v780_v37 = vadd.f32 %v779_v9, %v761_v29 }
  0xbe   :  { %v762_v12 = vpop.f32.mrf.mxu2  ;;  %v793_v14 = vpop.f32.mrf.mxu0 }
  0xbf   :  { %v781_v13 = vpop.f32.mrf.mxu3  ;;  %v812_v15 = vpop.f32.mrf.mxu1  ;;  %v763_v35 = vadd.f32 %v762_v12, %v744_v30  ;;  %v794_v38 = vadd.f32 %v793_v14, %v775_v34 }
  0xc1   :  { %v782_v40 = vadd.f32 %v781_v13, %v763_v35  ;;  %v813_v43 = vadd.f32 %v812_v15, %v794_v38  ;;  %v1446_v35 = vld [vmem:[%s1824_s2] ss:$0 sm:$0xff] }
  0xc6   :  { %v831_v16 = vpop.f32.mrf.mxu2  ;;  %v795_v18 = vpop.f32.mrf.mxu0 }
  0xc7   :  { %v850_v17 = vpop.f32.mrf.mxu3  ;;  %v814_v19 = vpop.f32.mrf.mxu1  ;;  %v796_v41 = vadd.f32 %v795_v18, %v777_v36  ;;  %v832_v47 = vadd.f32 %v831_v16, %v813_v43 }
  0xc9   :  { %v815_v48 = vadd.f32 %v814_v19, %v796_v41  ;;  %v851_v54 = vadd.f32 %v850_v17, %v832_v47  ;;  %v1436_v41 = vld [vmem:[%s1826_s4 + $0x8] sm:$0xff]   ;;  %v1447_v47 = vld [vmem:[%s1825_s3] ss:$0 sm:$0xff] }
  0xce   :  { %v833_v20 = vpop.f32.mrf.mxu2  ;;  %v798_v21 = vpop.f32.mrf.mxu0 }
  0xcf   :  { %v817_v22 = vpop.f32.mrf.mxu1  ;;  %v852_v23 = vpop.f32.mrf.mxu3  ;;  %v799_v42 = vadd.f32 %v798_v21, %v780_v37  ;;  %v834_v51 = vadd.f32 %v833_v20, %v815_v48 }
  0xd1   :  { %v818_v49 = vadd.f32 %v817_v22, %v799_v42  ;;  %v853_v57 = vadd.f32 %v852_v23, %v834_v51  ;;  %v1425_v51 = vunpack.c.h.bf16 %v1436_v41 }
  0xd6   :  { %v836_v31 = vpop.f32.mrf.mxu2  ;;  %v800_v32 = vpop.f32.mrf.mxu0 }
  0xd7   :  { %v819_v33 = vpop.f32.mrf.mxu1  ;;  %v855_v39 = vpop.f32.mrf.mxu3  ;;  %v801_v44 = vadd.f32 %v800_v32, %v782_v40  ;;  %v837_v52 = vadd.f32 %v836_v31, %v818_v49  ;;  %v1419_v40 = vld [vmem:[%s1826_s4] sm:$0xff]  }
  0xd8   :  { %v1420_v48 = vunpack.c.l.bf16 %v1419_v40  ;;  %v1421_v49 = vunpack.c.h.bf16 %v1419_v40 }
  0xd9   :  { %v820_v53 = vadd.f32 %v819_v33, %v801_v44  ;;  %v856_v58 = vadd.f32 %v855_v39, %v837_v52 }
  0xde   :  { %v869_v45 = vpop.f32.mrf.mxu0  ;;  %v838_v50 = vpop.f32.mrf.mxu2 }
  0xdf   :  { %v874_v46 = vpop.f32.mrf.mxu1  ;;  %v839_v55 = vadd.f32 %v838_v50, %v820_v53  ;;  %v857_v56 = vpop.f32.mrf.mxu3  ;;  %v870_v59 = vadd.f32 %v869_v45, %v851_v54  ;;  %v1424_v50 = vunpack.c.l.bf16 %v1436_v41 }
  0xe0   :  { %v875_v63 = vadd.f32 %v874_v46, %v856_v58 }
  0xe1   :  { %v858_v62 = vadd.f32 %v857_v56, %v839_v55  ;;  %v891_v1 = vmul.f32 %v870_v59, %v870_v59 }
  0xe2   :  { %v893_v5 = vmul.f32 %v875_v63, %v875_v63 }
  0xe6   :  { %v871_v60 = vpop.f32.mrf.mxu0 }
  0xe7   :  { %v876_v61 = vpop.f32.mrf.mxu1  ;;  %v872_v0 = vadd.f32 %v871_v60, %v853_v57 }
  0xe8   :  { %v877_v4 = vadd.f32 %v876_v61, %v858_v62 }
  0xe9   :  { %v881_v2 = vadd.f32 %v872_v0, %v870_v59  ;;  %v892_v3 = vmul.f32 %v872_v0, %v872_v0 }
  0xea   :  { %v894_v9 = vmul.f32 %v877_v4, %v877_v4 }
  0xeb   :  { %v895_v6 = vadd.f32 %v892_v3, %v891_v1  ;;  %v882_v7 = vadd.f32 %v881_v2, %v875_v63 }
  0xed   :  { %v883_v8 = vadd.f32 %v882_v7, %v877_v4  ;;  %v896_v10 = vadd.f32 %v895_v6, %v893_v5 }
  0xef   :  { %v884_v11 = vrot.slane %v883_v8, 4  ;;  %v897_v12 = vadd.f32 %v896_v10, %v894_v9 }
  0xf1   :  { %v885_v13 = vadd.f32 %v884_v11, %v883_v8  ;;  %v898_v14 = vrot.slane %v897_v12, 4 }
  0xf3   :  { %v886_v15 = vrot.slane %v885_v13, 2  ;;  %v899_v16 = vadd.f32 %v898_v14, %v897_v12 }
  0xf5   :  { %v887_v17 = vadd.f32 %v886_v15, %v885_v13  ;;  %v900_v18 = vrot.slane %v899_v16, 2 }
  0xf7   :  { %v888_v19 = vrot.slane %v887_v17, 1  ;;  %v901_v20 = vadd.f32 %v900_v18, %v899_v16 }
  0xf9   :  { %v889_v21 = vadd.f32 %v888_v19, %v887_v17  ;;  %v902_v22 = vrot.slane %v901_v20, 1 }
  0xfb   :  { %v890_v23 = vmul.f32 0.03125, %v889_v21  ;;  %v903_v24 = vadd.f32 %v902_v22, %v901_v20 }
  0xfd   :  { %v904_v25 = vmul.f32 0.03125, %v903_v24  ;;  %v905_v26 = vmul.f32 %v890_v23, %v890_v23  ;;  %v907_v36 = vsub.f32 %v870_v59, %v890_v23  ;;  %v908_v37 = vsub.f32 %v872_v0, %v890_v23 }
  0xfe   :  { %v909_v38 = vsub.f32 %v875_v63, %v890_v23  ;;  %v910_v39 = vsub.f32 %v877_v4, %v890_v23 }
  0xff   :  { %v906_v27 = vsub.f32 %v904_v25, %v905_v26 }
 0x101   :  { %v911_v28 = vadd.f32 1e-05, %v906_v27 }
 0x103   :  { %1448 = vrsqrt.f32 %v911_v28  ;;  %vm918_vm1 = vweird.f32 %v911_v28 }
 0x109   :  { %v1449_v29 = vpop.eup %1448 }
 0x10a   :  { %v913_v30 = vmul.f32 %v1449_v29, %v911_v28  ;;  %vm919_vm0 = vweird.f32 %v1449_v29 }
 0x10b   :  { %vm920_vm2 = vmor %vm918_vm1, %vm919_vm0 }
 0x10c   :  { %v914_v31 = vmul.f32 %v1449_v29, %v913_v30 }
 0x10e   :  { %v915_v32 = vmul.f32 0.5, %v914_v31 }
 0x110   :  { %v916_v33 = vsub.f32 1.5, %v915_v32 }
 0x112   :  { %v917_v34 = vmul.f32 %v1449_v29, %v916_v33 }
 0x114   :  { %v921_v42 = vsel %vm920_vm2, %v1449_v29, %v917_v34 }
 0x115   :  { %v922_v43 = vmul.f32 %v921_v42, %v907_v36  ;;  %v923_v44 = vmul.f32 %v921_v42, %v908_v37  ;;  %v924_v45 = vmul.f32 %v921_v42, %v909_v38  ;;  %v925_v46 = vmul.f32 %v921_v42, %v910_v39 }
 0x117   :  { %v929_v52 = vmul.f32 %v1446_v35, %v922_v43  ;;  %v930_v53 = vmul.f32 %v1446_v35, %v923_v44  ;;  %v931_v54 = vmul.f32 %v1446_v35, %v924_v45  ;;  %v932_v55 = vmul.f32 %v1446_v35, %v925_v46 }
 0x119   :  { %v936_v56 = vadd.f32 %v1447_v47, %v929_v52  ;;  %v937_v57 = vadd.f32 %v1447_v47, %v930_v53  ;;  %v938_v58 = vadd.f32 %v1447_v47, %v931_v54  ;;  %v939_v59 = vadd.f32 %v1447_v47, %v932_v55 }
 0x11b   :  { %v948_v60 = vadd.f32 %v1420_v48, %v936_v56  ;;  %v949_v61 = vadd.f32 %v1421_v49, %v937_v57  ;;  %v950_v62 = vadd.f32 %v1424_v50, %v938_v58  ;;  %v951_v63 = vadd.f32 %v1425_v51, %v939_v59 }
 0x11d   :  { %v952_v0 = vmax.f32 %v948_v60, 0.0  ;;  %v953_v1 = vmax.f32 %v949_v61, 0.0  ;;  %v954_v2 = vmax.f32 %v950_v62, 0.0  ;;  %v955_v3 = vmax.f32 %v951_v63, 0.0 }
 0x11f   :  { %v1429_v4 = vpack.c.bf16 %v953_v1, %v952_v0  ;;  %v1434_v5 = vpack.c.bf16 %v955_v3, %v954_v2 }
 0x121   :  { %1430 = vst [vmem:[%s1827_s5] sm:$0xff] %v1429_v4  }
 0x122   :  { %1437 = vst [vmem:[%s1827_s5 + $0x8] sm:$0xff] %v1434_v5  }

// kernel: resnet_forward.17
= control target key start
LH: loop header
LB: loop body
LE: loop exit
PB: predicated region body
PF: predicated region fallthrough
CT: control target
= control target key end

     0   :  { %s1423_s1 = inlined_call_operand.vmem [shape: bf16[1152,128], index: 1, kind: input, shape index: {}]   ;;  %s1424_s0 = inlined_call_operand.vmem [shape: bf16[8,1152], index: 0, kind: input, shape index: {}]   ;;  %s1425_s2 = inlined_call_operand.vmem [shape: f32[1,128], index: 2, kind: input, shape index: {}]   ;;  %s1426_s3 = inlined_call_operand.vmem [shape: f32[1,128], index: 3, kind: input, shape index: {}]   ;;  %s1427_s4 = inlined_call_operand.vmem [shape: bf16[8,128], index: 4, kind: output, shape index: {}]  }
   0x1   :  { %v1089_v0 = vld [vmem:[%s1423_s1 + $0x38] sm:$0xff]  ;;  %v1088_v4 = vld [vmem:[%s1423_s1 + $0x30] sm:$0xff]  ;;  %v1087_v8 = vld [vmem:[%s1423_s1 + $0x28] sm:$0xff] }
   0x2   :  { %v1105_v1 = vld [vmem:[%s1423_s1 + $0xb8] sm:$0xff]  ;;  %630 = vmatpush.bf16.msra.mxu0 %v1089_v0  ;;  %v1104_v5 = vld [vmem:[%s1423_s1 + $0xb0] sm:$0xff]  ;;  %v1103_v9 = vld [vmem:[%s1423_s1 + $0xa8] sm:$0xff] }
   0x3   :  { %v1113_v2 = vld [vmem:[%s1423_s1 + $0xf8] sm:$0xff]  ;;  %656 = vmatpush.bf16.msra.mxu2 %v1105_v1  ;;  %v1112_v6 = vld [vmem:[%s1423_s1 + $0xf0] sm:$0xff]  ;;  %v1111_v10 = vld [vmem:[%s1423_s1 + $0xe8] sm:$0xff] }
   0x4   :  { %v1097_v3 = vld [vmem:[%s1423_s1 + $0x78] sm:$0xff]  ;;  %669 = vmatpush.bf16.msra.mxu3 %v1113_v2  ;;  %v1096_v7 = vld [vmem:[%s1423_s1 + $0x70] sm:$0xff]  ;;  %v1095_v11 = vld [vmem:[%s1423_s1 + $0x68] sm:$0xff] }
   0x5   :  { %643 = vmatpush.bf16.msra.mxu1 %v1097_v3  ;;  %v1086_v12 = vld [vmem:[%s1423_s1 + $0x20] sm:$0xff]  ;;  %v1085_v16 = vld [vmem:[%s1423_s1 + $0x18] sm:$0xff]  ;;  %v1084_v20 = vld [vmem:[%s1423_s1 + $0x10] sm:$0xff] }
   0x6   :  { %631 = vmatpush.bf16.msra.mxu0 %v1088_v4  ;;  %v1102_v13 = vld [vmem:[%s1423_s1 + $0xa0] sm:$0xff]  ;;  %v1101_v17 = vld [vmem:[%s1423_s1 + $0x98] sm:$0xff]  ;;  %v1100_v21 = vld [vmem:[%s1423_s1 + $0x90] sm:$0xff] }
   0x7   :  { %657 = vmatpush.bf16.msra.mxu2 %v1104_v5  ;;  %v1110_v14 = vld [vmem:[%s1423_s1 + $0xe0] sm:$0xff]  ;;  %v1109_v18 = vld [vmem:[%s1423_s1 + $0xd8] sm:$0xff]  ;;  %v1108_v22 = vld [vmem:[%s1423_s1 + $0xd0] sm:$0xff] }
   0x8   :  { %670 = vmatpush.bf16.msra.mxu3 %v1112_v6  ;;  %v1094_v15 = vld [vmem:[%s1423_s1 + $0x60] sm:$0xff]  ;;  %v1093_v19 = vld [vmem:[%s1423_s1 + $0x58] sm:$0xff]  ;;  %v1092_v23 = vld [vmem:[%s1423_s1 + $0x50] sm:$0xff] }
   0x9   :  { %644 = vmatpush.bf16.msra.mxu1 %v1096_v7  ;;  %v1083_v24 = vld [vmem:[%s1423_s1 + $0x8] sm:$0xff]  ;;  %v17_v29 = vld [vmem:[%s1424_s0] sm:$0xff]  ;;  %v1121_v34 = vld [vmem:[%s1423_s1 + $0x138] sm:$0xff] }
   0xa   :  { %632 = vmatpush.bf16.msra.mxu0 %v1087_v8  ;;  %v1099_v25 = vld [vmem:[%s1423_s1 + $0x88] sm:$0xff]  ;;  %v1082_v30 = vld [vmem:[%s1423_s1] sm:$0xff]  ;;  %v171_v33 = vunpack.c.l.b16 %v17_v29  ;;  %v1137_v35 = vld [vmem:[%s1423_s1 + $0x1b8] sm:$0xff]  ;;  %v172_v39 = vunpack.c.h.b16 %v17_v29 }
   0xb   :  { %658 = vmatpush.bf16.msra.mxu2 %v1103_v9  ;;  %v1107_v26 = vld [vmem:[%s1423_s1 + $0xc8] sm:$0xff]  ;;  %v1098_v31 = vld [vmem:[%s1423_s1 + $0x80] sm:$0xff]  ;;  %v1145_v40 = vld [vmem:[%s1423_s1 + $0x1f8] sm:$0xff] }
   0xc   :  { %671 = vmatpush.bf16.msra.mxu3 %v1111_v10  ;;  %v1091_v27 = vld [vmem:[%s1423_s1 + $0x48] sm:$0xff]  ;;  %v1106_v36 = vld [vmem:[%s1423_s1 + $0xc0] sm:$0xff]  ;;  %v1129_v41 = vld [vmem:[%s1423_s1 + $0x178] sm:$0xff]  ;;  %v180_v43 = vpack.c.b16 %v171_v33, %v171_v33  ;;  %v181_v47 = vpack.c.b16 %v172_v39, %v172_v39 }
   0xd   :  { %645 = vmatpush.bf16.msra.mxu1 %v1095_v11  ;;  %v18_v28 = vld [vmem:[%s1424_s0 + $0x8] sm:$0xff]  ;;  %v1090_v37 = vld [vmem:[%s1423_s1 + $0x40] sm:$0xff]  ;;  %v1120_v44 = vld [vmem:[%s1423_s1 + $0x130] sm:$0xff] }
   0xe   :  { %633 = vmatpush.bf16.msra.mxu0 %v1086_v12  ;;  %v173_v32 = vunpack.c.l.b16 %v18_v28  ;;  %v174_v38 = vunpack.c.h.b16 %v18_v28  ;;  %v1136_v45 = vld [vmem:[%s1423_s1 + $0x1b0] sm:$0xff]  ;;  %v1119_v50 = vld [vmem:[%s1423_s1 + $0x128] sm:$0xff]  ;;  %v1118_v54 = vld [vmem:[%s1423_s1 + $0x120] sm:$0xff] }
   0xf   :  { %659 = vmatpush.bf16.msra.mxu2 %v1102_v13  ;;  %v1144_v48 = vld [vmem:[%s1423_s1 + $0x1f0] sm:$0xff]  ;;  %v1135_v51 = vld [vmem:[%s1423_s1 + $0x1a8] sm:$0xff]  ;;  %v1134_v55 = vld [vmem:[%s1423_s1 + $0x1a0] sm:$0xff] }
  0x10   :  { %672 = vmatpush.bf16.msra.mxu3 %v1110_v14  ;;  %v182_v42 = vpack.c.b16 %v173_v32, %v173_v32  ;;  %v183_v46 = vpack.c.b16 %v174_v38, %v174_v38  ;;  %v1128_v49 = vld [vmem:[%s1423_s1 + $0x170] sm:$0xff]  ;;  %v1143_v52 = vld [vmem:[%s1423_s1 + $0x1e8] sm:$0xff]  ;;  %v1142_v56 = vld [vmem:[%s1423_s1 + $0x1e0] sm:$0xff] }
  0x11   :  { %646 = vmatpush.bf16.msra.mxu1 %v1094_v15  ;;  %v1127_v53 = vld [vmem:[%s1423_s1 + $0x168] sm:$0xff]  ;;  %v1126_v57 = vld [vmem:[%s1423_s1 + $0x160] sm:$0xff]  ;;  %v1117_v58 = vld [vmem:[%s1423_s1 + $0x118] sm:$0xff] }
  0x12   :  { %634 = vmatpush.bf16.msra.mxu0 %v1085_v16  ;;  %v1133_v59 = vld [vmem:[%s1423_s1 + $0x198] sm:$0xff]  ;;  %v1116_v62 = vld [vmem:[%s1423_s1 + $0x110] sm:$0xff]  ;;  %v1115_v2 = vld [vmem:[%s1423_s1 + $0x108] sm:$0xff] }
  0x13   :  { %660 = vmatpush.bf16.msra.mxu2 %v1101_v17  ;;  %v1141_v60 = vld [vmem:[%s1423_s1 + $0x1d8] sm:$0xff]  ;;  %v1132_v63 = vld [vmem:[%s1423_s1 + $0x190] sm:$0xff]  ;;  %v1131_v3 = vld [vmem:[%s1423_s1 + $0x188] sm:$0xff] }
  0x14   :  { %673 = vmatpush.bf16.msra.mxu3 %v1109_v18  ;;  %v1125_v61 = vld [vmem:[%s1423_s1 + $0x158] sm:$0xff]  ;;  %v1140_v0 = vld [vmem:[%s1423_s1 + $0x1d0] sm:$0xff]  ;;  %v1139_v6 = vld [vmem:[%s1423_s1 + $0x1c8] sm:$0xff] }
  0x15   :  { %647 = vmatpush.bf16.msra.mxu1 %v1093_v19  ;;  %v1124_v1 = vld [vmem:[%s1423_s1 + $0x150] sm:$0xff]  ;;  %v20_v4 = vld [vmem:[%s1424_s0 + $0x18] sm:$0xff]  ;;  %v1123_v7 = vld [vmem:[%s1423_s1 + $0x148] sm:$0xff] }
  0x16   :  { %635 = vmatpush.bf16.msra.mxu0 %v1084_v20  ;;  %v19_v5 = vld [vmem:[%s1424_s0 + $0x10] sm:$0xff]  ;;  %v177_v8 = vunpack.c.l.b16 %v20_v4  ;;  %v1114_v10 = vld [vmem:[%s1423_s1 + $0x100] sm:$0xff]  ;;  %v1153_v12 = vld [vmem:[%s1423_s1 + $0x238] sm:$0xff]  ;;  %v178_v13 = vunpack.c.h.b16 %v20_v4 }
  0x17   :  { %661 = vmatpush.bf16.msra.mxu2 %v1100_v21  ;;  %v175_v9 = vunpack.c.l.b16 %v19_v5  ;;  %v1130_v11 = vld [vmem:[%s1423_s1 + $0x180] sm:$0xff]  ;;  %v176_v16 = vunpack.c.h.b16 %v19_v5  ;;  %v1152_v19 = vld [vmem:[%s1423_s1 + $0x230] sm:$0xff] }
  0x18   :  { %674 = vmatpush.bf16.msra.mxu3 %v1108_v22  ;;  %v1138_v14 = vld [vmem:[%s1423_s1 + $0x1c0] sm:$0xff]  ;;  %v186_v17 = vpack.c.b16 %v177_v8, %v177_v8  ;;  %v187_v20 = vpack.c.b16 %v178_v13, %v178_v13  ;;  %v1151_v22 = vld [vmem:[%s1423_s1 + $0x228] sm:$0xff] }
  0x19   :  { %648 = vmatpush.bf16.msra.mxu1 %v1092_v23  ;;  %v1122_v15 = vld [vmem:[%s1423_s1 + $0x140] sm:$0xff]  ;;  %v184_v18 = vpack.c.b16 %v175_v9, %v175_v9  ;;  %v185_v21 = vpack.c.b16 %v176_v16, %v176_v16 }
  0x1a   :  { %636 = vmatpush.bf16.msra.mxu0 %v1083_v24  ;;  %v1150_v23 = vld [vmem:[%s1423_s1 + $0x220] sm:$0xff]  ;;  %v1149_v24 = vld [vmem:[%s1423_s1 + $0x218] sm:$0xff] }
  0x1b   :  { %662 = vmatpush.bf16.msra.mxu2 %v1099_v25  ;;  %v1148_v25 = vld [vmem:[%s1423_s1 + $0x210] sm:$0xff]  ;;  %v1146_v29 = vld [vmem:[%s1423_s1 + $0x200] sm:$0xff] }
  0x1c   :  { %675 = vmatpush.bf16.msra.mxu3 %v1107_v26  ;;  %v1147_v26 = vld [vmem:[%s1423_s1 + $0x208] sm:$0xff] }
  0x1d   :  { %649 = vmatpush.bf16.msra.mxu1 %v1091_v27  ;;  %v21_v27 = vld [vmem:[%s1424_s0 + $0x20] sm:$0xf] }
  0x1e   :  { %637 = vmatpush.bf16.msra.mxu0 %v1082_v30  ;;  %v179_v28 = vunpack.c.l.b16 %v21_v27 }
  0x1f   :  { %663 = vmatpush.bf16.msra.mxu2 %v1098_v31 }
  0x20   :  { %676 = vmatpush.bf16.msra.mxu3 %v1106_v36  ;;  %v188_v30 = vpack.c.b16 %v179_v28, %v179_v28 }
  0x21   :  { %650 = vmatpush.bf16.msra.mxu1 %v1090_v37  ;;  %638 = vmatmul.bf16.vlgmr.msra.gmra.mxu0 %v180_v43 }
  0x22   :  { %682 = vmatpush.bf16.msrb.mxu0 %v1121_v34  ;;  %664 = vmatmul.bf16.vlgmr.msra.gmra.mxu2 %v182_v42 }
  0x23   :  { %708 = vmatpush.bf16.msrb.mxu2 %v1137_v35  ;;  %677 = vmatmul.bf16.vlgmr.msra.gmra.mxu3 %v183_v46 }
  0x24   :  { %721 = vmatpush.bf16.msrb.mxu3 %v1145_v40  ;;  %651 = vmatmul.bf16.vlgmr.msra.gmra.mxu1 %v181_v47 }
  0x25   :  { %695 = vmatpush.bf16.msrb.mxu1 %v1129_v41 }
  0x26   :  { %683 = vmatpush.bf16.msrb.mxu0 %v1120_v44 }
  0x27   :  { %709 = vmatpush.bf16.msrb.mxu2 %v1136_v45 }
  0x28   :  { %722 = vmatpush.bf16.msrb.mxu3 %v1144_v48 }
  0x29   :  { %696 = vmatpush.bf16.msrb.mxu1 %v1128_v49 }
  0x2a   :  { %684 = vmatpush.bf16.msrb.mxu0 %v1119_v50 }
  0x2b   :  { %710 = vmatpush.bf16.msrb.mxu2 %v1135_v51 }
  0x2c   :  { %723 = vmatpush.bf16.msrb.mxu3 %v1143_v52 }
  0x2d   :  { %697 = vmatpush.bf16.msrb.mxu1 %v1127_v53 }
  0x2e   :  { %685 = vmatpush.bf16.msrb.mxu0 %v1118_v54 }
  0x2f   :  { %711 = vmatpush.bf16.msrb.mxu2 %v1134_v55 }
  0x30   :  { %724 = vmatpush.bf16.msrb.mxu3 %v1142_v56 }
  0x31   :  { %698 = vmatpush.bf16.msrb.mxu1 %v1126_v57 }
  0x32   :  { %686 = vmatpush.bf16.msrb.mxu0 %v1117_v58 }
  0x33   :  { %712 = vmatpush.bf16.msrb.mxu2 %v1133_v59 }
  0x34   :  { %725 = vmatpush.bf16.msrb.mxu3 %v1141_v60 }
  0x35   :  { %699 = vmatpush.bf16.msrb.mxu1 %v1125_v61 }
  0x36   :  { %687 = vmatpush.bf16.msrb.mxu0 %v1116_v62 }
  0x37   :  { %713 = vmatpush.bf16.msrb.mxu2 %v1132_v63 }
  0x38   :  { %726 = vmatpush.bf16.msrb.mxu3 %v1140_v0 }
  0x39   :  { %700 = vmatpush.bf16.msrb.mxu1 %v1124_v1 }
  0x3a   :  { %688 = vmatpush.bf16.msrb.mxu0 %v1115_v2 }
  0x3b   :  { %714 = vmatpush.bf16.msrb.mxu2 %v1131_v3 }
  0x3c   :  { %727 = vmatpush.bf16.msrb.mxu3 %v1139_v6 }
  0x3d   :  { %701 = vmatpush.bf16.msrb.mxu1 %v1123_v7 }
  0x3e   :  { %689 = vmatpush.bf16.msrb.mxu0 %v1114_v10 }
  0x3f   :  { %715 = vmatpush.bf16.msrb.mxu2 %v1130_v11 }
  0x40   :  { %728 = vmatpush.bf16.msrb.mxu3 %v1138_v14 }
  0x41   :  { %702 = vmatpush.bf16.msrb.mxu1 %v1122_v15  ;;  %690 = vmatmul.bf16.vlgmr.msrb.gmra.mxu0 %v184_v18  ;;  %v1154_v18 = vld [vmem:[%s1425_s2] ss:$0 sm:$0xff] }
  0x42   :  { %734 = vmatpush.bf16.msra.mxu0 %v1153_v12  ;;  %716 = vmatmul.bf16.vlgmr.msrb.gmra.mxu2 %v186_v17 }
  0x43   :  { %729 = vmatmul.bf16.vlgmr.msrb.gmra.mxu3 %v187_v20 }
  0x44   :  { %703 = vmatmul.bf16.vlgmr.msrb.gmra.mxu1 %v185_v21  ;;  %v1155_v21 = vld [vmem:[%s1426_s3] ss:$0 sm:$0xff] }
  0x46   :  { %735 = vmatpush.bf16.msra.mxu0 %v1152_v19 }
  0x4a   :  { %736 = vmatpush.bf16.msra.mxu0 %v1151_v22 }
  0x4e   :  { %737 = vmatpush.bf16.msra.mxu0 %v1150_v23 }
  0x52   :  { %738 = vmatpush.bf16.msra.mxu0 %v1149_v24 }
  0x56   :  { %739 = vmatpush.bf16.msra.mxu0 %v1148_v25 }
  0x5a   :  { %740 = vmatpush.bf16.msra.mxu0 %v1147_v26 }
  0x5e   :  { %741 = vmatpush.bf16.msra.mxu0 %v1146_v29 }
  0x61   :  { %742 = vmatmul.bf16.vlgmr.msra.gmra.mxu0 %v188_v30 }
  0x9e   :  { %v639_v31 = vpop.f32.mrf.mxu0 }
  0xa1   :  { %v652_v32 = vpop.f32.mrf.mxu1 }
  0xa2   :  { %v653_v41 = vadd.f32 %v652_v32, %v639_v31 }
  0xa5   :  { %v665_v33 = vpop.f32.mrf.mxu2 }
  0xa6   :  { %v678_v34 = vpop.f32.mrf.mxu3  ;;  %v641_v35 = vpop.f32.mrf.mxu0  ;;  %v666_v43 = vadd.f32 %v665_v33, %v653_v41 }
  0xa8   :  { %v679_v47 = vadd.f32 %v678_v34, %v666_v43 }
  0xa9   :  { %v654_v36 = vpop.f32.mrf.mxu1 }
  0xad   :  { %v667_v37 = vpop.f32.mrf.mxu2 }
  0xae   :  { %v680_v38 = vpop.f32.mrf.mxu3 }
  0xbe   :  { %v691_v39 = vpop.f32.mrf.mxu0 }
  0xbf   :  { %v692_v49 = vadd.f32 %v691_v39, %v679_v47 }
  0xc1   :  { %v704_v40 = vpop.f32.mrf.mxu1 }
  0xc2   :  { %v705_v51 = vadd.f32 %v704_v40, %v692_v49 }
  0xc5   :  { %v717_v42 = vpop.f32.mrf.mxu2 }
  0xc6   :  { %v730_v44 = vpop.f32.mrf.mxu3  ;;  %v693_v45 = vpop.f32.mrf.mxu0  ;;  %v718_v52 = vadd.f32 %v717_v42, %v705_v51 }
  0xc8   :  { %v731_v53 = vadd.f32 %v730_v44, %v718_v52 }
  0xc9   :  { %v706_v46 = vpop.f32.mrf.mxu1 }
  0xcd   :  { %v719_v48 = vpop.f32.mrf.mxu2 }
  0xce   :  { %v732_v50 = vpop.f32.mrf.mxu3 }
  0xde   :  { %v743_v54 = vpop.f32.mrf.mxu0 }
  0xdf   :  { %v744_v55 = vadd.f32 %v743_v54, %v731_v53 }
  0xe1   :  { %v749_v56 = vrot.slane %v744_v55, 4  ;;  %v756_v57 = vmul.f32 %v744_v55, %v744_v55 }
  0xe3   :  { %v750_v58 = vadd.f32 %v749_v56, %v744_v55  ;;  %v757_v59 = vrot.slane %v756_v57, 4 }
  0xe5   :  { %v751_v60 = vrot.slane %v750_v58, 2  ;;  %v758_v61 = vadd.f32 %v757_v59, %v756_v57 }
  0xe6   :  { %v745_v62 = vpop.f32.mrf.mxu0 }
  0xe7   :  { %v752_v63 = vadd.f32 %v751_v60, %v750_v58  ;;  %v759_v0 = vrot.slane %v758_v61, 2 }
  0xe9   :  { %v753_v1 = vrot.slane %v752_v63, 1  ;;  %v760_v2 = vadd.f32 %v759_v0, %v758_v61 }
  0xeb   :  { %v754_v3 = vadd.f32 %v753_v1, %v752_v63  ;;  %v761_v4 = vrot.slane %v760_v2, 1 }
  0xed   :  { %v755_v5 = vmul.f32 0.125, %v754_v3  ;;  %v762_v6 = vadd.f32 %v761_v4, %v760_v2 }
  0xef   :  { %v763_v7 = vmul.f32 0.125, %v762_v6  ;;  %v764_v8 = vmul.f32 %v755_v5, %v755_v5  ;;  %v766_v17 = vsub.f32 %v744_v55, %v755_v5 }
  0xf1   :  { %v765_v9 = vsub.f32 %v763_v7, %v764_v8 }
  0xf3   :  { %v767_v10 = vadd.f32 1e-05, %v765_v9 }
  0xf5   :  { %1156 = vrsqrt.f32 %v767_v10  ;;  %vm774_vm1 = vweird.f32 %v767_v10 }
  0xfb   :  { %v1157_v11 = vpop.eup %1156 }
  0xfc   :  { %v769_v12 = vmul.f32 %v1157_v11, %v767_v10  ;;  %vm775_vm0 = vweird.f32 %v1157_v11 }
  0xfd   :  { %vm776_vm2 = vmor %vm774_vm1, %vm775_vm0 }
  0xfe   :  { %v770_v13 = vmul.f32 %v1157_v11, %v769_v12 }
 0x100   :  { %v771_v14 = vmul.f32 0.5, %v770_v13 }
 0x102   :  { %v772_v15 = vsub.f32 1.5, %v771_v14 }
 0x104   :  { %v773_v16 = vmul.f32 %v1157_v11, %v772_v15 }
 0x106   :  { %v777_v19 = vsel %vm776_vm2, %v1157_v11, %v773_v16 }
 0x107   :  { %v778_v20 = vmul.f32 %v777_v19, %v766_v17 }
 0x109   :  { %v782_v22 = vmul.f32 %v1154_v18, %v778_v20 }
 0x10b   :  { %v786_v23 = vadd.f32 %v1155_v21, %v782_v22 }
 0x10d   :  { %v787_v24 = vmax.f32 %v786_v23, 0.0 }
 0x10f   :  { %v788_v25 = vpack.c.bf16 %v787_v24, %v787_v24 }
 0x111   :  { %789 = vst [vmem:[%s1427_s4] sm:$0xf] %v788_v25 }

// kernel: resnet_forward.18
= control target key start
LH: loop header
LB: loop body
LE: loop exit
PB: predicated region body
PF: predicated region fallthrough
CT: control target
= control target key end

     0   :  { %s1665_s1 = inlined_call_operand.vmem [shape: bf16[1152,128], index: 1, kind: input, shape index: {}]   ;;  %s1666_s0 = inlined_call_operand.vmem [shape: bf16[8,1152], index: 0, kind: input, shape index: {}]   ;;  %s1667_s5 = inlined_call_operand.vmem [shape: bf16[128,128], index: 5, kind: input, shape index: {}]   ;;  %s1668_s2 = inlined_call_operand.vmem [shape: f32[1,128], index: 2, kind: input, shape index: {}]   ;;  %s1669_s3 = inlined_call_operand.vmem [shape: f32[1,128], index: 3, kind: input, shape index: {}]   ;;  %s1670_s4 = inlined_call_operand.vmem [shape: bf16[8,128], index: 4, kind: input, shape index: {}]   ;;  %s1671_s6 = inlined_call_operand.vmem [shape: f32[1,128], index: 6, kind: input, shape index: {}]   ;;  %s1672_s7 = inlined_call_operand.vmem [shape: f32[1,128], index: 7, kind: input, shape index: {}]   ;;  %s1673_s8 = inlined_call_operand.vmem [shape: bf16[8,128], index: 8, kind: output, shape index: {}]  }
   0x1   :  { %v1252_v0 = vld [vmem:[%s1665_s1 + $0x38] sm:$0xff]  ;;  %v1251_v4 = vld [vmem:[%s1665_s1 + $0x30] sm:$0xff]  ;;  %v1250_v8 = vld [vmem:[%s1665_s1 + $0x28] sm:$0xff] }
   0x2   :  { %v1260_v1 = vld [vmem:[%s1665_s1 + $0x78] sm:$0xff]  ;;  %642 = vmatpush.bf16.msra.mxu0 %v1252_v0  ;;  %v1259_v5 = vld [vmem:[%s1665_s1 + $0x70] sm:$0xff]  ;;  %v1258_v9 = vld [vmem:[%s1665_s1 + $0x68] sm:$0xff] }
   0x3   :  { %v1268_v2 = vld [vmem:[%s1665_s1 + $0xb8] sm:$0xff]  ;;  %655 = vmatpush.bf16.msra.mxu1 %v1260_v1  ;;  %v1267_v6 = vld [vmem:[%s1665_s1 + $0xb0] sm:$0xff]  ;;  %v1266_v10 = vld [vmem:[%s1665_s1 + $0xa8] sm:$0xff] }
   0x4   :  { %v1276_v3 = vld [vmem:[%s1665_s1 + $0xf8] sm:$0xff]  ;;  %668 = vmatpush.bf16.msra.mxu2 %v1268_v2  ;;  %v1275_v7 = vld [vmem:[%s1665_s1 + $0xf0] sm:$0xff]  ;;  %v1274_v11 = vld [vmem:[%s1665_s1 + $0xe8] sm:$0xff] }
   0x5   :  { %681 = vmatpush.bf16.msra.mxu3 %v1276_v3  ;;  %v1249_v12 = vld [vmem:[%s1665_s1 + $0x20] sm:$0xff]  ;;  %v1248_v16 = vld [vmem:[%s1665_s1 + $0x18] sm:$0xff]  ;;  %v1247_v20 = vld [vmem:[%s1665_s1 + $0x10] sm:$0xff] }
   0x6   :  { %643 = vmatpush.bf16.msra.mxu0 %v1251_v4  ;;  %v1257_v13 = vld [vmem:[%s1665_s1 + $0x60] sm:$0xff]  ;;  %v1256_v17 = vld [vmem:[%s1665_s1 + $0x58] sm:$0xff]  ;;  %v1255_v21 = vld [vmem:[%s1665_s1 + $0x50] sm:$0xff] }
   0x7   :  { %656 = vmatpush.bf16.msra.mxu1 %v1259_v5  ;;  %v1265_v14 = vld [vmem:[%s1665_s1 + $0xa0] sm:$0xff]  ;;  %v1264_v18 = vld [vmem:[%s1665_s1 + $0x98] sm:$0xff]  ;;  %v1263_v22 = vld [vmem:[%s1665_s1 + $0x90] sm:$0xff] }
   0x8   :  { %669 = vmatpush.bf16.msra.mxu2 %v1267_v6  ;;  %v1273_v15 = vld [vmem:[%s1665_s1 + $0xe0] sm:$0xff]  ;;  %v1272_v19 = vld [vmem:[%s1665_s1 + $0xd8] sm:$0xff]  ;;  %v1271_v23 = vld [vmem:[%s1665_s1 + $0xd0] sm:$0xff] }
   0x9   :  { %682 = vmatpush.bf16.msra.mxu3 %v1275_v7  ;;  %v1246_v24 = vld [vmem:[%s1665_s1 + $0x8] sm:$0xff]  ;;  %v29_v26 = vld [vmem:[%s1666_s0] sm:$0xff]  ;;  %v1284_v35 = vld [vmem:[%s1665_s1 + $0x138] sm:$0xff] }
   0xa   :  { %644 = vmatpush.bf16.msra.mxu0 %v1250_v8  ;;  %v1254_v25 = vld [vmem:[%s1665_s1 + $0x48] sm:$0xff]  ;;  %v183_v30 = vunpack.c.l.b16 %v29_v26  ;;  %v1245_v31 = vld [vmem:[%s1665_s1] sm:$0xff]  ;;  %v184_v36 = vunpack.c.h.b16 %v29_v26  ;;  %v1292_v37 = vld [vmem:[%s1665_s1 + $0x178] sm:$0xff] }
   0xb   :  { %657 = vmatpush.bf16.msra.mxu1 %v1258_v9  ;;  %v1262_v27 = vld [vmem:[%s1665_s1 + $0x88] sm:$0xff]  ;;  %v1253_v32 = vld [vmem:[%s1665_s1 + $0x40] sm:$0xff]  ;;  %v1300_v38 = vld [vmem:[%s1665_s1 + $0x1b8] sm:$0xff] }
   0xc   :  { %670 = vmatpush.bf16.msra.mxu2 %v1266_v10  ;;  %v1270_v28 = vld [vmem:[%s1665_s1 + $0xc8] sm:$0xff]  ;;  %v1261_v34 = vld [vmem:[%s1665_s1 + $0x80] sm:$0xff]  ;;  %v192_v40 = vpack.c.b16 %v183_v30, %v183_v30  ;;  %v1308_v42 = vld [vmem:[%s1665_s1 + $0x1f8] sm:$0xff]  ;;  %v193_v45 = vpack.c.b16 %v184_v36, %v184_v36 }
   0xd   :  { %683 = vmatpush.bf16.msra.mxu3 %v1274_v11  ;;  %v30_v29 = vld [vmem:[%s1666_s0 + $0x8] sm:$0xff]  ;;  %v1269_v39 = vld [vmem:[%s1665_s1 + $0xc0] sm:$0xff]  ;;  %v1283_v44 = vld [vmem:[%s1665_s1 + $0x130] sm:$0xff] }
   0xe   :  { %645 = vmatpush.bf16.msra.mxu0 %v1249_v12  ;;  %v185_v33 = vunpack.c.l.b16 %v30_v29  ;;  %v186_v41 = vunpack.c.h.b16 %v30_v29  ;;  %v1291_v46 = vld [vmem:[%s1665_s1 + $0x170] sm:$0xff]  ;;  %v1282_v50 = vld [vmem:[%s1665_s1 + $0x128] sm:$0xff]  ;;  %v1281_v54 = vld [vmem:[%s1665_s1 + $0x120] sm:$0xff] }
   0xf   :  { %658 = vmatpush.bf16.msra.mxu1 %v1257_v13  ;;  %v1299_v47 = vld [vmem:[%s1665_s1 + $0x1b0] sm:$0xff]  ;;  %v1290_v51 = vld [vmem:[%s1665_s1 + $0x168] sm:$0xff]  ;;  %v1289_v55 = vld [vmem:[%s1665_s1 + $0x160] sm:$0xff] }
  0x10   :  { %671 = vmatpush.bf16.msra.mxu2 %v1265_v14  ;;  %v194_v43 = vpack.c.b16 %v185_v33, %v185_v33  ;;  %v195_v48 = vpack.c.b16 %v186_v41, %v186_v41  ;;  %v1307_v49 = vld [vmem:[%s1665_s1 + $0x1f0] sm:$0xff]  ;;  %v1298_v52 = vld [vmem:[%s1665_s1 + $0x1a8] sm:$0xff]  ;;  %v1297_v56 = vld [vmem:[%s1665_s1 + $0x1a0] sm:$0xff] }
  0x11   :  { %684 = vmatpush.bf16.msra.mxu3 %v1273_v15  ;;  %v1306_v53 = vld [vmem:[%s1665_s1 + $0x1e8] sm:$0xff]  ;;  %v1305_v57 = vld [vmem:[%s1665_s1 + $0x1e0] sm:$0xff]  ;;  %v1280_v58 = vld [vmem:[%s1665_s1 + $0x118] sm:$0xff] }
  0x12   :  { %646 = vmatpush.bf16.msra.mxu0 %v1248_v16  ;;  %v1288_v59 = vld [vmem:[%s1665_s1 + $0x158] sm:$0xff]  ;;  %v1279_v62 = vld [vmem:[%s1665_s1 + $0x110] sm:$0xff]  ;;  %v1278_v2 = vld [vmem:[%s1665_s1 + $0x108] sm:$0xff] }
  0x13   :  { %659 = vmatpush.bf16.msra.mxu1 %v1256_v17  ;;  %v1296_v60 = vld [vmem:[%s1665_s1 + $0x198] sm:$0xff]  ;;  %v1287_v63 = vld [vmem:[%s1665_s1 + $0x150] sm:$0xff]  ;;  %v1286_v4 = vld [vmem:[%s1665_s1 + $0x148] sm:$0xff] }
  0x14   :  { %672 = vmatpush.bf16.msra.mxu2 %v1264_v18  ;;  %v1304_v61 = vld [vmem:[%s1665_s1 + $0x1d8] sm:$0xff]  ;;  %v1295_v0 = vld [vmem:[%s1665_s1 + $0x190] sm:$0xff]  ;;  %v1294_v5 = vld [vmem:[%s1665_s1 + $0x188] sm:$0xff] }
  0x15   :  { %685 = vmatpush.bf16.msra.mxu3 %v1272_v19  ;;  %v1303_v1 = vld [vmem:[%s1665_s1 + $0x1d0] sm:$0xff]  ;;  %v32_v6 = vld [vmem:[%s1666_s0 + $0x18] sm:$0xff]  ;;  %v1302_v7 = vld [vmem:[%s1665_s1 + $0x1c8] sm:$0xff] }
  0x16   :  { %647 = vmatpush.bf16.msra.mxu0 %v1247_v20  ;;  %v31_v3 = vld [vmem:[%s1666_s0 + $0x10] sm:$0xff]  ;;  %v1277_v9 = vld [vmem:[%s1665_s1 + $0x100] sm:$0xff]  ;;  %v189_v10 = vunpack.c.l.b16 %v32_v6  ;;  %v1316_v14 = vld [vmem:[%s1665_s1 + $0x238] sm:$0xff]  ;;  %v190_v18 = vunpack.c.h.b16 %v32_v6 }
  0x17   :  { %660 = vmatpush.bf16.msra.mxu1 %v1255_v21  ;;  %v187_v8 = vunpack.c.l.b16 %v31_v3  ;;  %v188_v11 = vunpack.c.h.b16 %v31_v3  ;;  %v1285_v12 = vld [vmem:[%s1665_s1 + $0x140] sm:$0xff]  ;;  %v1324_v15 = vld [vmem:[%s1667_s5 + $0x38] sm:$0xff]  ;;  %v1315_v21 = vld [vmem:[%s1665_s1 + $0x230] sm:$0xff] }
  0x18   :  { %673 = vmatpush.bf16.msra.mxu2 %v1263_v22  ;;  %v1293_v13 = vld [vmem:[%s1665_s1 + $0x180] sm:$0xff]  ;;  %v198_v19 = vpack.c.b16 %v189_v10, %v189_v10  ;;  %v1323_v22 = vld [vmem:[%s1667_s5 + $0x30] sm:$0xff]  ;;  %v1320_v29 = vld [vmem:[%s1667_s5 + $0x18] sm:$0xff] }
  0x19   :  { %686 = vmatpush.bf16.msra.mxu3 %v1271_v23  ;;  %v1301_v16 = vld [vmem:[%s1665_s1 + $0x1c0] sm:$0xff]  ;;  %v196_v17 = vpack.c.b16 %v187_v8, %v187_v8  ;;  %v197_v20 = vpack.c.b16 %v188_v11, %v188_v11  ;;  %v199_v23 = vpack.c.b16 %v190_v18, %v190_v18  ;;  %v1311_v30 = vld [vmem:[%s1665_s1 + $0x210] sm:$0xff]  ;;  %v1318_v33 = vld [vmem:[%s1667_s5 + $0x8] sm:$0xff] }
  0x1a   :  { %648 = vmatpush.bf16.msra.mxu0 %v1246_v24  ;;  %v1314_v24 = vld [vmem:[%s1665_s1 + $0x228] sm:$0xff]  ;;  %v1313_v26 = vld [vmem:[%s1665_s1 + $0x220] sm:$0xff] }
  0x1b   :  { %661 = vmatpush.bf16.msra.mxu1 %v1254_v25  ;;  %v1322_v25 = vld [vmem:[%s1667_s5 + $0x28] sm:$0xff]  ;;  %v1309_v36 = vld [vmem:[%s1665_s1 + $0x200] sm:$0xff] }
  0x1c   :  { %674 = vmatpush.bf16.msra.mxu2 %v1262_v27  ;;  %v1321_v27 = vld [vmem:[%s1667_s5 + $0x20] sm:$0xff] }
  0x1d   :  { %687 = vmatpush.bf16.msra.mxu3 %v1270_v28  ;;  %v1312_v28 = vld [vmem:[%s1665_s1 + $0x218] sm:$0xff] }
  0x1e   :  { %649 = vmatpush.bf16.msra.mxu0 %v1245_v31  ;;  %v1319_v31 = vld [vmem:[%s1667_s5 + $0x10] sm:$0xff] }
  0x1f   :  { %662 = vmatpush.bf16.msra.mxu1 %v1253_v32  ;;  %v1310_v32 = vld [vmem:[%s1665_s1 + $0x208] sm:$0xff] }
  0x20   :  { %675 = vmatpush.bf16.msra.mxu2 %v1261_v34  ;;  %v33_v34 = vld [vmem:[%s1666_s0 + $0x20] sm:$0xf] }
  0x21   :  { %688 = vmatpush.bf16.msra.mxu3 %v1269_v39  ;;  %650 = vmatmul.bf16.vlgmr.msra.gmra.mxu0 %v192_v40  ;;  %v759_v39 = vld [vmem:[%s1670_s4] sm:$0xf] }
  0x22   :  { %694 = vmatpush.bf16.msrb.mxu0 %v1284_v35  ;;  %663 = vmatmul.bf16.vlgmr.msra.gmra.mxu1 %v193_v45  ;;  %v191_v35 = vunpack.c.l.b16 %v33_v34 }
  0x23   :  { %707 = vmatpush.bf16.msrb.mxu1 %v1292_v37  ;;  %676 = vmatmul.bf16.vlgmr.msra.gmra.mxu2 %v194_v43  ;;  %v1317_v37 = vld [vmem:[%s1667_s5] sm:$0xff] }
  0x24   :  { %720 = vmatpush.bf16.msrb.mxu2 %v1300_v38  ;;  %689 = vmatmul.bf16.vlgmr.msra.gmra.mxu3 %v195_v48  ;;  %v200_v38 = vpack.c.b16 %v191_v35, %v191_v35 }
  0x25   :  { %733 = vmatpush.bf16.msrb.mxu3 %v1308_v42 }
  0x26   :  { %695 = vmatpush.bf16.msrb.mxu0 %v1283_v44 }
  0x27   :  { %708 = vmatpush.bf16.msrb.mxu1 %v1291_v46 }
  0x28   :  { %721 = vmatpush.bf16.msrb.mxu2 %v1299_v47 }
  0x29   :  { %734 = vmatpush.bf16.msrb.mxu3 %v1307_v49 }
  0x2a   :  { %696 = vmatpush.bf16.msrb.mxu0 %v1282_v50 }
  0x2b   :  { %709 = vmatpush.bf16.msrb.mxu1 %v1290_v51 }
  0x2c   :  { %722 = vmatpush.bf16.msrb.mxu2 %v1298_v52 }
  0x2d   :  { %735 = vmatpush.bf16.msrb.mxu3 %v1306_v53 }
  0x2e   :  { %697 = vmatpush.bf16.msrb.mxu0 %v1281_v54 }
  0x2f   :  { %710 = vmatpush.bf16.msrb.mxu1 %v1289_v55 }
  0x30   :  { %723 = vmatpush.bf16.msrb.mxu2 %v1297_v56 }
  0x31   :  { %736 = vmatpush.bf16.msrb.mxu3 %v1305_v57 }
  0x32   :  { %698 = vmatpush.bf16.msrb.mxu0 %v1280_v58 }
  0x33   :  { %711 = vmatpush.bf16.msrb.mxu1 %v1288_v59 }
  0x34   :  { %724 = vmatpush.bf16.msrb.mxu2 %v1296_v60 }
  0x35   :  { %737 = vmatpush.bf16.msrb.mxu3 %v1304_v61 }
  0x36   :  { %699 = vmatpush.bf16.msrb.mxu0 %v1279_v62 }
  0x37   :  { %712 = vmatpush.bf16.msrb.mxu1 %v1287_v63 }
  0x38   :  { %725 = vmatpush.bf16.msrb.mxu2 %v1295_v0 }
  0x39   :  { %738 = vmatpush.bf16.msrb.mxu3 %v1303_v1 }
  0x3a   :  { %700 = vmatpush.bf16.msrb.mxu0 %v1278_v2 }
  0x3b   :  { %713 = vmatpush.bf16.msrb.mxu1 %v1286_v4 }
  0x3c   :  { %726 = vmatpush.bf16.msrb.mxu2 %v1294_v5 }
  0x3d   :  { %739 = vmatpush.bf16.msrb.mxu3 %v1302_v7 }
  0x3e   :  { %701 = vmatpush.bf16.msrb.mxu0 %v1277_v9 }
  0x3f   :  { %714 = vmatpush.bf16.msrb.mxu1 %v1285_v12 }
  0x40   :  { %727 = vmatpush.bf16.msrb.mxu2 %v1293_v13 }
  0x41   :  { %740 = vmatpush.bf16.msrb.mxu3 %v1301_v16  ;;  %702 = vmatmul.bf16.vlgmr.msrb.gmra.mxu0 %v196_v17 }
  0x42   :  { %746 = vmatpush.bf16.msra.mxu0 %v1316_v14  ;;  %715 = vmatmul.bf16.vlgmr.msrb.gmra.mxu1 %v197_v20 }
  0x43   :  { %824 = vmatpush.bf16.msra.mxu1 %v1324_v15  ;;  %728 = vmatmul.bf16.vlgmr.msrb.gmra.mxu2 %v198_v19 }
  0x44   :  { %741 = vmatmul.bf16.vlgmr.msrb.gmra.mxu3 %v199_v23 }
  0x46   :  { %747 = vmatpush.bf16.msra.mxu0 %v1315_v21 }
  0x47   :  { %825 = vmatpush.bf16.msra.mxu1 %v1323_v22 }
  0x4a   :  { %748 = vmatpush.bf16.msra.mxu0 %v1314_v24 }
  0x4b   :  { %826 = vmatpush.bf16.msra.mxu1 %v1322_v25 }
  0x4e   :  { %749 = vmatpush.bf16.msra.mxu0 %v1313_v26 }
  0x4f   :  { %827 = vmatpush.bf16.msra.mxu1 %v1321_v27 }
  0x52   :  { %750 = vmatpush.bf16.msra.mxu0 %v1312_v28 }
  0x53   :  { %828 = vmatpush.bf16.msra.mxu1 %v1320_v29 }
  0x56   :  { %751 = vmatpush.bf16.msra.mxu0 %v1311_v30 }
  0x57   :  { %829 = vmatpush.bf16.msra.mxu1 %v1319_v31 }
  0x5a   :  { %752 = vmatpush.bf16.msra.mxu0 %v1310_v32 }
  0x5b   :  { %830 = vmatpush.bf16.msra.mxu1 %v1318_v33 }
  0x5e   :  { %753 = vmatpush.bf16.msra.mxu0 %v1309_v36 }
  0x5f   :  { %831 = vmatpush.bf16.msra.mxu1 %v1317_v37 }
  0x61   :  { %754 = vmatmul.bf16.vlgmr.msra.gmra.mxu0 %v200_v38 }
  0x62   :  { %832 = vmatmul.bf16.vlgmr.msra.gmra.mxu1 %v759_v39 }
  0x9e   :  { %v651_v40 = vpop.f32.mrf.mxu0 }
  0x9f   :  { %v664_v41 = vpop.f32.mrf.mxu1 }
  0xa0   :  { %v665_v50 = vadd.f32 %v664_v41, %v651_v40 }
  0xa6   :  { %v677_v42 = vpop.f32.mrf.mxu2  ;;  %v653_v43 = vpop.f32.mrf.mxu0 }
  0xa7   :  { %v690_v44 = vpop.f32.mrf.mxu3  ;;  %v666_v45 = vpop.f32.mrf.mxu1  ;;  %v678_v53 = vadd.f32 %v677_v42, %v665_v50 }
  0xa9   :  { %v691_v56 = vadd.f32 %v690_v44, %v678_v53 }
  0xae   :  { %v679_v46 = vpop.f32.mrf.mxu2 }
  0xaf   :  { %v692_v47 = vpop.f32.mrf.mxu3 }
  0xbe   :  { %v703_v48 = vpop.f32.mrf.mxu0 }
  0xbf   :  { %v716_v49 = vpop.f32.mrf.mxu1  ;;  %v704_v58 = vadd.f32 %v703_v48, %v691_v56  ;;  %v1325_v56 = vld [vmem:[%s1668_s2] ss:$0 sm:$0xff] }
  0xc1   :  { %v717_v60 = vadd.f32 %v716_v49, %v704_v58 }
  0xc6   :  { %v729_v51 = vpop.f32.mrf.mxu2  ;;  %v705_v52 = vpop.f32.mrf.mxu0 }
  0xc7   :  { %v718_v54 = vpop.f32.mrf.mxu1  ;;  %v742_v55 = vpop.f32.mrf.mxu3  ;;  %v730_v61 = vadd.f32 %v729_v51, %v717_v60  ;;  %v1327_v52 = vld [vmem:[%s1671_s6] ss:$0 sm:$0xff] }
  0xc8   :  { %v1326_v60 = vld [vmem:[%s1669_s3] ss:$0 sm:$0xff] }
  0xc9   :  { %v743_v62 = vadd.f32 %v742_v55, %v730_v61 }
  0xce   :  { %v731_v57 = vpop.f32.mrf.mxu2 }
  0xcf   :  { %v744_v59 = vpop.f32.mrf.mxu3 }
  0xde   :  { %v755_v63 = vpop.f32.mrf.mxu0 }
  0xdf   :  { %v1636_v0 = vpop.f32.mrf.mxu1  ;;  %v1638_v1 = vadd.f32 %v755_v63, %v743_v62  ;;  %v1328_v62 = vld [vmem:[%s1672_s7] ss:$0 sm:$0xff] }
  0xe0   :  { %v879_v2 = vrot.slane %v1636_v0, 4  ;;  %v886_v3 = vmul.f32 %v1636_v0, %v1636_v0 }
  0xe1   :  { %v839_v4 = vrot.slane %v1638_v1, 4  ;;  %v846_v5 = vmul.f32 %v1638_v1, %v1638_v1 }
  0xe2   :  { %v880_v6 = vadd.f32 %v879_v2, %v1636_v0  ;;  %v887_v7 = vrot.slane %v886_v3, 4 }
  0xe3   :  { %v840_v8 = vadd.f32 %v839_v4, %v1638_v1  ;;  %v847_v9 = vrot.slane %v846_v5, 4 }
  0xe4   :  { %v881_v10 = vrot.slane %v880_v6, 2  ;;  %v888_v11 = vadd.f32 %v887_v7, %v886_v3 }
  0xe5   :  { %v841_v12 = vrot.slane %v840_v8, 2  ;;  %v848_v13 = vadd.f32 %v847_v9, %v846_v5 }
  0xe6   :  { %v882_v14 = vadd.f32 %v881_v10, %v880_v6  ;;  %v889_v15 = vrot.slane %v888_v11, 2  ;;  %v757_v16 = vpop.f32.mrf.mxu0 }
  0xe7   :  { %v835_v17 = vpop.f32.mrf.mxu1  ;;  %v842_v18 = vadd.f32 %v841_v12, %v840_v8  ;;  %v849_v19 = vrot.slane %v848_v13, 2 }
  0xe8   :  { %v883_v20 = vrot.slane %v882_v14, 1  ;;  %v890_v21 = vadd.f32 %v889_v15, %v888_v11 }
  0xe9   :  { %v843_v22 = vrot.slane %v842_v18, 1  ;;  %v850_v23 = vadd.f32 %v849_v19, %v848_v13 }
  0xea   :  { %v884_v24 = vadd.f32 %v883_v20, %v882_v14  ;;  %v891_v25 = vrot.slane %v890_v21, 1 }
  0xeb   :  { %v844_v26 = vadd.f32 %v843_v22, %v842_v18  ;;  %v851_v27 = vrot.slane %v850_v23, 1 }
  0xec   :  { %v885_v28 = vmul.f32 0.125, %v884_v24  ;;  %v892_v29 = vadd.f32 %v891_v25, %v890_v21 }
  0xed   :  { %v845_v30 = vmul.f32 0.125, %v844_v26  ;;  %v852_v31 = vadd.f32 %v851_v27, %v850_v23 }
  0xee   :  { %v893_v32 = vmul.f32 0.125, %v892_v29  ;;  %v894_v33 = vmul.f32 %v885_v28, %v885_v28  ;;  %v896_v51 = vsub.f32 %v1636_v0, %v885_v28 }
  0xef   :  { %v853_v34 = vmul.f32 0.125, %v852_v31  ;;  %v854_v35 = vmul.f32 %v845_v30, %v845_v30  ;;  %v856_v55 = vsub.f32 %v1638_v1, %v845_v30 }
  0xf0   :  { %v895_v36 = vsub.f32 %v893_v32, %v894_v33 }
  0xf1   :  { %v855_v37 = vsub.f32 %v853_v34, %v854_v35 }
  0xf2   :  { %v897_v38 = vadd.f32 1e-05, %v895_v36 }
  0xf3   :  { %v857_v39 = vadd.f32 1e-05, %v855_v37 }
  0xf4   :  { %1329 = vrsqrt.f32 %v897_v38  ;;  %vm904_vm2 = vweird.f32 %v897_v38 }
  0xf5   :  { %1331 = vrsqrt.f32 %v857_v39  ;;  %vm864_vm4 = vweird.f32 %v857_v39 }
  0xfa   :  { %v1330_v40 = vpop.eup %1329 }
  0xfb   :  { %v899_v41 = vmul.f32 %v1330_v40, %v897_v38  ;;  %v1332_v42 = vpop.eup %1331  ;;  %vm905_vm0 = vweird.f32 %v1330_v40 }
  0xfc   :  { %v859_v43 = vmul.f32 %v1332_v42, %v857_v39  ;;  %vm865_vm1 = vweird.f32 %v1332_v42  ;;  %vm906_vm3 = vmor %vm904_vm2, %vm905_vm0 }
  0xfd   :  { %v900_v44 = vmul.f32 %v1330_v40, %v899_v41  ;;  %vm866_vm5 = vmor %vm864_vm4, %vm865_vm1 }
  0xfe   :  { %v860_v45 = vmul.f32 %v1332_v42, %v859_v43 }
  0xff   :  { %v901_v46 = vmul.f32 0.5, %v900_v44 }
 0x100   :  { %v861_v47 = vmul.f32 0.5, %v860_v45 }
 0x101   :  { %v902_v48 = vsub.f32 1.5, %v901_v46 }
 0x102   :  { %v862_v49 = vsub.f32 1.5, %v861_v47 }
 0x103   :  { %v903_v50 = vmul.f32 %v1330_v40, %v902_v48 }
 0x104   :  { %v863_v53 = vmul.f32 %v1332_v42, %v862_v49 }
 0x105   :  { %v907_v54 = vsel %vm906_vm3, %v1330_v40, %v903_v50 }
 0x106   :  { %v908_v57 = vmul.f32 %v907_v54, %v896_v51  ;;  %v867_v58 = vsel %vm866_vm5, %v1332_v42, %v863_v53 }
 0x107   :  { %v868_v59 = vmul.f32 %v867_v58, %v856_v55 }
 0x108   :  { %v912_v61 = vmul.f32 %v1327_v52, %v908_v57 }
 0x109   :  { %v872_v63 = vmul.f32 %v1325_v56, %v868_v59 }
 0x10a   :  { %v916_v1 = vadd.f32 %v1328_v62, %v912_v61 }
 0x10b   :  { %v876_v0 = vadd.f32 %v1326_v60, %v872_v63 }
 0x10d   :  { %v917_v2 = vadd.f32 %v916_v1, %v876_v0 }
 0x10f   :  { %v918_v3 = vmax.f32 %v917_v2, 0.0 }
 0x111   :  { %v919_v4 = vpack.c.bf16 %v918_v3, %v918_v3 }
 0x113   :  { %920 = vst [vmem:[%s1673_s8] sm:$0xf] %v919_v4 }

// kernel: resnet_forward.21
= control target key start
LH: loop header
LB: loop body
LE: loop exit
PB: predicated region body
PF: predicated region fallthrough
CT: control target
= control target key end

     0   :  { %s256_s0 = inlined_call_operand.vmem [shape: bf16[2,1,128], index: 0, kind: input, shape index: {}]   ;;  %s257_s1 = inlined_call_operand.vmem [shape: bf16[128,10], index: 1, kind: input, shape index: {}]   ;;  %s258_s2 = inlined_call_operand.vmem [shape: f32[1,10], index: 2, kind: input, shape index: {}]   ;;  %s259_s3 = inlined_call_operand.hbm [shape: f32[2,10], index: 3, kind: output, shape index: {}]  }
   0x1   :  { %v170_v0 = vld [vmem:[%s257_s1 + $0x38] sm:$0xff]  ;;  %v169_v1 = vld [vmem:[%s257_s1 + $0x30] sm:$0xff] }
   0x2   :  { %100 = vmatpush.bf16.msra.mxu0 %v170_v0 }
   0x3   :  { %8 = vsyncpa [#allocation3], 0  ;;  %v168_v2 = vld [vmem:[%s257_s1 + $0x28] sm:$0xff]  ;;  %v16_v3 = vld [vmem:[%s256_s0 + $0x1] sm:$0x1]  ;;  %vm48_vm0 = vcmask 1041409  }
   0x4   :  { %v167_v4 = vld [vmem:[%s257_s1 + $0x20] sm:$0xff]  ;;  %v18_v5 = vunpack.c.l.bf16 %v16_v3  ;;  %v166_v7 = vld [vmem:[%s257_s1 + $0x18] sm:$0xff]  ;;  %v165_v10 = vld [vmem:[%s257_s1 + $0x10] sm:$0xff]  ;;  %s199_s6 = smov [#allocation2]   ;;  %s122_s10 = sshll.u32 %s259_s3, 4  ;;  %vm113_vm1 = vcmask 74752   ;;  %s123_s10 = int_to_ptr.hbm [resolvable:$true] %s122_s10 }
   0x5   :  { %v15_v6 = vld [vmem:[%s256_s0] sm:$0x1]  ;;  %v164_v13 = vld [vmem:[%s257_s1 + $0x8] sm:$0xff]  ;;  %s120_s7 = sshll.u32 %s199_s6, 4  ;;  %s121_s7 = int_to_ptr.vmem [resolvable:$true] %s120_s7 }
   0x6   :  { %101 = vmatpush.bf16.msra.mxu0 %v169_v1  ;;  %v17_v8 = vunpack.c.l.bf16 %v15_v6  ;;  %v22_v9 = vpack.c.bf16 %v18_v5, %v18_v5  ;;  %v163_v16 = vld [vmem:[%s257_s1] sm:$0xff] }
   0x7   :  { %v172_v19 = vld [vmem:[%s258_s2] ss:$0 sm:$0xff] }
   0x8   :  { %v21_v11 = vpack.c.bf16 %v17_v8, %v17_v8  ;;  %v46_v12 = vunpack.c.l.b16 %v22_v9 }
   0xa   :  { %102 = vmatpush.bf16.msra.mxu0 %v168_v2  ;;  %v45_v14 = vunpack.c.l.b16 %v21_v11  ;;  %v47_v15 = vrot.slane %v46_v12, 7 }
   0xc   :  { %v49_v17 = vsel %vm48_vm0, %v47_v15, %v45_v14 }
   0xd   :  { %v50_v18 = vpack.c.b16 %v49_v17, %v49_v17 }
   0xe   :  { %103 = vmatpush.bf16.msra.mxu0 %v167_v4 }
  0x12   :  { %104 = vmatpush.bf16.msra.mxu0 %v166_v7 }
  0x16   :  { %105 = vmatpush.bf16.msra.mxu0 %v165_v10 }
  0x1a   :  { %106 = vmatpush.bf16.msra.mxu0 %v164_v13 }
  0x1e   :  { %107 = vmatpush.bf16.msra.mxu0 %v163_v16 }
  0x21   :  { %108 = vmatmul.bf16.vlgmr.msra.gmra.mxu0 %v50_v18 }
  0x9e   :  { %v109_v20 = vpop.f32.mrf.mxu0 }
  0x9f   :  { %v110_v21 = vadd.f32 %v172_v19, %v109_v20 }
  0xa1   :  { %114 = vst.msk [vmem:[#allocation2] sm:$0x3] %vm113_vm1, %v110_v21 }
  0xa2   :  { %125 = dma.vmem_to_hbm [thread:$0]  %s121_s7, 32, %s123_s10, [#allocation3]  }
  0xa6   :  { %v111_v22 = vpop.f32.mrf.mxu0 }
  0xa7   :  { %197 = dma.done.wait [#allocation3], 32  }
  0xa8   :  { %198 = vsyncadd [#allocation3], 4294967264 }
  0xa9   :  { %130 = vsyncpa [#allocation3], 1 }

// kernel: resnet_forward.22
= control target key start
LH: loop header
LB: loop body
LE: loop exit
PB: predicated region body
PF: predicated region fallthrough
CT: control target
= control target key end

     0   :  { %vm738_vm0 = vcmask 1041408   ;;  %s1461_s0 = inlined_call_operand.vmem [shape: bf16[2,1,1,9,128], index: 0, kind: input, shape index: {}, may-alias: {0,5}]   ;;  %s1462_s1 = inlined_call_operand.vmem [shape: bf16[2,1152], index: 1, kind: input, shape index: {}]   ;;  %s1463_s2 = inlined_call_operand.vmem [shape: bf16[1152,128], index: 2, kind: input, shape index: {}]   ;;  %s1464_s3 = inlined_call_operand.vmem [shape: f32[1,128], index: 3, kind: input, shape index: {}]   ;;  %s1465_s4 = inlined_call_operand.vmem [shape: f32[1,128], index: 4, kind: input, shape index: {}]   ;;  %s1466_s5 = inlined_call_operand.vmem [shape: bf16[2,1,1,9,128], index: 5, kind: output, shape index: {}, may-alias: {0,5}]  }
   0x1   :  { %v1119_v0 = vld [vmem:[%s1463_s2 + $0x38] sm:$0xff]  ;;  %v1118_v4 = vld [vmem:[%s1463_s2 + $0x30] sm:$0xff]  ;;  %v1117_v8 = vld [vmem:[%s1463_s2 + $0x28] sm:$0xff] }
   0x2   :  { %v1135_v1 = vld [vmem:[%s1463_s2 + $0xb8] sm:$0xff]  ;;  %619 = vmatpush.bf16.msra.mxu0 %v1119_v0  ;;  %v1134_v5 = vld [vmem:[%s1463_s2 + $0xb0] sm:$0xff]  ;;  %v1133_v9 = vld [vmem:[%s1463_s2 + $0xa8] sm:$0xff] }
   0x3   :  { %v1143_v2 = vld [vmem:[%s1463_s2 + $0xf8] sm:$0xff]  ;;  %645 = vmatpush.bf16.msra.mxu2 %v1135_v1  ;;  %v1142_v6 = vld [vmem:[%s1463_s2 + $0xf0] sm:$0xff]  ;;  %v1141_v10 = vld [vmem:[%s1463_s2 + $0xe8] sm:$0xff] }
   0x4   :  { %v1127_v3 = vld [vmem:[%s1463_s2 + $0x78] sm:$0xff]  ;;  %658 = vmatpush.bf16.msra.mxu3 %v1143_v2  ;;  %v1126_v7 = vld [vmem:[%s1463_s2 + $0x70] sm:$0xff]  ;;  %v1125_v11 = vld [vmem:[%s1463_s2 + $0x68] sm:$0xff] }
   0x5   :  { %632 = vmatpush.bf16.msra.mxu1 %v1127_v3  ;;  %v1116_v12 = vld [vmem:[%s1463_s2 + $0x20] sm:$0xff]  ;;  %v1115_v16 = vld [vmem:[%s1463_s2 + $0x18] sm:$0xff]  ;;  %v1114_v21 = vld [vmem:[%s1463_s2 + $0x10] sm:$0xff] }
   0x6   :  { %620 = vmatpush.bf16.msra.mxu0 %v1118_v4  ;;  %v1132_v13 = vld [vmem:[%s1463_s2 + $0xa0] sm:$0xff]  ;;  %v1131_v17 = vld [vmem:[%s1463_s2 + $0x98] sm:$0xff]  ;;  %v1130_v22 = vld [vmem:[%s1463_s2 + $0x90] sm:$0xff] }
   0x7   :  { %646 = vmatpush.bf16.msra.mxu2 %v1134_v5  ;;  %v1140_v14 = vld [vmem:[%s1463_s2 + $0xe0] sm:$0xff]  ;;  %v1139_v18 = vld [vmem:[%s1463_s2 + $0xd8] sm:$0xff]  ;;  %v1138_v23 = vld [vmem:[%s1463_s2 + $0xd0] sm:$0xff] }
   0x8   :  { %659 = vmatpush.bf16.msra.mxu3 %v1142_v6  ;;  %v1124_v15 = vld [vmem:[%s1463_s2 + $0x60] sm:$0xff]  ;;  %v1123_v19 = vld [vmem:[%s1463_s2 + $0x58] sm:$0xff]  ;;  %v1122_v24 = vld [vmem:[%s1463_s2 + $0x50] sm:$0xff] }
   0x9   :  { %633 = vmatpush.bf16.msra.mxu1 %v1126_v7  ;;  %v19_v20 = vld [vmem:[%s1462_s1] sm:$0xff]  ;;  %v1113_v25 = vld [vmem:[%s1463_s2 + $0x8] sm:$0xff]  ;;  %v1151_v31 = vld [vmem:[%s1463_s2 + $0x138] sm:$0xff] }
   0xa   :  { %621 = vmatpush.bf16.msra.mxu0 %v1117_v8  ;;  %166 = vst [vmem:[#allocation1] ss:$9 sm:$0xff] %v19_v20  ;;  %v1129_v26 = vld [vmem:[%s1463_s2 + $0x88] sm:$0xff]  ;;  %v1112_v29 = vld [vmem:[%s1463_s2] sm:$0xff]  ;;  %v1167_v32 = vld [vmem:[%s1463_s2 + $0x1b8] sm:$0xff] }
   0xb   :  { %647 = vmatpush.bf16.msra.mxu2 %v1133_v9  ;;  %v1137_v27 = vld [vmem:[%s1463_s2 + $0xc8] sm:$0xff]  ;;  %v1128_v30 = vld [vmem:[%s1463_s2 + $0x80] sm:$0xff]  ;;  %v1175_v35 = vld [vmem:[%s1463_s2 + $0x1f8] sm:$0xff] }
   0xc   :  { %660 = vmatpush.bf16.msra.mxu3 %v1141_v10  ;;  %v1121_v28 = vld [vmem:[%s1463_s2 + $0x48] sm:$0xff]  ;;  %v1136_v33 = vld [vmem:[%s1463_s2 + $0xc0] sm:$0xff]  ;;  %v1159_v36 = vld [vmem:[%s1463_s2 + $0x178] sm:$0xff] }
   0xd   :  { %634 = vmatpush.bf16.msra.mxu1 %v1125_v11  ;;  %v1120_v34 = vld [vmem:[%s1463_s2 + $0x40] sm:$0xff]  ;;  %v1150_v37 = vld [vmem:[%s1463_s2 + $0x130] sm:$0xff]  ;;  %v20_v46 = vld [vmem:[%s1462_s1 + $0x8] sm:$0x1] }
   0xe   :  { %622 = vmatpush.bf16.msra.mxu0 %v1116_v12  ;;  %v1166_v38 = vld [vmem:[%s1463_s2 + $0x1b0] sm:$0xff]  ;;  %v1149_v50 = vld [vmem:[%s1463_s2 + $0x128] sm:$0xff]  ;;  %v1148_v54 = vld [vmem:[%s1463_s2 + $0x120] sm:$0xff] }
   0xf   :  { %648 = vmatpush.bf16.msra.mxu2 %v1132_v13  ;;  %v1174_v39 = vld [vmem:[%s1463_s2 + $0x1f0] sm:$0xff]  ;;  %v1165_v51 = vld [vmem:[%s1463_s2 + $0x1a8] sm:$0xff]  ;;  %v1164_v55 = vld [vmem:[%s1463_s2 + $0x1a0] sm:$0xff] }
  0x10   :  { %661 = vmatpush.bf16.msra.mxu3 %v1140_v14  ;;  %v1158_v40 = vld [vmem:[%s1463_s2 + $0x170] sm:$0xff]  ;;  %v1173_v52 = vld [vmem:[%s1463_s2 + $0x1e8] sm:$0xff]  ;;  %v1172_v56 = vld [vmem:[%s1463_s2 + $0x1e0] sm:$0xff] }
  0x11   :  { %635 = vmatpush.bf16.msra.mxu1 %v1124_v15  ;;  %v169_v41 = vld [vmem:[#allocation1 + $0x12] sm:$0xff]  ;;  %v167_v42 = vld [vmem:[#allocation1] sm:$0xff]  ;;  %v168_v44 = vld [vmem:[#allocation1 + $0x9] sm:$0xff] }
  0x12   :  { %623 = vmatpush.bf16.msra.mxu0 %v1115_v16  ;;  %v170_v43 = vld [vmem:[#allocation1 + $0x1b] sm:$0xff]  ;;  %v1346_v47 = vld [vmem:[#allocation1 + $0x24] sm:$0xff]  ;;  %v1350_v49 = vld [vmem:[#allocation1 + $0x2d] sm:$0xff] }
  0x13   :  { %649 = vmatpush.bf16.msra.mxu2 %v1131_v17  ;;  %v1341_v45 = vld [vmem:[#allocation1 + $0x36] sm:$0xff]  ;;  %v1348_v48 = vld [vmem:[#allocation1 + $0x3f] sm:$0xff]  ;;  %v1157_v53 = vld [vmem:[%s1463_s2 + $0x168] sm:$0xff] }
  0x14   :  { %662 = vmatpush.bf16.msra.mxu3 %v1139_v18  ;;  %176 = vst [vmem:[#allocation1] ss:$9 sm:$0xff] %v20_v46  ;;  %v1156_v57 = vld [vmem:[%s1463_s2 + $0x160] sm:$0xff]  ;;  %v1147_v58 = vld [vmem:[%s1463_s2 + $0x118] sm:$0xff]  ;;  %v1146_v62 = vld [vmem:[%s1463_s2 + $0x110] sm:$0xff] }
  0x15   :  { %636 = vmatpush.bf16.msra.mxu1 %v1123_v19  ;;  %v1163_v59 = vld [vmem:[%s1463_s2 + $0x198] sm:$0xff]  ;;  %v1162_v63 = vld [vmem:[%s1463_s2 + $0x190] sm:$0xff]  ;;  %v1145_v2 = vld [vmem:[%s1463_s2 + $0x108] sm:$0xff] }
  0x16   :  { %624 = vmatpush.bf16.msra.mxu0 %v1114_v21  ;;  %v1171_v60 = vld [vmem:[%s1463_s2 + $0x1d8] sm:$0xff]  ;;  %v1170_v0 = vld [vmem:[%s1463_s2 + $0x1d0] sm:$0xff]  ;;  %v1161_v3 = vld [vmem:[%s1463_s2 + $0x188] sm:$0xff] }
  0x17   :  { %650 = vmatpush.bf16.msra.mxu2 %v1130_v22  ;;  %v1155_v61 = vld [vmem:[%s1463_s2 + $0x158] sm:$0xff]  ;;  %v1154_v1 = vld [vmem:[%s1463_s2 + $0x150] sm:$0xff]  ;;  %v1169_v4 = vld [vmem:[%s1463_s2 + $0x1c8] sm:$0xff] }
  0x18   :  { %663 = vmatpush.bf16.msra.mxu3 %v1138_v23  ;;  %v1153_v5 = vld [vmem:[%s1463_s2 + $0x148] sm:$0xff]  ;;  %v1144_v6 = vld [vmem:[%s1463_s2 + $0x100] sm:$0xff]  ;;  %v1183_v8 = vld [vmem:[%s1463_s2 + $0x238] sm:$0xff] }
  0x19   :  { %637 = vmatpush.bf16.msra.mxu1 %v1122_v24  ;;  %v1160_v7 = vld [vmem:[%s1463_s2 + $0x180] sm:$0xff]  ;;  %v1182_v11 = vld [vmem:[%s1463_s2 + $0x230] sm:$0xff]  ;;  %v1181_v12 = vld [vmem:[%s1463_s2 + $0x228] sm:$0xff] }
  0x1a   :  { %625 = vmatpush.bf16.msra.mxu0 %v1113_v25  ;;  %v1168_v9 = vld [vmem:[%s1463_s2 + $0x1c0] sm:$0xff]  ;;  %v1179_v14 = vld [vmem:[%s1463_s2 + $0x218] sm:$0xff]  ;;  %v1178_v15 = vld [vmem:[%s1463_s2 + $0x210] sm:$0xff] }
  0x1b   :  { %651 = vmatpush.bf16.msra.mxu2 %v1129_v26  ;;  %v1152_v10 = vld [vmem:[%s1463_s2 + $0x140] sm:$0xff]  ;;  %v1177_v16 = vld [vmem:[%s1463_s2 + $0x208] sm:$0xff] }
  0x1c   :  { %664 = vmatpush.bf16.msra.mxu3 %v1137_v27  ;;  %v1180_v13 = vld [vmem:[%s1463_s2 + $0x220] sm:$0xff] }
  0x1d   :  { %638 = vmatpush.bf16.msra.mxu1 %v1121_v28  ;;  %v1176_v17 = vld [vmem:[%s1463_s2 + $0x200] sm:$0xff] }
  0x1e   :  { %626 = vmatpush.bf16.msra.mxu0 %v1112_v29  ;;  %v177_v18 = vld [vmem:[#allocation1] sm:$0xff] }
  0x1f   :  { %652 = vmatpush.bf16.msra.mxu2 %v1128_v30 }
  0x20   :  { %665 = vmatpush.bf16.msra.mxu3 %v1136_v33 }
  0x21   :  { %639 = vmatpush.bf16.msra.mxu1 %v1120_v34  ;;  %627 = vmatmul.bf16.vlgmr.msra.gmra.mxu0 %v167_v42 }
  0x22   :  { %671 = vmatpush.bf16.msrb.mxu0 %v1151_v31  ;;  %653 = vmatmul.bf16.vlgmr.msra.gmra.mxu2 %v169_v41 }
  0x23   :  { %697 = vmatpush.bf16.msrb.mxu2 %v1167_v32  ;;  %666 = vmatmul.bf16.vlgmr.msra.gmra.mxu3 %v170_v43 }
  0x24   :  { %710 = vmatpush.bf16.msrb.mxu3 %v1175_v35  ;;  %640 = vmatmul.bf16.vlgmr.msra.gmra.mxu1 %v168_v44 }
  0x25   :  { %684 = vmatpush.bf16.msrb.mxu1 %v1159_v36 }
  0x26   :  { %672 = vmatpush.bf16.msrb.mxu0 %v1150_v37 }
  0x27   :  { %698 = vmatpush.bf16.msrb.mxu2 %v1166_v38 }
  0x28   :  { %711 = vmatpush.bf16.msrb.mxu3 %v1174_v39 }
  0x29   :  { %685 = vmatpush.bf16.msrb.mxu1 %v1158_v40 }
  0x2a   :  { %673 = vmatpush.bf16.msrb.mxu0 %v1149_v50 }
  0x2b   :  { %699 = vmatpush.bf16.msrb.mxu2 %v1165_v51 }
  0x2c   :  { %712 = vmatpush.bf16.msrb.mxu3 %v1173_v52 }
  0x2d   :  { %686 = vmatpush.bf16.msrb.mxu1 %v1157_v53 }
  0x2e   :  { %674 = vmatpush.bf16.msrb.mxu0 %v1148_v54 }
  0x2f   :  { %700 = vmatpush.bf16.msrb.mxu2 %v1164_v55 }
  0x30   :  { %713 = vmatpush.bf16.msrb.mxu3 %v1172_v56 }
  0x31   :  { %687 = vmatpush.bf16.msrb.mxu1 %v1156_v57 }
  0x32   :  { %675 = vmatpush.bf16.msrb.mxu0 %v1147_v58 }
  0x33   :  { %701 = vmatpush.bf16.msrb.mxu2 %v1163_v59 }
  0x34   :  { %714 = vmatpush.bf16.msrb.mxu3 %v1171_v60 }
  0x35   :  { %688 = vmatpush.bf16.msrb.mxu1 %v1155_v61 }
  0x36   :  { %676 = vmatpush.bf16.msrb.mxu0 %v1146_v62 }
  0x37   :  { %702 = vmatpush.bf16.msrb.mxu2 %v1162_v63 }
  0x38   :  { %715 = vmatpush.bf16.msrb.mxu3 %v1170_v0 }
  0x39   :  { %689 = vmatpush.bf16.msrb.mxu1 %v1154_v1 }
  0x3a   :  { %677 = vmatpush.bf16.msrb.mxu0 %v1145_v2 }
  0x3b   :  { %703 = vmatpush.bf16.msrb.mxu2 %v1161_v3 }
  0x3c   :  { %716 = vmatpush.bf16.msrb.mxu3 %v1169_v4 }
  0x3d   :  { %690 = vmatpush.bf16.msrb.mxu1 %v1153_v5 }
  0x3e   :  { %678 = vmatpush.bf16.msrb.mxu0 %v1144_v6 }
  0x3f   :  { %704 = vmatpush.bf16.msrb.mxu2 %v1160_v7 }
  0x40   :  { %717 = vmatpush.bf16.msrb.mxu3 %v1168_v9 }
  0x41   :  { %691 = vmatpush.bf16.msrb.mxu1 %v1152_v10  ;;  %679 = vmatmul.bf16.vlgmr.msrb.gmra.mxu0 %v1346_v47 }
  0x42   :  { %723 = vmatpush.bf16.msra.mxu0 %v1183_v8  ;;  %705 = vmatmul.bf16.vlgmr.msrb.gmra.mxu2 %v1341_v45  ;;  %v1184_v8 = vld [vmem:[%s1464_s3] ss:$0 sm:$0xff] }
  0x43   :  { %718 = vmatmul.bf16.vlgmr.msrb.gmra.mxu3 %v1348_v48 }
  0x44   :  { %692 = vmatmul.bf16.vlgmr.msrb.gmra.mxu1 %v1350_v49 }
  0x46   :  { %724 = vmatpush.bf16.msra.mxu0 %v1182_v11  ;;  %v1185_v11 = vld [vmem:[%s1465_s4] ss:$0 sm:$0xff] }
  0x4a   :  { %725 = vmatpush.bf16.msra.mxu0 %v1181_v12 }
  0x4e   :  { %726 = vmatpush.bf16.msra.mxu0 %v1180_v13 }
  0x52   :  { %727 = vmatpush.bf16.msra.mxu0 %v1179_v14 }
  0x56   :  { %728 = vmatpush.bf16.msra.mxu0 %v1178_v15 }
  0x5a   :  { %729 = vmatpush.bf16.msra.mxu0 %v1177_v16 }
  0x5e   :  { %730 = vmatpush.bf16.msra.mxu0 %v1176_v17 }
  0x61   :  { %731 = vmatmul.bf16.vlgmr.msra.gmra.mxu0 %v177_v18 }
  0x9e   :  { %v628_v19 = vpop.f32.mrf.mxu0 }
  0xa1   :  { %v641_v20 = vpop.f32.mrf.mxu1 }
  0xa2   :  { %v642_v29 = vadd.f32 %v641_v20, %v628_v19 }
  0xa5   :  { %v654_v21 = vpop.f32.mrf.mxu2 }
  0xa6   :  { %v667_v22 = vpop.f32.mrf.mxu3  ;;  %v630_v23 = vpop.f32.mrf.mxu0  ;;  %v655_v31 = vadd.f32 %v654_v21, %v642_v29 }
  0xa8   :  { %v668_v35 = vadd.f32 %v667_v22, %v655_v31 }
  0xa9   :  { %v643_v24 = vpop.f32.mrf.mxu1 }
  0xad   :  { %v656_v25 = vpop.f32.mrf.mxu2 }
  0xae   :  { %v669_v26 = vpop.f32.mrf.mxu3 }
  0xbe   :  { %v680_v27 = vpop.f32.mrf.mxu0 }
  0xbf   :  { %v681_v37 = vadd.f32 %v680_v27, %v668_v35 }
  0xc1   :  { %v693_v28 = vpop.f32.mrf.mxu1 }
  0xc2   :  { %v694_v39 = vadd.f32 %v693_v28, %v681_v37 }
  0xc5   :  { %v706_v30 = vpop.f32.mrf.mxu2 }
  0xc6   :  { %v719_v32 = vpop.f32.mrf.mxu3  ;;  %v682_v33 = vpop.f32.mrf.mxu0  ;;  %v707_v40 = vadd.f32 %v706_v30, %v694_v39 }
  0xc8   :  { %v720_v41 = vadd.f32 %v719_v32, %v707_v40 }
  0xc9   :  { %v695_v34 = vpop.f32.mrf.mxu1 }
  0xcd   :  { %v708_v36 = vpop.f32.mrf.mxu2 }
  0xce   :  { %v721_v38 = vpop.f32.mrf.mxu3 }
  0xde   :  { %v732_v42 = vpop.f32.mrf.mxu0 }
  0xdf   :  { %v733_v43 = vadd.f32 %v732_v42, %v720_v41 }
  0xe1   :  { %v739_v44 = vsel %vm738_vm0, %v733_v43, 0.0  ;;  %v747_v45 = vmul.f32 %v733_v43, %v733_v43 }
  0xe2   :  { %v740_v46 = vrot.slane %v739_v44, 4 }
  0xe3   :  { %v748_v47 = vsel %vm738_vm0, %v747_v45, 0.0 }
  0xe4   :  { %v741_v48 = vadd.f32 %v740_v46, %v739_v44  ;;  %v749_v49 = vrot.slane %v748_v47, 4 }
  0xe6   :  { %v742_v50 = vrot.slane %v741_v48, 2  ;;  %v750_v51 = vadd.f32 %v749_v49, %v748_v47  ;;  %v734_v52 = vpop.f32.mrf.mxu0 }
  0xe8   :  { %v743_v53 = vadd.f32 %v742_v50, %v741_v48  ;;  %v751_v54 = vrot.slane %v750_v51, 2 }
  0xea   :  { %v744_v55 = vrot.slane %v743_v53, 1  ;;  %v752_v56 = vadd.f32 %v751_v54, %v750_v51 }
  0xec   :  { %v745_v57 = vadd.f32 %v744_v55, %v743_v53  ;;  %v753_v58 = vrot.slane %v752_v56, 1 }
  0xee   :  { %v746_v59 = vmul.f32 0.5, %v745_v57  ;;  %v754_v60 = vadd.f32 %v753_v58, %v752_v56 }
  0xf0   :  { %v755_v61 = vmul.f32 0.5, %v754_v60  ;;  %v756_v62 = vmul.f32 %v746_v59, %v746_v59  ;;  %v758_v7 = vsub.f32 %v733_v43, %v746_v59 }
  0xf2   :  { %v757_v63 = vsub.f32 %v755_v61, %v756_v62 }
  0xf4   :  { %v759_v0 = vadd.f32 1e-05, %v757_v63 }
  0xf6   :  { %1186 = vrsqrt.f32 %v759_v0  ;;  %vm766_vm2 = vweird.f32 %v759_v0 }
  0xfc   :  { %v1187_v1 = vpop.eup %1186 }
  0xfd   :  { %v761_v2 = vmul.f32 %v1187_v1, %v759_v0  ;;  %vm767_vm1 = vweird.f32 %v1187_v1 }
  0xfe   :  { %vm768_vm3 = vmor %vm766_vm2, %vm767_vm1 }
  0xff   :  { %v762_v3 = vmul.f32 %v1187_v1, %v761_v2 }
 0x101   :  { %v763_v4 = vmul.f32 0.5, %v762_v3 }
 0x103   :  { %v764_v5 = vsub.f32 1.5, %v763_v4 }
 0x105   :  { %v765_v6 = vmul.f32 %v1187_v1, %v764_v5 }
 0x107   :  { %v769_v9 = vsel %vm768_vm3, %v1187_v1, %v765_v6 }
 0x108   :  { %v770_v10 = vmul.f32 %v769_v9, %v758_v7 }
 0x10a   :  { %v774_v12 = vmul.f32 %v1184_v8, %v770_v10 }
 0x10c   :  { %v778_v13 = vadd.f32 %v1185_v11, %v774_v12 }
 0x10e   :  { %v779_v14 = vmax.f32 %v778_v13, 0.0 }
 0x110   :  { %v780_v15 = vpack.c.bf16 %v779_v14, %v779_v14 }
 0x112   :  { %781 = vst [vmem:[#allocation2] sm:$0x1] %v780_v15 }
 0x119   :  { %v800_v16 = vld [vmem:[#allocation2] sm:$0x1] }
 0x11a   :  { %1111 = vst [vmem:[%s1466_s5 + $0x4] sm:$0x1] %v800_v16 }

// kernel: resnet_forward.19
= control target key start
LH: loop header
LB: loop body
LE: loop exit
PB: predicated region body
PF: predicated region fallthrough
CT: control target
= control target key end

     0   :  { %vm826_vm0 = vcmask 1041408   ;;  %s1658_s1 = inlined_call_operand.vmem [shape: bf16[1152,128], index: 1, kind: input, shape index: {}]   ;;  %s1659_s0 = inlined_call_operand.vmem [shape: bf16[2,1152], index: 0, kind: input, shape index: {}]   ;;  %s1660_s5 = inlined_call_operand.vmem [shape: bf16[128,128], index: 5, kind: input, shape index: {}]   ;;  %s1661_s2 = inlined_call_operand.vmem [shape: f32[1,128], index: 2, kind: input, shape index: {}]   ;;  %s1662_s3 = inlined_call_operand.vmem [shape: f32[1,128], index: 3, kind: input, shape index: {}]   ;;  %s1663_s4 = inlined_call_operand.vmem [shape: bf16[2,128], index: 4, kind: input, shape index: {}]   ;;  %s1664_s6 = inlined_call_operand.vmem [shape: f32[1,128], index: 6, kind: input, shape index: {}]   ;;  %s1665_s7 = inlined_call_operand.vmem [shape: f32[1,128], index: 7, kind: input, shape index: {}]   ;;  %s1666_s8 = inlined_call_operand.vmem [shape: bf16[2,128], index: 8, kind: output, shape index: {}]  }
   0x1   :  { %v1244_v0 = vld [vmem:[%s1658_s1 + $0x38] sm:$0xff]  ;;  %v1243_v4 = vld [vmem:[%s1658_s1 + $0x30] sm:$0xff]  ;;  %v1242_v8 = vld [vmem:[%s1658_s1 + $0x28] sm:$0xff] }
   0x2   :  { %v1252_v1 = vld [vmem:[%s1658_s1 + $0x78] sm:$0xff]  ;;  %629 = vmatpush.bf16.msra.mxu0 %v1244_v0  ;;  %v1251_v5 = vld [vmem:[%s1658_s1 + $0x70] sm:$0xff]  ;;  %v1250_v9 = vld [vmem:[%s1658_s1 + $0x68] sm:$0xff] }
   0x3   :  { %v1260_v2 = vld [vmem:[%s1658_s1 + $0xb8] sm:$0xff]  ;;  %642 = vmatpush.bf16.msra.mxu1 %v1252_v1  ;;  %v1259_v6 = vld [vmem:[%s1658_s1 + $0xb0] sm:$0xff]  ;;  %v1258_v10 = vld [vmem:[%s1658_s1 + $0xa8] sm:$0xff] }
   0x4   :  { %v1268_v3 = vld [vmem:[%s1658_s1 + $0xf8] sm:$0xff]  ;;  %655 = vmatpush.bf16.msra.mxu2 %v1260_v2  ;;  %v1267_v7 = vld [vmem:[%s1658_s1 + $0xf0] sm:$0xff]  ;;  %v1266_v11 = vld [vmem:[%s1658_s1 + $0xe8] sm:$0xff] }
   0x5   :  { %668 = vmatpush.bf16.msra.mxu3 %v1268_v3  ;;  %v1241_v12 = vld [vmem:[%s1658_s1 + $0x20] sm:$0xff]  ;;  %v1240_v16 = vld [vmem:[%s1658_s1 + $0x18] sm:$0xff]  ;;  %v1239_v21 = vld [vmem:[%s1658_s1 + $0x10] sm:$0xff] }
   0x6   :  { %630 = vmatpush.bf16.msra.mxu0 %v1243_v4  ;;  %v1249_v13 = vld [vmem:[%s1658_s1 + $0x60] sm:$0xff]  ;;  %v1248_v17 = vld [vmem:[%s1658_s1 + $0x58] sm:$0xff]  ;;  %v1247_v22 = vld [vmem:[%s1658_s1 + $0x50] sm:$0xff] }
   0x7   :  { %643 = vmatpush.bf16.msra.mxu1 %v1251_v5  ;;  %v1257_v14 = vld [vmem:[%s1658_s1 + $0xa0] sm:$0xff]  ;;  %v1256_v18 = vld [vmem:[%s1658_s1 + $0x98] sm:$0xff]  ;;  %v1255_v23 = vld [vmem:[%s1658_s1 + $0x90] sm:$0xff] }
   0x8   :  { %656 = vmatpush.bf16.msra.mxu2 %v1259_v6  ;;  %v1265_v15 = vld [vmem:[%s1658_s1 + $0xe0] sm:$0xff]  ;;  %v1264_v19 = vld [vmem:[%s1658_s1 + $0xd8] sm:$0xff]  ;;  %v1263_v24 = vld [vmem:[%s1658_s1 + $0xd0] sm:$0xff] }
   0x9   :  { %669 = vmatpush.bf16.msra.mxu3 %v1267_v7  ;;  %v29_v20 = vld [vmem:[%s1659_s0] sm:$0xff]  ;;  %v1238_v25 = vld [vmem:[%s1658_s1 + $0x8] sm:$0xff]  ;;  %v1276_v32 = vld [vmem:[%s1658_s1 + $0x138] sm:$0xff] }
   0xa   :  { %631 = vmatpush.bf16.msra.mxu0 %v1242_v8  ;;  %176 = vst [vmem:[#allocation1] ss:$9 sm:$0xff] %v29_v20  ;;  %v1246_v26 = vld [vmem:[%s1658_s1 + $0x48] sm:$0xff]  ;;  %v1237_v29 = vld [vmem:[%s1658_s1] sm:$0xff]  ;;  %v1284_v33 = vld [vmem:[%s1658_s1 + $0x178] sm:$0xff] }
   0xb   :  { %644 = vmatpush.bf16.msra.mxu1 %v1250_v9  ;;  %v1254_v27 = vld [vmem:[%s1658_s1 + $0x88] sm:$0xff]  ;;  %v1245_v30 = vld [vmem:[%s1658_s1 + $0x40] sm:$0xff]  ;;  %v1292_v34 = vld [vmem:[%s1658_s1 + $0x1b8] sm:$0xff] }
   0xc   :  { %657 = vmatpush.bf16.msra.mxu2 %v1258_v10  ;;  %v1262_v28 = vld [vmem:[%s1658_s1 + $0xc8] sm:$0xff]  ;;  %v1253_v31 = vld [vmem:[%s1658_s1 + $0x80] sm:$0xff]  ;;  %v1300_v36 = vld [vmem:[%s1658_s1 + $0x1f8] sm:$0xff] }
   0xd   :  { %670 = vmatpush.bf16.msra.mxu3 %v1266_v11  ;;  %v1261_v35 = vld [vmem:[%s1658_s1 + $0xc0] sm:$0xff]  ;;  %v1275_v38 = vld [vmem:[%s1658_s1 + $0x130] sm:$0xff]  ;;  %v30_v42 = vld [vmem:[%s1659_s0 + $0x8] sm:$0x1] }
   0xe   :  { %632 = vmatpush.bf16.msra.mxu0 %v1241_v12  ;;  %v1283_v39 = vld [vmem:[%s1658_s1 + $0x170] sm:$0xff]  ;;  %v1274_v50 = vld [vmem:[%s1658_s1 + $0x128] sm:$0xff]  ;;  %v1273_v54 = vld [vmem:[%s1658_s1 + $0x120] sm:$0xff] }
   0xf   :  { %645 = vmatpush.bf16.msra.mxu1 %v1249_v13  ;;  %v1291_v41 = vld [vmem:[%s1658_s1 + $0x1b0] sm:$0xff]  ;;  %v1282_v51 = vld [vmem:[%s1658_s1 + $0x168] sm:$0xff]  ;;  %v1281_v55 = vld [vmem:[%s1658_s1 + $0x160] sm:$0xff] }
  0x10   :  { %658 = vmatpush.bf16.msra.mxu2 %v1257_v14  ;;  %v1299_v44 = vld [vmem:[%s1658_s1 + $0x1f0] sm:$0xff]  ;;  %v1290_v52 = vld [vmem:[%s1658_s1 + $0x1a8] sm:$0xff]  ;;  %v1289_v56 = vld [vmem:[%s1658_s1 + $0x1a0] sm:$0xff] }
  0x11   :  { %671 = vmatpush.bf16.msra.mxu3 %v1265_v15  ;;  %v177_v37 = vld [vmem:[#allocation1] sm:$0xff]  ;;  %v179_v40 = vld [vmem:[#allocation1 + $0x12] sm:$0xff]  ;;  %v178_v43 = vld [vmem:[#allocation1 + $0x9] sm:$0xff] }
  0x12   :  { %633 = vmatpush.bf16.msra.mxu0 %v1240_v16  ;;  %v180_v45 = vld [vmem:[#allocation1 + $0x1b] sm:$0xff]  ;;  %v1498_v47 = vld [vmem:[#allocation1 + $0x24] sm:$0xff]  ;;  %v1502_v49 = vld [vmem:[#allocation1 + $0x2d] sm:$0xff] }
  0x13   :  { %646 = vmatpush.bf16.msra.mxu1 %v1248_v17  ;;  %v1496_v46 = vld [vmem:[#allocation1 + $0x36] sm:$0xff]  ;;  %v1500_v48 = vld [vmem:[#allocation1 + $0x3f] sm:$0xff]  ;;  %v1298_v53 = vld [vmem:[%s1658_s1 + $0x1e8] sm:$0xff] }
  0x14   :  { %659 = vmatpush.bf16.msra.mxu2 %v1256_v18  ;;  %186 = vst [vmem:[#allocation1] ss:$9 sm:$0xff] %v30_v42  ;;  %v1297_v57 = vld [vmem:[%s1658_s1 + $0x1e0] sm:$0xff]  ;;  %v1272_v58 = vld [vmem:[%s1658_s1 + $0x118] sm:$0xff]  ;;  %v1271_v62 = vld [vmem:[%s1658_s1 + $0x110] sm:$0xff] }
  0x15   :  { %672 = vmatpush.bf16.msra.mxu3 %v1264_v19  ;;  %v1280_v59 = vld [vmem:[%s1658_s1 + $0x158] sm:$0xff]  ;;  %v1279_v63 = vld [vmem:[%s1658_s1 + $0x150] sm:$0xff]  ;;  %v1270_v2 = vld [vmem:[%s1658_s1 + $0x108] sm:$0xff] }
  0x16   :  { %634 = vmatpush.bf16.msra.mxu0 %v1239_v21  ;;  %v1288_v60 = vld [vmem:[%s1658_s1 + $0x198] sm:$0xff]  ;;  %v1287_v0 = vld [vmem:[%s1658_s1 + $0x190] sm:$0xff]  ;;  %v1278_v3 = vld [vmem:[%s1658_s1 + $0x148] sm:$0xff] }
  0x17   :  { %647 = vmatpush.bf16.msra.mxu1 %v1247_v22  ;;  %v1296_v61 = vld [vmem:[%s1658_s1 + $0x1d8] sm:$0xff]  ;;  %v1295_v1 = vld [vmem:[%s1658_s1 + $0x1d0] sm:$0xff]  ;;  %v1286_v4 = vld [vmem:[%s1658_s1 + $0x188] sm:$0xff] }
  0x18   :  { %660 = vmatpush.bf16.msra.mxu2 %v1255_v23  ;;  %v1294_v5 = vld [vmem:[%s1658_s1 + $0x1c8] sm:$0xff]  ;;  %v1269_v6 = vld [vmem:[%s1658_s1 + $0x100] sm:$0xff]  ;;  %v1308_v9 = vld [vmem:[%s1658_s1 + $0x238] sm:$0xff] }
  0x19   :  { %673 = vmatpush.bf16.msra.mxu3 %v1263_v24  ;;  %v1277_v7 = vld [vmem:[%s1658_s1 + $0x140] sm:$0xff]  ;;  %v1316_v10 = vld [vmem:[%s1660_s5 + $0x38] sm:$0xff]  ;;  %v1307_v12 = vld [vmem:[%s1658_s1 + $0x230] sm:$0xff] }
  0x1a   :  { %635 = vmatpush.bf16.msra.mxu0 %v1238_v25  ;;  %v1285_v8 = vld [vmem:[%s1658_s1 + $0x180] sm:$0xff]  ;;  %v1315_v13 = vld [vmem:[%s1660_s5 + $0x30] sm:$0xff]  ;;  %v1306_v14 = vld [vmem:[%s1658_s1 + $0x228] sm:$0xff] }
  0x1b   :  { %648 = vmatpush.bf16.msra.mxu1 %v1246_v26  ;;  %v1293_v11 = vld [vmem:[%s1658_s1 + $0x1c0] sm:$0xff]  ;;  %v1314_v15 = vld [vmem:[%s1660_s5 + $0x28] sm:$0xff]  ;;  %v1304_v18 = vld [vmem:[%s1658_s1 + $0x218] sm:$0xff] }
  0x1c   :  { %661 = vmatpush.bf16.msra.mxu2 %v1254_v27  ;;  %v1305_v16 = vld [vmem:[%s1658_s1 + $0x220] sm:$0xff]  ;;  %v1312_v19 = vld [vmem:[%s1660_s5 + $0x18] sm:$0xff]  ;;  %v1303_v20 = vld [vmem:[%s1658_s1 + $0x210] sm:$0xff] }
  0x1d   :  { %674 = vmatpush.bf16.msra.mxu3 %v1262_v28  ;;  %v1313_v17 = vld [vmem:[%s1660_s5 + $0x20] sm:$0xff]  ;;  %v1311_v21 = vld [vmem:[%s1660_s5 + $0x10] sm:$0xff]  ;;  %v1302_v22 = vld [vmem:[%s1658_s1 + $0x208] sm:$0xff] }
  0x1e   :  { %636 = vmatpush.bf16.msra.mxu0 %v1237_v29  ;;  %v1310_v23 = vld [vmem:[%s1660_s5 + $0x8] sm:$0xff]  ;;  %v1301_v24 = vld [vmem:[%s1658_s1 + $0x200] sm:$0xff] }
  0x1f   :  { %649 = vmatpush.bf16.msra.mxu1 %v1245_v30  ;;  %v1309_v25 = vld [vmem:[%s1660_s5] sm:$0xff] }
  0x20   :  { %662 = vmatpush.bf16.msra.mxu2 %v1253_v31  ;;  %v187_v26 = vld [vmem:[#allocation1] sm:$0xff] }
  0x21   :  { %675 = vmatpush.bf16.msra.mxu3 %v1261_v35  ;;  %637 = vmatmul.bf16.vlgmr.msra.gmra.mxu0 %v177_v37  ;;  %v746_v27 = vld [vmem:[%s1663_s4] sm:$0x1] }
  0x22   :  { %681 = vmatpush.bf16.msrb.mxu0 %v1276_v32  ;;  %650 = vmatmul.bf16.vlgmr.msra.gmra.mxu1 %v178_v43 }
  0x23   :  { %694 = vmatpush.bf16.msrb.mxu1 %v1284_v33  ;;  %663 = vmatmul.bf16.vlgmr.msra.gmra.mxu2 %v179_v40 }
  0x24   :  { %707 = vmatpush.bf16.msrb.mxu2 %v1292_v34  ;;  %676 = vmatmul.bf16.vlgmr.msra.gmra.mxu3 %v180_v45 }
  0x25   :  { %720 = vmatpush.bf16.msrb.mxu3 %v1300_v36 }
  0x26   :  { %682 = vmatpush.bf16.msrb.mxu0 %v1275_v38 }
  0x27   :  { %695 = vmatpush.bf16.msrb.mxu1 %v1283_v39 }
  0x28   :  { %708 = vmatpush.bf16.msrb.mxu2 %v1291_v41 }
  0x29   :  { %721 = vmatpush.bf16.msrb.mxu3 %v1299_v44 }
  0x2a   :  { %683 = vmatpush.bf16.msrb.mxu0 %v1274_v50 }
  0x2b   :  { %696 = vmatpush.bf16.msrb.mxu1 %v1282_v51 }
  0x2c   :  { %709 = vmatpush.bf16.msrb.mxu2 %v1290_v52 }
  0x2d   :  { %722 = vmatpush.bf16.msrb.mxu3 %v1298_v53 }
  0x2e   :  { %684 = vmatpush.bf16.msrb.mxu0 %v1273_v54 }
  0x2f   :  { %697 = vmatpush.bf16.msrb.mxu1 %v1281_v55 }
  0x30   :  { %710 = vmatpush.bf16.msrb.mxu2 %v1289_v56 }
  0x31   :  { %723 = vmatpush.bf16.msrb.mxu3 %v1297_v57 }
  0x32   :  { %685 = vmatpush.bf16.msrb.mxu0 %v1272_v58 }
  0x33   :  { %698 = vmatpush.bf16.msrb.mxu1 %v1280_v59 }
  0x34   :  { %711 = vmatpush.bf16.msrb.mxu2 %v1288_v60 }
  0x35   :  { %724 = vmatpush.bf16.msrb.mxu3 %v1296_v61 }
  0x36   :  { %686 = vmatpush.bf16.msrb.mxu0 %v1271_v62 }
  0x37   :  { %699 = vmatpush.bf16.msrb.mxu1 %v1279_v63 }
  0x38   :  { %712 = vmatpush.bf16.msrb.mxu2 %v1287_v0 }
  0x39   :  { %725 = vmatpush.bf16.msrb.mxu3 %v1295_v1 }
  0x3a   :  { %687 = vmatpush.bf16.msrb.mxu0 %v1270_v2 }
  0x3b   :  { %700 = vmatpush.bf16.msrb.mxu1 %v1278_v3 }
  0x3c   :  { %713 = vmatpush.bf16.msrb.mxu2 %v1286_v4 }
  0x3d   :  { %726 = vmatpush.bf16.msrb.mxu3 %v1294_v5 }
  0x3e   :  { %688 = vmatpush.bf16.msrb.mxu0 %v1269_v6 }
  0x3f   :  { %701 = vmatpush.bf16.msrb.mxu1 %v1277_v7 }
  0x40   :  { %714 = vmatpush.bf16.msrb.mxu2 %v1285_v8 }
  0x41   :  { %727 = vmatpush.bf16.msrb.mxu3 %v1293_v11  ;;  %689 = vmatmul.bf16.vlgmr.msrb.gmra.mxu0 %v1498_v47 }
  0x42   :  { %733 = vmatpush.bf16.msra.mxu0 %v1308_v9  ;;  %702 = vmatmul.bf16.vlgmr.msrb.gmra.mxu1 %v1502_v49 }
  0x43   :  { %811 = vmatpush.bf16.msra.mxu1 %v1316_v10  ;;  %715 = vmatmul.bf16.vlgmr.msrb.gmra.mxu2 %v1496_v46 }
  0x44   :  { %728 = vmatmul.bf16.vlgmr.msrb.gmra.mxu3 %v1500_v48 }
  0x46   :  { %734 = vmatpush.bf16.msra.mxu0 %v1307_v12 }
  0x47   :  { %812 = vmatpush.bf16.msra.mxu1 %v1315_v13 }
  0x4a   :  { %735 = vmatpush.bf16.msra.mxu0 %v1306_v14 }
  0x4b   :  { %813 = vmatpush.bf16.msra.mxu1 %v1314_v15 }
  0x4e   :  { %736 = vmatpush.bf16.msra.mxu0 %v1305_v16 }
  0x4f   :  { %814 = vmatpush.bf16.msra.mxu1 %v1313_v17 }
  0x52   :  { %737 = vmatpush.bf16.msra.mxu0 %v1304_v18 }
  0x53   :  { %815 = vmatpush.bf16.msra.mxu1 %v1312_v19 }
  0x56   :  { %738 = vmatpush.bf16.msra.mxu0 %v1303_v20 }
  0x57   :  { %816 = vmatpush.bf16.msra.mxu1 %v1311_v21 }
  0x5a   :  { %739 = vmatpush.bf16.msra.mxu0 %v1302_v22 }
  0x5b   :  { %817 = vmatpush.bf16.msra.mxu1 %v1310_v23 }
  0x5e   :  { %740 = vmatpush.bf16.msra.mxu0 %v1301_v24 }
  0x5f   :  { %818 = vmatpush.bf16.msra.mxu1 %v1309_v25 }
  0x61   :  { %741 = vmatmul.bf16.vlgmr.msra.gmra.mxu0 %v187_v26 }
  0x62   :  { %819 = vmatmul.bf16.vlgmr.msra.gmra.mxu1 %v746_v27 }
  0x9e   :  { %v638_v28 = vpop.f32.mrf.mxu0 }
  0x9f   :  { %v651_v29 = vpop.f32.mrf.mxu1 }
  0xa0   :  { %v652_v38 = vadd.f32 %v651_v29, %v638_v28 }
  0xa6   :  { %v664_v30 = vpop.f32.mrf.mxu2  ;;  %v640_v31 = vpop.f32.mrf.mxu0 }
  0xa7   :  { %v677_v32 = vpop.f32.mrf.mxu3  ;;  %v653_v33 = vpop.f32.mrf.mxu1  ;;  %v665_v41 = vadd.f32 %v664_v30, %v652_v38 }
  0xa9   :  { %v678_v44 = vadd.f32 %v677_v32, %v665_v41 }
  0xae   :  { %v666_v34 = vpop.f32.mrf.mxu2 }
  0xaf   :  { %v679_v35 = vpop.f32.mrf.mxu3 }
  0xbe   :  { %v690_v36 = vpop.f32.mrf.mxu0 }
  0xbf   :  { %v703_v37 = vpop.f32.mrf.mxu1  ;;  %v691_v46 = vadd.f32 %v690_v36, %v678_v44  ;;  %v1319_v44 = vld [vmem:[%s1664_s6] ss:$0 sm:$0xff] }
  0xc1   :  { %v704_v48 = vadd.f32 %v703_v37, %v691_v46 }
  0xc6   :  { %v716_v39 = vpop.f32.mrf.mxu2  ;;  %v692_v40 = vpop.f32.mrf.mxu0 }
  0xc7   :  { %v705_v42 = vpop.f32.mrf.mxu1  ;;  %v729_v43 = vpop.f32.mrf.mxu3  ;;  %v717_v49 = vadd.f32 %v716_v39, %v704_v48  ;;  %v1317_v48 = vld [vmem:[%s1661_s2] ss:$0 sm:$0xff] }
  0xc9   :  { %v730_v50 = vadd.f32 %v729_v43, %v717_v49 }
  0xce   :  { %v718_v45 = vpop.f32.mrf.mxu2 }
  0xcf   :  { %v731_v47 = vpop.f32.mrf.mxu3 }
  0xde   :  { %v742_v51 = vpop.f32.mrf.mxu0 }
  0xdf   :  { %v1631_v52 = vpop.f32.mrf.mxu1  ;;  %v1633_v53 = vadd.f32 %v742_v51, %v730_v50 }
  0xe0   :  { %v869_v54 = vsel %vm826_vm0, %v1631_v52, 0.0  ;;  %v877_v55 = vmul.f32 %v1631_v52, %v1631_v52 }
  0xe1   :  { %v870_v56 = vrot.slane %v869_v54, 4  ;;  %v827_v57 = vsel %vm826_vm0, %v1633_v53, 0.0  ;;  %v835_v58 = vmul.f32 %v1633_v53, %v1633_v53 }
  0xe2   :  { %v878_v59 = vsel %vm826_vm0, %v877_v55, 0.0  ;;  %v828_v60 = vrot.slane %v827_v57, 4  ;;  %v1320_v55 = vld [vmem:[%s1665_s7] ss:$0 sm:$0xff] }
  0xe3   :  { %v871_v61 = vadd.f32 %v870_v56, %v869_v54  ;;  %v879_v62 = vrot.slane %v878_v59, 4  ;;  %v836_v63 = vsel %vm826_vm0, %v835_v58, 0.0 }
  0xe4   :  { %v829_v0 = vadd.f32 %v828_v60, %v827_v57  ;;  %v837_v1 = vrot.slane %v836_v63, 4 }
  0xe5   :  { %v872_v2 = vrot.slane %v871_v61, 2  ;;  %v880_v3 = vadd.f32 %v879_v62, %v878_v59 }
  0xe6   :  { %v830_v4 = vrot.slane %v829_v0, 2  ;;  %v838_v5 = vadd.f32 %v837_v1, %v836_v63  ;;  %v744_v8 = vpop.f32.mrf.mxu0 }
  0xe7   :  { %v873_v6 = vadd.f32 %v872_v2, %v871_v61  ;;  %v881_v7 = vrot.slane %v880_v3, 2  ;;  %v822_v9 = vpop.f32.mrf.mxu1 }
  0xe8   :  { %v831_v10 = vadd.f32 %v830_v4, %v829_v0  ;;  %v839_v11 = vrot.slane %v838_v5, 2 }
  0xe9   :  { %v874_v12 = vrot.slane %v873_v6, 1  ;;  %v882_v13 = vadd.f32 %v881_v7, %v880_v3 }
  0xea   :  { %v832_v14 = vrot.slane %v831_v10, 1  ;;  %v840_v15 = vadd.f32 %v839_v11, %v838_v5 }
  0xeb   :  { %v875_v16 = vadd.f32 %v874_v12, %v873_v6  ;;  %v883_v17 = vrot.slane %v882_v13, 1 }
  0xec   :  { %v833_v18 = vadd.f32 %v832_v14, %v831_v10  ;;  %v841_v19 = vrot.slane %v840_v15, 1 }
  0xed   :  { %v876_v20 = vmul.f32 0.5, %v875_v16  ;;  %v884_v21 = vadd.f32 %v883_v17, %v882_v13 }
  0xee   :  { %v834_v22 = vmul.f32 0.5, %v833_v18  ;;  %v842_v23 = vadd.f32 %v841_v19, %v840_v15 }
  0xef   :  { %v885_v24 = vmul.f32 0.5, %v884_v21  ;;  %v886_v25 = vmul.f32 %v876_v20, %v876_v20  ;;  %v888_v43 = vsub.f32 %v1631_v52, %v876_v20  ;;  %v1318_v52 = vld [vmem:[%s1662_s3] ss:$0 sm:$0xff] }
  0xf0   :  { %v843_v26 = vmul.f32 0.5, %v842_v23  ;;  %v844_v27 = vmul.f32 %v834_v22, %v834_v22  ;;  %v846_v47 = vsub.f32 %v1633_v53, %v834_v22 }
  0xf1   :  { %v887_v28 = vsub.f32 %v885_v24, %v886_v25 }
  0xf2   :  { %v845_v29 = vsub.f32 %v843_v26, %v844_v27 }
  0xf3   :  { %v889_v30 = vadd.f32 1e-05, %v887_v28 }
  0xf4   :  { %v847_v31 = vadd.f32 1e-05, %v845_v29 }
  0xf5   :  { %1321 = vrsqrt.f32 %v889_v30  ;;  %vm896_vm3 = vweird.f32 %v889_v30 }
  0xf6   :  { %1323 = vrsqrt.f32 %v847_v31  ;;  %vm854_vm5 = vweird.f32 %v847_v31 }
  0xfb   :  { %v1322_v32 = vpop.eup %1321 }
  0xfc   :  { %v891_v33 = vmul.f32 %v1322_v32, %v889_v30  ;;  %v1324_v34 = vpop.eup %1323  ;;  %vm897_vm1 = vweird.f32 %v1322_v32 }
  0xfd   :  { %v849_v35 = vmul.f32 %v1324_v34, %v847_v31  ;;  %vm855_vm2 = vweird.f32 %v1324_v34  ;;  %vm898_vm4 = vmor %vm896_vm3, %vm897_vm1 }
  0xfe   :  { %v892_v36 = vmul.f32 %v1322_v32, %v891_v33  ;;  %vm856_vm6 = vmor %vm854_vm5, %vm855_vm2 }
  0xff   :  { %v850_v37 = vmul.f32 %v1324_v34, %v849_v35 }
 0x100   :  { %v893_v38 = vmul.f32 0.5, %v892_v36 }
 0x101   :  { %v851_v39 = vmul.f32 0.5, %v850_v37 }
 0x102   :  { %v894_v40 = vsub.f32 1.5, %v893_v38 }
 0x103   :  { %v852_v41 = vsub.f32 1.5, %v851_v39 }
 0x104   :  { %v895_v42 = vmul.f32 %v1322_v32, %v894_v40 }
 0x105   :  { %v853_v45 = vmul.f32 %v1324_v34, %v852_v41 }
 0x106   :  { %v899_v46 = vsel %vm898_vm4, %v1322_v32, %v895_v42 }
 0x107   :  { %v900_v49 = vmul.f32 %v899_v46, %v888_v43  ;;  %v857_v50 = vsel %vm856_vm6, %v1324_v34, %v853_v45 }
 0x108   :  { %v858_v51 = vmul.f32 %v857_v50, %v846_v47 }
 0x109   :  { %v904_v54 = vmul.f32 %v1319_v44, %v900_v49 }
 0x10a   :  { %v862_v56 = vmul.f32 %v1317_v48, %v858_v51 }
 0x10b   :  { %v908_v53 = vadd.f32 %v1320_v55, %v904_v54 }
 0x10c   :  { %v866_v57 = vadd.f32 %v1318_v52, %v862_v56 }
 0x10e   :  { %v909_v58 = vadd.f32 %v908_v53, %v866_v57 }
 0x110   :  { %v910_v59 = vmax.f32 %v909_v58, 0.0 }
 0x112   :  { %v911_v60 = vpack.c.bf16 %v910_v59, %v910_v59 }
 0x114   :  { %912 = vst [vmem:[%s1666_s8] sm:$0x1] %v911_v60 }

</bundles_post_ra>
